<compile_context>
chip_gen: v7x
topology: tpu7x:2x2x1
jax: 0.10.0
libtpu: 0.0.40
codegen_flags: <defaults>
</compile_context>

<pallas_src>
import jax
import jax.numpy as jnp
from jax import lax
from jax.experimental import pallas as pl
from jax.experimental.pallas import tpu as pltpu


PAIR_TILE = 128  # pairs per grid step -> 256-row matmuls (fills the MXU)


def dssm_kernel(x_ref, w1_ref, b1_ref, w2_ref, b2_ref, w3_ref, b3_ref,
                score_ref):
    """One tower over a [2*m, d_in] block (queries rows 0..m-1, docs m..2m-1)
    followed by a per-pair cosine epilogue on the MXU."""
    rows, _ = x_ref.shape
    m = rows // 2                                     # pairs in this step

    h = jnp.tanh(x_ref[...])                          # [2m, d_in] f32
    h = jnp.tanh(jnp.dot(h.astype(jnp.bfloat16), w1_ref[...],
                         preferred_element_type=jnp.float32) + b1_ref[...])
    h = jnp.tanh(jnp.dot(h.astype(jnp.bfloat16), w2_ref[...],
                         preferred_element_type=jnp.float32) + b2_ref[...])
    h = jnp.tanh(jnp.dot(h.astype(jnp.bfloat16), w3_ref[...],
                         preferred_element_type=jnp.float32) + b3_ref[...])
    # h: [2m, 128] f32 embeddings.
    hq = h[:m, :]
    hd = h[m:, :]

    # Per-pair cosine via small NT Gram matmuls (MXU) + diagonal extraction.
    nt = (((1,), (1,)), ((), ()))                     # contract last dims
    g_qd = lax.dot_general(hq, hd, nt, preferred_element_type=jnp.float32)
    g_qq = lax.dot_general(hq, hq, nt, preferred_element_type=jnp.float32)
    g_dd = lax.dot_general(hd, hd, nt, preferred_element_type=jnp.float32)

    eye = (lax.broadcasted_iota(jnp.int32, (m, m), 0)
           == lax.broadcasted_iota(jnp.int32, (m, m), 1))
    num = jnp.sum(jnp.where(eye, g_qd, 0.0), axis=0, keepdims=True)  # [1, m]
    qq = jnp.sum(jnp.where(eye, g_qq, 0.0), axis=0, keepdims=True)
    dd = jnp.sum(jnp.where(eye, g_dd, 0.0), axis=0, keepdims=True)

    # torch.cosine_similarity: x.y / (max(||x||, eps) * max(||y||, eps)),
    # eps = 1e-8.  rsqrt(max(sq, eps^2)) is equivalent for ||.|| >= eps and
    # routes the sqrt/divide to the EUP.
    eps2 = jnp.float32(1e-16)
    score_ref[...] = (num
                      * lax.rsqrt(jnp.maximum(qq, eps2))
                      * lax.rsqrt(jnp.maximum(dd, eps2)))


def dssm_forward(queries, docs, params, *, pair_tile=PAIR_TILE):
    """queries, docs: [B, d_in] f32 word-hashing count vectors.
    Returns [B] f32 cosine scores."""
    w1, b1 = params["w1"], params["b1"]
    w2, b2 = params["w2"], params["b2"]
    w3, b3 = params["w3"], params["b3"]
    B, d_in = queries.shape
    h1, h2, h3 = w1.shape[1], w2.shape[1], w3.shape[1]

    m = pair_tile
    b_pad = ((B + m - 1) // m) * m
    if b_pad != B:
        pad = b_pad - B
        queries = jnp.pad(queries, ((0, pad), (0, 0)))
        docs = jnp.pad(docs, ((0, pad), (0, 0)))
    n_tiles = b_pad // m

    # Host-side layout: for each tile t, m query rows followed by m doc rows,
    # so the kernel's x block is a contiguous [2m, d_in] slab.
    x = jnp.stack([queries.reshape(n_tiles, m, d_in),
                   docs.reshape(n_tiles, m, d_in)], axis=1)
    x = x.reshape(2 * b_pad, d_in)

    def const(shape):
        # Constant index_map: block DMA'd once, stays VMEM-resident.
        return pl.BlockSpec(shape, lambda i: (0,) * len(shape))

    flops = (2 * (2 * b_pad) * (d_in * h1 + h1 * h2 + h2 * h3)   # tower
             + n_tiles * 3 * 2 * m * m * h3)                     # Gram epilogue
    transcendentals = 2 * b_pad * (d_in + h1 + h2 + h3) + 2 * b_pad
    bytes_accessed = (2 * b_pad * d_in * 4
                      + (w1.size + w2.size + w3.size) * 2
                      + (b1.size + b2.size + b3.size) * 4
                      + b_pad * 4)

    scores = pl.pallas_call(
        dssm_kernel,
        out_shape=jax.ShapeDtypeStruct((1, b_pad), jnp.float32),
        grid=(n_tiles,),
        in_specs=[
            pl.BlockSpec((2 * m, d_in), lambda i: (i, 0)),  # per-tile pairs
            const((d_in, h1)), const((1, h1)),
            const((h1, h2)),   const((1, h2)),
            const((h2, h3)),   const((1, h3)),
        ],
        out_specs=pl.BlockSpec((1, m), lambda i: (0, i)),   # lane-dense scores
        compiler_params=pltpu.CompilerParams(
            dimension_semantics=("parallel",)),
        cost_estimate=pl.CostEstimate(flops=flops,
                                      transcendentals=transcendentals,
                                      bytes_accessed=bytes_accessed),
    )(x, w1, b1, w2, b2, w3, b3)
    return scores[0, :B]


def init_params(key, d_in, h1=300, h2=300, h3=128, h_pad=384):
    """nn.Linear-style init; weights stored as [D_in, D_out], hidden dims
    zero-padded 300 -> 384 (multiple of 128), weights cast to bf16.
    Zero padding is numerically inert: padded bias entries are 0 so the extra
    tanh(0)=0 activations multiply all-zero weight rows downstream."""
    ks = jax.random.split(key, 6)

    def linear(kw, kb, fan_in, fan_out):
        bound = 1.0 / jnp.sqrt(jnp.float32(fan_in))
        w = jax.random.uniform(kw, (fan_in, fan_out), jnp.float32, -bound, bound)
        b = jax.random.uniform(kb, (1, fan_out), jnp.float32, -bound, bound)
        return w, b

    w1, b1 = linear(ks[0], ks[1], d_in, h1)
    w2, b2 = linear(ks[2], ks[3], h1, h2)
    w3, b3 = linear(ks[4], ks[5], h2, h3)

    def pad2(a, rows, cols):
        return jnp.pad(a, ((0, rows - a.shape[0]), (0, cols - a.shape[1])))

    return {
        "w1": pad2(w1, d_in, h_pad).astype(jnp.bfloat16),
        "b1": pad2(b1, 1, h_pad),
        "w2": pad2(w2, h_pad, h_pad).astype(jnp.bfloat16),
        "b2": pad2(b2, 1, h_pad),
        "w3": pad2(w3, h_pad, h3).astype(jnp.bfloat16),
        "b3": b3,
    }


def dssm_reference(queries, docs, p):
    """Plain-JAX reference with identical (padded, bf16-weight) tower math.
    Note: this validates the kernel against the same bf16-quantized weights,
    not against an f32 PyTorch baseline."""
    def tower(x):
        h = jnp.tanh(x)
        h = jnp.tanh(jnp.dot(h.astype(jnp.bfloat16), p["w1"],
                             preferred_element_type=jnp.float32) + p["b1"])
        h = jnp.tanh(jnp.dot(h.astype(jnp.bfloat16), p["w2"],
                             preferred_element_type=jnp.float32) + p["b2"])
        h = jnp.tanh(jnp.dot(h.astype(jnp.bfloat16), p["w3"],
                             preferred_element_type=jnp.float32) + p["b3"])
        return h

    q = tower(queries)
    d = tower(docs)
    eps = jnp.float32(1e-8)
    num = jnp.sum(q * d, axis=-1)
    qn = jnp.maximum(jnp.sqrt(jnp.sum(q * q, axis=-1)), eps)
    dn = jnp.maximum(jnp.sqrt(jnp.sum(d * d, axis=-1)), eps)
    return num / (qn * dn)


if __name__ == "__main__":
    key = jax.random.PRNGKey(0)
    k_params, k_q, k_d = jax.random.split(key, 3)

    # Synthetic "word hashing" trigram-count vectors.
    # TODO(synk): BagOfWords / WordHashing string preprocessing (dict/trigram
    # lookups) has no tensor equivalent; the integer hashing vectors are
    # synthesized in-script.
    D_IN = 512
    B = 200  # not a multiple of the 128-pair tile, exercises the pad path
    queries = jax.random.randint(k_q, (B, D_IN), 0, 4).astype(jnp.float32)
    docs = jax.random.randint(k_d, (B, D_IN), 0, 4).astype(jnp.float32)

    params = init_params(k_params, D_IN)

    scores = jax.block_until_ready(dssm_forward(queries, docs, params))
    ref = jax.block_until_ready(dssm_reference(queries, docs, params))

    assert scores.shape == (B,)
    assert jnp.allclose(scores, ref, atol=2e-3, rtol=2e-3), (scores[:4], ref[:4])

    print("KERNEL_OK")
</pallas_src>

<mosaic_0001>
module attributes {stable_mosaic.version = 11 : i64} {
  func.func @dssm_kernel(%arg0: i32, %arg1: memref<256x512xf32, #tpu.memory_space<vmem>>, %arg2: memref<512x384xbf16, #tpu.memory_space<vmem>>, %arg3: memref<1x384xf32, #tpu.memory_space<vmem>>, %arg4: memref<384x384xbf16, #tpu.memory_space<vmem>>, %arg5: memref<1x384xf32, #tpu.memory_space<vmem>>, %arg6: memref<384x128xbf16, #tpu.memory_space<vmem>>, %arg7: memref<1x128xf32, #tpu.memory_space<vmem>>, %arg8: memref<1x128xf32, #tpu.memory_space<vmem>>) attributes {dimension_semantics = [#tpu.dimension_semantics<parallel>], iteration_bounds = array<i64: 2>, scalar_prefetch = 0 : i64, scratch_operands = 0 : i64, tpu.core_type = #tpu.core_type<tc>, window_params = [{transform_indices = @transform_0, window_bounds = array<i64: 256, 512>}, {pipeline_mode = #tpu.pipeline_mode<synchronous>, transform_indices = @transform_1, window_bounds = array<i64: 512, 384>}, {pipeline_mode = #tpu.pipeline_mode<synchronous>, transform_indices = @transform_2, window_bounds = array<i64: 1, 384>}, {pipeline_mode = #tpu.pipeline_mode<synchronous>, transform_indices = @transform_3, window_bounds = array<i64: 384, 384>}, {pipeline_mode = #tpu.pipeline_mode<synchronous>, transform_indices = @transform_4, window_bounds = array<i64: 1, 384>}, {pipeline_mode = #tpu.pipeline_mode<synchronous>, transform_indices = @transform_5, window_bounds = array<i64: 384, 128>}, {pipeline_mode = #tpu.pipeline_mode<synchronous>, transform_indices = @transform_6, window_bounds = array<i64: 1, 128>}, {transform_indices = @transform_7, window_bounds = array<i64: 1, 128>}]} {
    %c0 = arith.constant 0 : index
    %c0_0 = arith.constant 0 : index
    %0 = vector.load %arg1[%c0, %c0_0] : memref<256x512xf32, #tpu.memory_space<vmem>>, vector<256x512xf32>
    %1 = math.tanh %0 : vector<256x512xf32>
    %2 = arith.truncf %1 : vector<256x512xf32> to vector<256x512xbf16>
    %c0_1 = arith.constant 0 : index
    %c0_2 = arith.constant 0 : index
    %3 = vector.load %arg2[%c0_1, %c0_2] : memref<512x384xbf16, #tpu.memory_space<vmem>>, vector<512x384xbf16>
    %cst = arith.constant dense<0.000000e+00> : vector<256x384xf32>
    %4 = tpu.matmul %2, %3, %cst {dimension_numbers = #tpu.dot_dimension_numbers<[1], [0], [0], [1], [0, 0, 1, 1], [], []>} : vector<256x512xbf16>, vector<512x384xbf16>, vector<256x384xf32> -> vector<256x384xf32>
    %c0_3 = arith.constant 0 : index
    %c0_4 = arith.constant 0 : index
    %5 = vector.load %arg3[%c0_3, %c0_4] : memref<1x384xf32, #tpu.memory_space<vmem>>, vector<1x384xf32>
    %6 = vector.broadcast %5 : vector<1x384xf32> to vector<256x384xf32>
    %7 = arith.addf %4, %6 : vector<256x384xf32>
    %8 = math.tanh %7 : vector<256x384xf32>
    %9 = arith.truncf %8 : vector<256x384xf32> to vector<256x384xbf16>
    %c0_5 = arith.constant 0 : index
    %c0_6 = arith.constant 0 : index
    %10 = vector.load %arg4[%c0_5, %c0_6] : memref<384x384xbf16, #tpu.memory_space<vmem>>, vector<384x384xbf16>
    %cst_7 = arith.constant dense<0.000000e+00> : vector<256x384xf32>
    %11 = tpu.matmul %9, %10, %cst_7 {dimension_numbers = #tpu.dot_dimension_numbers<[1], [0], [0], [1], [0, 0, 1, 1], [], []>} : vector<256x384xbf16>, vector<384x384xbf16>, vector<256x384xf32> -> vector<256x384xf32>
    %c0_8 = arith.constant 0 : index
    %c0_9 = arith.constant 0 : index
    %12 = vector.load %arg5[%c0_8, %c0_9] : memref<1x384xf32, #tpu.memory_space<vmem>>, vector<1x384xf32>
    %13 = vector.broadcast %12 : vector<1x384xf32> to vector<256x384xf32>
    %14 = arith.addf %11, %13 : vector<256x384xf32>
    %15 = math.tanh %14 : vector<256x384xf32>
    %16 = arith.truncf %15 : vector<256x384xf32> to vector<256x384xbf16>
    %c0_10 = arith.constant 0 : index
    %c0_11 = arith.constant 0 : index
    %17 = vector.load %arg6[%c0_10, %c0_11] : memref<384x128xbf16, #tpu.memory_space<vmem>>, vector<384x128xbf16>
    %cst_12 = arith.constant dense<0.000000e+00> : vector<256x128xf32>
    %18 = tpu.matmul %16, %17, %cst_12 {dimension_numbers = #tpu.dot_dimension_numbers<[1], [0], [0], [1], [0, 0, 1, 1], [], []>} : vector<256x384xbf16>, vector<384x128xbf16>, vector<256x128xf32> -> vector<256x128xf32>
    %c0_13 = arith.constant 0 : index
    %c0_14 = arith.constant 0 : index
    %19 = vector.load %arg7[%c0_13, %c0_14] : memref<1x128xf32, #tpu.memory_space<vmem>>, vector<1x128xf32>
    %20 = vector.broadcast %19 : vector<1x128xf32> to vector<256x128xf32>
    %21 = arith.addf %18, %20 : vector<256x128xf32>
    %22 = math.tanh %21 : vector<256x128xf32>
    %23 = vector.extract_strided_slice %22 {offsets = [0, 0], sizes = [128, 128], strides = [1, 1]} : vector<256x128xf32> to vector<128x128xf32>
    %24 = vector.extract_strided_slice %22 {offsets = [128, 0], sizes = [128, 128], strides = [1, 1]} : vector<256x128xf32> to vector<128x128xf32>
    %cst_15 = arith.constant dense<0.000000e+00> : vector<128x128xf32>
    %25 = tpu.matmul %23, %24, %cst_15 {dimension_numbers = #tpu.dot_dimension_numbers<[1], [1], [0], [0], [0, 0, 1, 0], [], []>} : vector<128x128xf32>, vector<128x128xf32>, vector<128x128xf32> -> vector<128x128xf32>
    %cst_16 = arith.constant dense<0.000000e+00> : vector<128x128xf32>
    %26 = tpu.matmul %23, %23, %cst_16 {dimension_numbers = #tpu.dot_dimension_numbers<[1], [1], [0], [0], [0, 0, 1, 0], [], []>} : vector<128x128xf32>, vector<128x128xf32>, vector<128x128xf32> -> vector<128x128xf32>
    %cst_17 = arith.constant dense<0.000000e+00> : vector<128x128xf32>
    %27 = tpu.matmul %24, %24, %cst_17 {dimension_numbers = #tpu.dot_dimension_numbers<[1], [1], [0], [0], [0, 0, 1, 0], [], []>} : vector<128x128xf32>, vector<128x128xf32>, vector<128x128xf32> -> vector<128x128xf32>
    %28 = tpu.iota {dimensions = array<i32: 0>} : vector<128x128xi32>
    %29 = tpu.iota {dimensions = array<i32: 1>} : vector<128x128xi32>
    %30 = arith.cmpi eq, %28, %29 : vector<128x128xi32>
    %cst_18 = arith.constant 0.000000e+00 : f32
    %31 = vector.broadcast %cst_18 : f32 to vector<128x128xf32>
    %32 = arith.select %30, %25, %31 : vector<128x128xi1>, vector<128x128xf32>
    %cst_19 = arith.constant dense<0.000000e+00> : vector<128xf32>
    %33 = vector.multi_reduction <add>, %32, %cst_19 [0] : vector<128x128xf32> to vector<128xf32>
    %34 = vector.shape_cast %33 : vector<128xf32> to vector<1x128xf32>
    %cst_20 = arith.constant 0.000000e+00 : f32
    %35 = vector.broadcast %cst_20 : f32 to vector<128x128xf32>
    %36 = arith.select %30, %26, %35 : vector<128x128xi1>, vector<128x128xf32>
    %cst_21 = arith.constant dense<0.000000e+00> : vector<128xf32>
    %37 = vector.multi_reduction <add>, %36, %cst_21 [0] : vector<128x128xf32> to vector<128xf32>
    %38 = vector.shape_cast %37 : vector<128xf32> to vector<1x128xf32>
    %cst_22 = arith.constant 0.000000e+00 : f32
    %39 = vector.broadcast %cst_22 : f32 to vector<128x128xf32>
    %40 = arith.select %30, %27, %39 : vector<128x128xi1>, vector<128x128xf32>
    %cst_23 = arith.constant dense<0.000000e+00> : vector<128xf32>
    %41 = vector.multi_reduction <add>, %40, %cst_23 [0] : vector<128x128xf32> to vector<128xf32>
    %42 = vector.shape_cast %41 : vector<128xf32> to vector<1x128xf32>
    %cst_24 = arith.constant 1.000000e-16 : f32
    %43 = vector.broadcast %cst_24 : f32 to vector<1x128xf32>
    %44 = arith.maximumf %38, %43 : vector<1x128xf32>
    %45 = math.rsqrt %44 : vector<1x128xf32>
    %46 = arith.mulf %34, %45 : vector<1x128xf32>
    %cst_25 = arith.constant 1.000000e-16 : f32
    %47 = vector.broadcast %cst_25 : f32 to vector<1x128xf32>
    %48 = arith.maximumf %42, %47 : vector<1x128xf32>
    %49 = math.rsqrt %48 : vector<1x128xf32>
    %50 = arith.mulf %46, %49 : vector<1x128xf32>
    %c0_26 = arith.constant 0 : index
    %c0_27 = arith.constant 0 : index
    %51 = vector.load %arg8[%c0_26, %c0_27] : memref<1x128xf32, #tpu.memory_space<vmem>>, vector<1x128xf32>
    tpu.vector_store %arg8[%c0_26, %c0_27], %50 {strides = array<i32>} : memref<1x128xf32, #tpu.memory_space<vmem>>, vector<1x128xf32>,
    return
  }
  func.func @transform_0(%arg0: i32) -> (i32, i32) {
    %c0_i32 = arith.constant 0 : i32
    %c0_i32_0 = arith.constant 0 : i32
    return %arg0, %c0_i32 : i32, i32
  }
  func.func @transform_1(%arg0: i32) -> (i32, i32) {
    %c0_i32 = arith.constant 0 : i32
    %c0_i32_0 = arith.constant 0 : i32
    %c0_i32_1 = arith.constant 0 : i32
    return %c0_i32, %c0_i32_0 : i32, i32
  }
  func.func @transform_2(%arg0: i32) -> (i32, i32) {
    %c0_i32 = arith.constant 0 : i32
    %c0_i32_0 = arith.constant 0 : i32
    %c0_i32_1 = arith.constant 0 : i32
    return %c0_i32, %c0_i32_0 : i32, i32
  }
  func.func @transform_3(%arg0: i32) -> (i32, i32) {
    %c0_i32 = arith.constant 0 : i32
    %c0_i32_0 = arith.constant 0 : i32
    %c0_i32_1 = arith.constant 0 : i32
    return %c0_i32, %c0_i32_0 : i32, i32
  }
  func.func @transform_4(%arg0: i32) -> (i32, i32) {
    %c0_i32 = arith.constant 0 : i32
    %c0_i32_0 = arith.constant 0 : i32
    %c0_i32_1 = arith.constant 0 : i32
    return %c0_i32, %c0_i32_0 : i32, i32
  }
  func.func @transform_5(%arg0: i32) -> (i32, i32) {
    %c0_i32 = arith.constant 0 : i32
    %c0_i32_0 = arith.constant 0 : i32
    %c0_i32_1 = arith.constant 0 : i32
    return %c0_i32, %c0_i32_0 : i32, i32
  }
  func.func @transform_6(%arg0: i32) -> (i32, i32) {
    %c0_i32 = arith.constant 0 : i32
    %c0_i32_0 = arith.constant 0 : i32
    %c0_i32_1 = arith.constant 0 : i32
    return %c0_i32, %c0_i32_0 : i32, i32
  }
  func.func @transform_7(%arg0: i32) -> (i32, i32) {
    %c0_i32 = arith.constant 0 : i32
    %c0_i32_0 = arith.constant 0 : i32
    return %c0_i32, %arg0 : i32, i32
  }
}

</mosaic_0001>

<bundles_post_ra>
// kernel: tpu_custom_call.1
= control target key start
LH: loop header
LB: loop body
LE: loop exit
PB: predicated region body
PF: predicated region fallthrough
CT: control target
= control target key end

     0   :  { %12 = vsyncpa [#allocation3], 0  ;;  %s9035_s0 = inlined_call_operand.hbm [shape: f32[512,512], index: 0, kind: input, shape index: {}]   ;;  %s9036_s1 = inlined_call_operand.hbm [shape: bf16[512,384], index: 1, kind: input, shape index: {}]   ;;  %s9037_s2 = inlined_call_operand.vmem [shape: f32[1,384], index: 2, kind: input, shape index: {}]   ;;  %s9038_s3 = inlined_call_operand.hbm [shape: bf16[384,384], index: 3, kind: input, shape index: {}]   ;;  %s9039_s4 = inlined_call_operand.vmem [shape: f32[1,384], index: 4, kind: input, shape index: {}]   ;;  %s9040_s5 = inlined_call_operand.hbm [shape: bf16[384,128], index: 5, kind: input, shape index: {}]   ;;  %s9041_s6 = inlined_call_operand.vmem [shape: f32[1,128], index: 6, kind: input, shape index: {}]   ;;  %s9042_s7 = inlined_call_operand.hbm [shape: f32[1,256], index: 7, kind: output, shape index: {}]  }
   0x1   :  { %14 = vsyncpa [#allocation3 + $0x1], 0 }
   0x2   :  { %15 = vsyncpa [#allocation6], 0 }
   0x3   :  { %16 = vsyncpa [#allocation9], 0 }
   0x4   :  { %17 = vsyncpa [#allocation4], 0 }
   0x5   :  { %19 = vsyncpa [#allocation4 + $0x1], 0  ;;  %s7473_s24 = smov 0   ;;  %s7475_s25 = smov 0  }
   0x6   :  { %s7477_s26 = smov 0   ;;  %s7479_s27 = smov 0  }
   0x7 LB: > { %s7494_s28 = sadd.s32 4294967295, %s7419_s27   ;;  %s4770_s29 = sadd.s32 4294967294, %s7419_s27   ;;  %s7419_s27 = sphi %s7479_s27, %s9068_s27   ;;  %s7415_s26 = sphi %s7477_s26, %s9067_s26   ;;  %s7411_s25 = sphi %s7475_s25, %s9066_s25   ;;  %s7407_s24 = sphi %s7473_s24, %s9065_s24  }
   0x8   : > { %p45_p0 = scmp.ne.s32.totalorder %s7411_s25, %s7407_s24  ;;  %p9043_p1 = scmp.eq.s32.totalorder %s7494_s28, 0 }
   0x9   : > { %p201_p3 = scmp.eq.s32.totalorder %s4770_s29, 1  ;;  %p4771_p5 = scmp.ge.s32.totalorder %s7419_s27, 1 }
   0xa   : > { %p7503_p4 = por %p9043_p1, %p45_p0  ;;  %p208_p7 = scmp.lt.s32.totalorder %s7419_s27, 3 }
   0xb   : > { %p7508_p6 = por %p201_p3, %p45_p0  ;;  %s7421_s10 = smov [#allocation5]  }
   0xc   : > { %s9047_s30 = scalar_select %p7503_p4, 1, 0 }
   0xd   : > { %s9048_s8 = scalar_select %p7508_p6, 1, 0 }
   0xe   : > { %p7513_p8 = pnand %p4771_p5, %p208_p7  ;;  %s220_s11 = sshll.u32 %s7421_s10, 4  ;;  %s7517_s11 = int_to_ptr.vmem [resolvable:$true] %s220_s11 }
   0xf   : > { %9049 = sst [smem:[#allocation15_spill]] %s9048_s8  ;;  %s7422_s13 = smov [#allocation7]  }
  0x10   : > { %s9050_s9 = scalar_select %p7513_p8, 1, 0 }
  0x11   : > { %p6207_p9 = pneg %p7513_p8  ;;  %s236_s14 = sshll.u32 %s7422_s13, 4  ;;  %s7528_s14 = int_to_ptr.vmem [resolvable:$true] %s236_s14 }
  0x12   : > { %s7423_s15 = smov [#allocation8]   ;;  %s7231_s19 = scalar_lea.hbm %s9036_s1, 12288 }
  0x13   : > { %p7524_p11 = pnand %p6207_p9, %p9043_p1  ;;  %s7530_s16 = sshll.u32 %s7423_s15, 4  ;;  %s253_s16 = int_to_ptr.vmem [resolvable:$true] %s7530_s16 }
  0x14   : > { %p7232_p12 = scmp.ne.s32.totalorder %s9036_s1, %s7231_s19  ;;  %p7238_p5 = scmp.lt.u32.totalorder %s7231_s19, %s9036_s1 }
  0x15   : > { %p7540_p13 = pneg %p7524_p11 }
  0x17   : > { %p7234_p0 = pnand %p7540_p13, %p7232_p12 }
  0x19   : > { %p7235_p3 = pneg %p7234_p0 }
  0x1b   : > { %p7240_p7 = pnand %p7238_p5, %p7235_p3 }
  0x1d   : > { %7243 = shalt.err (!%p7240_p7)
}
  0x1e   : > { %s7244_s10 = scalar_lea.vmem %s7517_s11, 12288  ;;  %p7252_p2 = scmp.lt.s32.totalorder %s7517_s11, %s7517_s11 }
  0x1f   : > { %p7245_p9 = scmp.ne.s32.totalorder %s7517_s11, %s7244_s10  ;;  %p7253_p6 = scmp.lt.s32.totalorder %s7244_s10, %s7244_s10 }
  0x21   : > { %p7247_p10 = pnand %p7245_p9, %p7540_p13  ;;  %p7254_p12 = por %p7253_p6, %p7252_p2 }
  0x23   : > { %p7248_p1 = pneg %p7247_p10 }
  0x25   : > { %p7255_p0 = pnand %p7254_p12, %p7248_p1 }
  0x27   : > { %7258 = shalt.err (!%p7255_p0)
}
  0x28   : > { %s7424_s13 = smov 192   ;;  %s7425_s15 = smov 12  }
  0x29   : > { %6210 = dma.hbm_to_vmem [thread:$0]  (!%p7524_p11), %s9036_s1, 12288, %s7517_s11, [#allocation6], %s7424_s13, %s7424_s13, %s7425_s15  }
  0x2a   : > { %s7259_s21 = scalar_lea.hbm %s9038_s3, 9216 }
  0x2b   : > { %p7260_p2 = scmp.ne.s32.totalorder %s9038_s3, %s7259_s21  ;;  %p7266_p10 = scmp.lt.u32.totalorder %s7259_s21, %s9038_s3 }
  0x2d   : > { %p7262_p1 = pnand %p7260_p2, %p7540_p13 }
  0x2f   : > { %p7263_p6 = pneg %p7262_p1 }
  0x31   : > { %p7268_p3 = pnand %p7266_p10, %p7263_p6 }
  0x33   : > { %7271 = shalt.err (!%p7268_p3)
}
  0x34   : > { %s7272_s11 = scalar_lea.vmem %s7528_s14, 9216  ;;  %p7280_p12 = scmp.lt.s32.totalorder %s7528_s14, %s7528_s14 }
  0x35   : > { %p7273_p5 = scmp.ne.s32.totalorder %s7528_s14, %s7272_s11  ;;  %p7281_p0 = scmp.lt.s32.totalorder %s7272_s11, %s7272_s11 }
  0x37   : > { %p7275_p7 = pnand %p7273_p5, %p7540_p13  ;;  %p7282_p2 = por %p7281_p0, %p7280_p12 }
  0x39   : > { %p7276_p9 = pneg %p7275_p7 }
  0x3b   : > { %p7283_p1 = pnand %p7282_p2, %p7276_p9 }
  0x3d   : > { %7286 = shalt.err (!%p7283_p1)
}
  0x3e   : > { %6213 = dma.hbm_to_vmem [thread:$0]  (!%p7524_p11), %s9038_s3, 9216, %s7528_s14, [#allocation6], %s7424_s13, %s7424_s13, %s7425_s15  }
  0x3f   : > { %s7287_s20 = scalar_lea.hbm %s9040_s5, 3072 }
  0x40   : > { %p7288_p6 = scmp.ne.s32.totalorder %s9040_s5, %s7287_s20  ;;  %p7294_p5 = scmp.lt.u32.totalorder %s7287_s20, %s9040_s5 }
  0x42   : > { %p7290_p10 = pnand %p7288_p6, %p7540_p13 }
  0x44   : > { %p7291_p3 = pneg %p7290_p10 }
  0x46   : > { %p7296_p7 = pnand %p7294_p5, %p7291_p3 }
  0x48   : > { %7299 = shalt.err (!%p7296_p7)
}
  0x49   : > { %s7300_s11 = scalar_lea.vmem %s253_s16, 3072  ;;  %p7308_p2 = scmp.lt.s32.totalorder %s253_s16, %s253_s16 }
  0x4a   : > { %p7301_p9 = scmp.ne.s32.totalorder %s253_s16, %s7300_s11  ;;  %p7309_p1 = scmp.lt.s32.totalorder %s7300_s11, %s7300_s11 }
  0x4c   : > { %p7303_p12 = pnand %p7301_p9, %p7540_p13  ;;  %p7310_p4 = por %p7309_p1, %p7308_p2 }
  0x4e   : > { %p7304_p0 = pneg %p7303_p12 }
  0x50   : > { %p7311_p8 = pnand %p7310_p4, %p7304_p0 }
  0x52   : > { %7314 = shalt.err (!%p7311_p8)
}
  0x53   : > { %s7426_s14 = smov 64   ;;  %s7427_s22 = smov 4  }
  0x54   : > { %6216 = dma.hbm_to_vmem [thread:$0]  (!%p7524_p11), %s9040_s5, 3072, %s253_s16, [#allocation9], %s7426_s14, %s7426_s14, %s7427_s22  }
  0x55   : > { %s7604_s8 = sadd.s32 1, %s7419_s27   ;;  %s32_s18 = sadd.s32 1, %s7415_s26 }
  0x56   : > { %s29_s17 = ssub.s32 %s7419_s27, %s7604_s8  ;;  %p39_p8 = scmp.ne.s32.totalorder %s7415_s26, %s7411_s25 }
  0x57   : > { %p30_p4 = scmp.eq.s32.totalorder %s29_s17, 0  ;;  %p40_p13 = scmp.eq.s32.totalorder %s7419_s27, 0 }
  0x58   : > { %p6228_p6 = scmp.lt.s32.totalorder %s7419_s27, 2  ;;  %p9053_p3 = scmp.eq.s32.totalorder %s7494_s28, 1 }
  0x59   : > { %s7614_s19 = scalar_select %p30_p4, %s7415_s26, %s32_s18  }
  0x5a   : > { %p41_p10 = por %p40_p13, %p39_p8  ;;  %p7618_p5 = por %p9053_p3, %p39_p8 }
  0x5b   : > { %s269_s12 = sand.u32 1, %s7415_s26   ;;  %s4982_s21 = sshll.u32 %s7419_s27, 14 }
  0x5c   : > { %s4776_s16 = sshll.u32 %s269_s12, 10  ;;  %s7627_s10 = scalar_lea.hbm %s9035_s0, %s4982_s21 }
  0x5d   : > { %s273_s11 = scalar_lea.vmem [#allocation2], %s4776_s16  ;;  %p7629_p11 = pnand %p6228_p6, %p41_p10 }
  0x5e   : > { %s281_s14 = sshll.u32 %s273_s11, 4  ;;  %s7635_s13 = scalar_lea.sflag [#allocation3], %s269_s12  ;;  %s7633_s14 = int_to_ptr.vmem [resolvable:$true] %s281_s14 }
  0x5f   : > { %s7315_s15 = scalar_lea.hbm %s7627_s10, 16384  ;;  %p7317_p9 = pneg %p7629_p11 }
  0x60   : > { %p7316_p7 = scmp.ne.s32.totalorder %s7627_s10, %s7315_s15  ;;  %s7320_s21 = scalar_lea.hbm %s9035_s0, 32768 }
  0x61   : > { %p7321_p2 = scmp.lt.u32.totalorder %s7627_s10, %s9035_s0  ;;  %p7322_p1 = scmp.lt.u32.totalorder %s7320_s21, %s7315_s15 }
  0x62   : > { %p7318_p12 = pnand %p7317_p9, %p7316_p7  ;;  %p7324_p8 = scmp.lt.u32.totalorder %s7315_s15, %s7627_s10 }
  0x63   : > { %p7323_p4 = por %p7322_p1, %p7321_p2 }
  0x64   : > { %p7319_p0 = pneg %p7318_p12 }
  0x65   : > { %p7325_p13 = por %p7324_p8, %p7323_p4 }
  0x67   : > { %p7326_p6 = pnand %p7325_p13, %p7319_p0 }
  0x69   : > { %7329 = shalt.err (!%p7326_p6)
}
  0x6a   : > { %s7330_s12 = scalar_lea.vmem %s7633_s14, 16384  ;;  %s7428_s29 = smov [#allocation2]  }
  0x6b   : > { %p7331_p10 = scmp.ne.s32.totalorder %s7633_s14, %s7330_s12  ;;  %s7335_s11 = sshll.u32 %s7428_s29, 4  ;;  %s7336_s11 = int_to_ptr.vmem [resolvable:$false] %s7335_s11 }
  0x6c   : > { %s7337_s17 = scalar_lea.vmem %s7336_s11, 32768  ;;  %p7338_p12 = scmp.lt.s32.totalorder %s7633_s14, %s7336_s11 }
  0x6d   : > { %p7333_p3 = pnand %p7331_p10, %p7317_p9  ;;  %p7339_p2 = scmp.lt.s32.totalorder %s7337_s17, %s7330_s12 }
  0x6f   : > { %p7334_p7 = pneg %p7333_p3  ;;  %p7340_p1 = por %p7339_p2, %p7338_p12 }
  0x71   : > { %p7341_p4 = pnand %p7340_p1, %p7334_p7 }
  0x73   : > { %7344 = shalt.err (!%p7341_p4)
}
  0x74   : > { %s7429_s15 = smov 512   ;;  %s7430_s18 = smov 32  }
  0x75   : > { %6220 = dma.hbm_to_vmem [thread:$0]  (!%p7629_p11), %s7627_s10, 16384, %s7633_s14, %s7635_s13, %s7429_s15, %s7429_s15, %s7430_s18  }
  0x76   : > { %p9056_p9 = scmp.ne.s32.totalorder %s9050_s9, 0 }
  0x77   : > { %s7666_s21 = sand.u32 (!%p9056_p9), 1, %s7411_s25   ;;  %p9057_p0 = scmp.ne.s32.totalorder (!%p9056_p9), %s9047_s30, 0 }
  0x78   : > { %293 = sbr.rel (%p9056_p9) target bundleno = 1638 (0x666), region = 48  ;;  %s4781_s16 = sshll.u32 (!%p9056_p9), %s7666_s21, 10 }
  0x79   : > { %s296_s23 = scalar_lea.sflag (!%p9056_p9), [#allocation3], %s7666_s21  ;;  %s7670_s12 = scalar_lea.vmem (!%p9056_p9), [#allocation2], %s4781_s16 }
  0x7f   : > { %7390 = dma.done.wait (%p9057_p0), %s296_s23, 16384  }
  0x80   : > { %7392 = vsyncadd (%p9057_p0), %s296_s23, 4294950912  ;;  %p9058_p11 = scmp.eq.s32.totalorder %s7494_s28, 0 }
  0x82   : > { %7394 = dma.done.wait (%p9058_p11), [#allocation6], 21504   ;;  %p9059_p8 = pmov %p9058_p11 }
  0x84   : > { %7396 = vsyncadd (%p9059_p8), [#allocation6], 4294945792  ;;  %p9060_p13 = pmov %p9059_p8 }
  0x85   : > { %p9061_p6 = pmov %p9059_p8 }
  0x86   : > { %7398 = dma.done.wait (%p9060_p13), [#allocation9], 3072  }
  0x87   : > { %7400 = vsyncadd (%p9061_p6), [#allocation9], 4294964224  ;;  %v6275_v0 = vld [vmem:[#allocation5 + $0x4] ss:$12 sps:$4 sm:$0xff]   ;;  %v6277_v1 = vld [vmem:[#allocation5] ss:$12 sps:$4 sm:$0xff]  }
  0x88   : > { %1320 = vmatprep.subr.bf16.mxu0 %v6275_v0  ;;  %v6278_v2 = vld [vmem:[#allocation5 + $0x1c] ss:$12 sps:$4 sm:$0xff]   ;;  %v6280_v3 = vld [vmem:[#allocation5 + $0x18] ss:$12 sps:$4 sm:$0xff]   ;;  %v6282_v5 = vld [vmem:[#allocation5 + $0x34] ss:$12 sps:$4 sm:$0xff]  }
  0x89   : > { %1321 = vmatpush1.bf16.msra.mxu0 %v6277_v1  ;;  %v6281_v4 = vld [vmem:[#allocation5 + $0xc8] ss:$12 sps:$4 sm:$0xff]   ;;  %v6285_v7 = vld [vmem:[#allocation5 + $0x30] ss:$12 sps:$4 sm:$0xff]   ;;  %v6286_v8 = vld [vmem:[#allocation5 + $0xe0] ss:$12 sps:$4 sm:$0xff]  }
  0x8a   : > { %1322 = vmatprep.subr.bf16.mxu0 %v6278_v2  ;;  %4983 = vmatprep.subr.bf16.mxu1 %v6281_v4  ;;  %v6284_v6 = vld [vmem:[#allocation5 + $0x8] ss:$12 sps:$4 sm:$0xff]   ;;  %v6287_v9 = vld [vmem:[#allocation5 + $0x4c] ss:$12 sps:$4 sm:$0xff]   ;;  %v6292_v13 = vld [vmem:[#allocation5 + $0x64] ss:$12 sps:$4 sm:$0xff]  }
  0x8b   : > { %4984 = vmatpush3.bf16.msra.mxu1 %v6284_v6  ;;  %v6289_v10 = vld [vmem:[#allocation5 + $0x20] ss:$12 sps:$4 sm:$0xff]   ;;  %v6291_v11 = vld [vmem:[#allocation5 + $0xf8] ss:$12 sps:$4 sm:$0xff]   ;;  %v6290_v12 = vld [vmem:[#allocation5 + $0x48] ss:$12 sps:$4 sm:$0xff]  }
  0x8c   : > { %4985 = vmatprep.subr.bf16.mxu1 %v6286_v8  ;;  %v6294_v14 = vld [vmem:[#allocation5 + $0x38] ss:$12 sps:$4 sm:$0xff]   ;;  %v6296_v15 = vld [vmem:[#allocation5 + $0x110] ss:$12 sps:$4 sm:$0xff]   ;;  %v6295_v16 = vld [vmem:[#allocation5 + $0x60] ss:$12 sps:$4 sm:$0xff]  }
  0x8d   : > { %1323 = vmatpush1.bf16.msra.mxu0 %v6280_v3  ;;  %v6297_v17 = vld [vmem:[#allocation5 + $0x7c] ss:$12 sps:$4 sm:$0xff]   ;;  %v6300_v20 = vld [vmem:[#allocation5 + $0x78] ss:$12 sps:$4 sm:$0xff]   ;;  %v6302_v21 = vld [vmem:[#allocation5 + $0x94] ss:$12 sps:$4 sm:$0xff]  }
  0x8e   : > { %1324 = vmatprep.subr.bf16.mxu0 %v6282_v5  ;;  %v6299_v18 = vld [vmem:[#allocation5 + $0x50] ss:$12 sps:$4 sm:$0xff]   ;;  %v6301_v19 = vld [vmem:[#allocation5 + $0x128] ss:$12 sps:$4 sm:$0xff]   ;;  %v6306_v23 = vld [vmem:[#allocation5 + $0x140] ss:$12 sps:$4 sm:$0xff]  }
  0x8f   : > { %4986 = vmatpush3.bf16.msra.mxu1 %v6289_v10  ;;  %v6304_v22 = vld [vmem:[#allocation5 + $0x68] ss:$12 sps:$4 sm:$0xff]   ;;  %v6305_v24 = vld [vmem:[#allocation5 + $0x90] ss:$12 sps:$4 sm:$0xff]   ;;  %v6307_v25 = vld [vmem:[#allocation5 + $0xac] ss:$12 sps:$4 sm:$0xff]  }
  0x90   : > { %4987 = vmatprep.subr.bf16.mxu1 %v6291_v11  ;;  %v6309_v26 = vld [vmem:[#allocation5 + $0x80] ss:$12 sps:$4 sm:$0xff]   ;;  %v6311_v27 = vld [vmem:[#allocation5 + $0x158] ss:$12 sps:$4 sm:$0xff]   ;;  %v6310_v28 = vld [vmem:[#allocation5 + $0xa8] ss:$12 sps:$4 sm:$0xff]  }
  0x91   : > { %1325 = vmatpush1.bf16.msra.mxu0 %v6285_v7  ;;  %v6312_v29 = vld [vmem:[#allocation5 + $0xc4] ss:$12 sps:$4 sm:$0xff]   ;;  %v344_v32 = vld [vmem:[%s7670_s12 + $0x8] sm:$0xff]  ;;  %v6321_v44 = vld [vmem:[#allocation5 + $0xf4] ss:$12 sps:$4 sm:$0xff]   ;;  %s4978_s29 = sshll.u32 %s7494_s28, 4 }
  0x92   : > { %1326 = vmatprep.subr.bf16.mxu0 %v6287_v9  ;;  %v6314_v30 = vld [vmem:[#allocation5 + $0x98] ss:$12 sps:$4 sm:$0xff]   ;;  %v6316_v31 = vld [vmem:[#allocation5 + $0x170] ss:$12 sps:$4 sm:$0xff]   ;;  %v348_v33 = vld [vmem:[%s7670_s12 + $0x28] sm:$0xff]  ;;  %6523 = vtanh.f32 %v344_v32  ;;  %s340_s11 = scalar_lea.vmem [#allocation10], %s7666_s21  ;;  %s8991_s16 = scalar_lea.hbm %s9042_s7, %s4978_s29 }
  0x93   : > { %4988 = vmatpush3.bf16.msra.mxu1 %v6294_v14  ;;  %v343_v34 = vld [vmem:[%s7670_s12] sm:$0xff]  ;;  %v6319_v37 = vld [vmem:[#allocation5 + $0xb0] ss:$12 sps:$4 sm:$0xff]   ;;  %6525 = vtanh.f32 %v348_v33  ;;  %v352_v39 = vld [vmem:[%s7670_s12 + $0x48] sm:$0xff]  ;;  %s4675_s17 = sshll.u32 %s340_s11, 4  ;;  %s4663_s23 = scalar_lea.sflag [#allocation4], %s7666_s21  ;;  %s8993_s17 = int_to_ptr.vmem [resolvable:$true] %s4675_s17 }
  0x94   : > { %4989 = vmatprep.subr.bf16.mxu1 %v6296_v15  ;;  %v347_v35 = vld [vmem:[%s7670_s12 + $0x20] sm:$0xff]  ;;  %v6317_v38 = vld [vmem:[#allocation5 + $0xdc] ss:$12 sps:$4 sm:$0xff]   ;;  %6527 = vtanh.f32 %v343_v34  ;;  %v6324_v48 = vld [vmem:[#allocation5 + $0x10c] ss:$12 sps:$4 sm:$0xff]   ;;  %s7432_s28 = smov [#allocation10]  }
  0x95   : > { %1327 = vmatpush1.bf16.msra.mxu0 %v6290_v12  ;;  %v6315_v36 = vld [vmem:[#allocation5 + $0xc0] ss:$12 sps:$4 sm:$0xff]   ;;  %6529 = vtanh.f32 %v347_v35  ;;  %v6320_v43 = vld [vmem:[#allocation5 + $0xd8] ss:$12 sps:$4 sm:$0xff]   ;;  %v6323_v47 = vld [vmem:[#allocation5 + $0xf0] ss:$12 sps:$4 sm:$0xff]  }
  0x96   : > { %1328 = vmatprep.subr.bf16.mxu0 %v6292_v13  ;;  %v356_v40 = vld [vmem:[%s7670_s12 + $0x68] sm:$0xff]  ;;  %6531 = vtanh.f32 %v352_v39  ;;  %v351_v41 = vld [vmem:[%s7670_s12 + $0x40] sm:$0xff]  ;;  %s7349_s30 = sshll.u32 %s7432_s28, 4  ;;  %s7350_s30 = int_to_ptr.vmem [resolvable:$false] %s7349_s30 }
  0x97   : > { %4990 = vmatpush3.bf16.msra.mxu1 %v6299_v18  ;;  %v355_v42 = vld [vmem:[%s7670_s12 + $0x60] sm:$0xff]  ;;  %6533 = vtanh.f32 %v356_v40  ;;  %v360_v45 = vld [vmem:[%s7670_s12 + $0x88] sm:$0xff]  ;;  %s7351_s9 = scalar_lea.vmem %s7350_s30, 32  ;;  %p7352_p12 = scmp.lt.s32.totalorder %s8993_s17, %s7350_s30 }
  0x98   : > { %4991 = vmatprep.subr.bf16.mxu1 %v6301_v19  ;;  %6535 = vtanh.f32 %v351_v41  ;;  %v364_v46 = vld [vmem:[%s7670_s12 + $0xa8] sm:$0xff]  ;;  %v359_v50 = vld [vmem:[%s7670_s12 + $0x80] sm:$0xff] }
  0x99   : > { %1329 = vmatpush1.bf16.msra.mxu0 %v6295_v16  ;;  %6537 = vtanh.f32 %v355_v42  ;;  %v363_v52 = vld [vmem:[%s7670_s12 + $0xa0] sm:$0xff]  ;;  %v368_v55 = vld [vmem:[%s7670_s12 + $0xc8] sm:$0xff] }
  0x9a   : > { %1330 = vmatprep.subr.bf16.mxu0 %v6297_v17  ;;  %6539 = vtanh.f32 %v360_v45  ;;  %v6326_v57 = vld [vmem:[#allocation5 + $0x108] ss:$12 sps:$4 sm:$0xff]   ;;  %v6327_v61 = vld [vmem:[#allocation5 + $0x124] ss:$12 sps:$4 sm:$0xff]   ;;  %v6329_v2 = vld [vmem:[#allocation5 + $0x120] ss:$12 sps:$4 sm:$0xff]  }
  0x9b   : > { %4992 = vmatpush3.bf16.msra.mxu1 %v6304_v22  ;;  %6541 = vtanh.f32 %v364_v46  ;;  %v372_v58 = vld [vmem:[%s7670_s12 + $0xe8] sm:$0xff]  ;;  %v367_v5 = vld [vmem:[%s7670_s12 + $0xc0] sm:$0xff]  ;;  %v6335_v17 = vld [vmem:[#allocation5 + $0x150] ss:$12 sps:$4 sm:$0xff]  }
  0x9c   : > { %4993 = vmatprep.subr.bf16.mxu1 %v6306_v23  ;;  %v6524_v49 = vpop.eup %6523  ;;  %6543 = vtanh.f32 %v359_v50  ;;  %v6330_v3 = vld [vmem:[#allocation5 + $0x13c] ss:$12 sps:$4 sm:$0xff]   ;;  %v371_v7 = vld [vmem:[%s7670_s12 + $0xe0] sm:$0xff]  ;;  %v6336_v18 = vld [vmem:[#allocation5 + $0x16c] ss:$12 sps:$4 sm:$0xff]  }
  0x9d   : > { %1331 = vmatpush1.bf16.msra.mxu0 %v6300_v20  ;;  %v6526_v51 = vpop.eup %6525  ;;  %6545 = vtanh.f32 %v363_v52  ;;  %v376_v9 = vld [vmem:[%s7670_s12 + $0x108] sm:$0xff]  ;;  %v6332_v10 = vld [vmem:[#allocation5 + $0x138] ss:$12 sps:$4 sm:$0xff]   ;;  %v6333_v13 = vld [vmem:[#allocation5 + $0x154] ss:$12 sps:$4 sm:$0xff]  }
  0x9e   : > { %1332 = vmatprep.subr.bf16.mxu0 %v6302_v21  ;;  %v6528_v53 = vpop.eup %6527  ;;  %v600_v54 = vpack.c.bf16 %v6526_v51, %v6524_v49  ;;  %6547 = vtanh.f32 %v368_v55  ;;  %v380_v12 = vld [vmem:[%s7670_s12 + $0x128] sm:$0xff]  ;;  %v375_v20 = vld [vmem:[%s7670_s12 + $0x100] sm:$0xff] }
  0x9f   : > { %4994 = vmatpush3.bf16.msra.mxu1 %v6309_v26  ;;  %v6530_v56 = vpop.eup %6529  ;;  %6549 = vtanh.f32 %v372_v58  ;;  %v379_v21 = vld [vmem:[%s7670_s12 + $0x120] sm:$0xff]  ;;  %v384_v23 = vld [vmem:[%s7670_s12 + $0x148] sm:$0xff] }
  0xa0   : > { %4995 = vmatprep.subr.bf16.mxu1 %v6311_v27  ;;  %v6532_v59 = vpop.eup %6531  ;;  %1738 = vmatprep.mubr.bf16.mxu1 %v600_v54  ;;  %v7698_v60 = vpack.c.bf16 %v6530_v56, %v6528_v53  ;;  %6551 = vtanh.f32 %v367_v5  ;;  %v388_v26 = vld [vmem:[%s7670_s12 + $0x168] sm:$0xff]  ;;  %v6341_v27 = vld [vmem:[#allocation5 + $0x184] ss:$12 sps:$4 sm:$0xff]   ;;  %v6347_v42 = vld [vmem:[#allocation5 + $0x1b4] ss:$12 sps:$4 sm:$0xff]  }
  0xa1   : > { %1333 = vmatpush1.bf16.msra.mxu0 %v6305_v24  ;;  %v6534_v62 = vpop.eup %6533  ;;  %1352 = vmatprep.mubr.bf16.mxu0 %v600_v54  ;;  %6553 = vtanh.f32 %v371_v7  ;;  %v6338_v24 = vld [vmem:[#allocation5 + $0x168] ss:$12 sps:$4 sm:$0xff]   ;;  %v383_v34 = vld [vmem:[%s7670_s12 + $0x140] sm:$0xff]  ;;  %v6350_v52 = vld [vmem:[#allocation5 + $0x1cc] ss:$12 sps:$4 sm:$0xff]  }
  0xa2   : > { %1334 = vmatprep.subr.bf16.mxu0 %v6307_v25  ;;  %v6536_v63 = vpop.eup %6535  ;;  %v7701_v0 = vpack.c.bf16 %v6534_v62, %v6532_v59  ;;  %6555 = vtanh.f32 %v376_v9  ;;  %v6344_v32 = vld [vmem:[#allocation5 + $0x19c] ss:$12 sps:$4 sm:$0xff]   ;;  %v6342_v35 = vld [vmem:[#allocation5 + $0x198] ss:$12 sps:$4 sm:$0xff]   ;;  %v6372_v53 = vld [vmem:[#allocation5 + $0x1a0] ss:$12 sps:$4 sm:$0xff]  }
  0xa3   : > { %4996 = vmatpush3.bf16.msra.mxu1 %v6314_v30  ;;  %v6538_v1 = vpop.eup %6537  ;;  %6557 = vtanh.f32 %v380_v12  ;;  %v396_v39 = vld [vmem:[%s7670_s12 + $0x1a8] sm:$0xff]  ;;  %v391_v49 = vld [vmem:[%s7670_s12 + $0x180] sm:$0xff] }
  0xa4   : > { %4997 = vmatprep.subr.bf16.mxu1 %v6316_v31  ;;  %v6540_v4 = vpop.eup %6539  ;;  %v7706_v8 = vpack.c.bf16 %v6538_v1, %v6536_v63  ;;  %6559 = vtanh.f32 %v375_v20  ;;  %v6339_v31 = vld [vmem:[#allocation5 + $0x180] ss:$12 sps:$4 sm:$0xff]   ;;  %v6366_v41 = vld [vmem:[#allocation5 + $0x248] ss:$12 sps:$4 sm:$0xff]   ;;  %v6378_v63 = vld [vmem:[#allocation5 + $0x290] ss:$12 sps:$4 sm:$0xff]  }
  0xa5   : > { %1335 = vmatpush1.bf16.msra.mxu0 %v6310_v28  ;;  %v6542_v6 = vpop.eup %6541  ;;  %6561 = vtanh.f32 %v379_v21  ;;  %v6370_v45 = vld [vmem:[#allocation5 + $0x188] ss:$12 sps:$4 sm:$0xff]   ;;  %v395_v51 = vld [vmem:[%s7670_s12 + $0x1a0] sm:$0xff] }
  0xa6   : > { %1336 = vmatprep.subr.bf16.mxu0 %v6312_v29  ;;  %v7709_v11 = vpack.c.bf16 %v6542_v6, %v6540_v4  ;;  %v6544_v14 = vpop.eup %6543  ;;  %6563 = vtanh.f32 %v384_v23  ;;  %v6348_v54 = vld [vmem:[#allocation5 + $0x1c8] ss:$12 sps:$4 sm:$0xff]   ;;  %v399_v1 = vld [vmem:[%s7670_s12 + $0x1c0] sm:$0xff] }
  0xa7   : > { %4998 = vmatpush3.bf16.msra.mxu1 %v6319_v37  ;;  %v6546_v15 = vpop.eup %6545  ;;  %6565 = vtanh.f32 %v388_v26  ;;  %v400_v55 = vld [vmem:[%s7670_s12 + $0x1c8] sm:$0xff]  ;;  %v6354_v12 = vld [vmem:[#allocation5 + $0x1f8] ss:$12 sps:$4 sm:$0xff]  }
  0xa8   : > { %v6548_v16 = vpop.eup %6547  ;;  %v7716_v22 = vpack.c.bf16 %v6546_v15, %v6544_v14  ;;  %6567 = vtanh.f32 %v383_v34  ;;  %5095 = vmatprep.subr.bf16.mxu1 %v6366_v41  ;;  %v404_v59 = vld [vmem:[%s7670_s12 + $0x1e8] sm:$0xff]  ;;  %v6359_v14 = vld [vmem:[#allocation5 + $0x214] ss:$12 sps:$4 sm:$0xff]  }
  0xa9   : > { %1337 = vmatpush1.bf16.msra.mxu0 %v6315_v36  ;;  %v6550_v19 = vpop.eup %6549  ;;  %v387_v36 = vld [vmem:[%s7670_s12 + $0x160] sm:$0xff]  ;;  %v6356_v5 = vld [vmem:[#allocation5 + $0x1fc] ss:$12 sps:$4 sm:$0xff]  }
  0xaa   : > { %1338 = vmatprep.subr.bf16.mxu0 %v6317_v38  ;;  %1739 = vmatmul.mubr.bf16.vlgmr.msra.gmra.mrb[0].mxu1 %v7698_v60  ;;  %v7719_v25 = vpack.c.bf16 %v6550_v19, %v6548_v16  ;;  %v6552_v28 = vpop.eup %6551  ;;  %v392_v38 = vld [vmem:[%s7670_s12 + $0x188] sm:$0xff]  ;;  %6569 = vtanh.f32 %v387_v36  ;;  %v407_v19 = vld [vmem:[%s7670_s12 + $0x200] sm:$0xff] }
  0xab   : > { %1746 = vmatprep.mubr.bf16.mxu1 %v7701_v0  ;;  %v6554_v29 = vpop.eup %6553  ;;  %6571 = vtanh.f32 %v392_v38  ;;  %5096 = vmatpush3.bf16.msra.mxu1 %v6370_v45  ;;  %v6351_v4 = vld [vmem:[#allocation5 + $0x1e0] ss:$12 sps:$4 sm:$0xff]   ;;  %v6384_v15 = vld [vmem:[#allocation5 + $0x1e8] ss:$12 sps:$4 sm:$0xff]  }
  0xac   : > { %v6556_v30 = vpop.eup %6555  ;;  %v7726_v37 = vpack.c.bf16 %v6554_v29, %v6552_v28  ;;  %6573 = vtanh.f32 %v396_v39  ;;  %v408_v7 = vld [vmem:[%s7670_s12 + $0x208] sm:$0xff]  ;;  %v411_v21 = vld [vmem:[%s7670_s12 + $0x220] sm:$0xff] }
  0xad   : > { %1339 = vmatpush1.bf16.msra.mxu0 %v6320_v43  ;;  %v6558_v33 = vpop.eup %6557  ;;  %6575 = vtanh.f32 %v391_v49  ;;  %v412_v9 = vld [vmem:[%s7670_s12 + $0x228] sm:$0xff]  ;;  %v415_v38 = vld [vmem:[%s7670_s12 + $0x240] sm:$0xff] }
  0xae   : > { %1340 = vmatprep.subr.bf16.mxu0 %v6321_v44  ;;  %v7731_v40 = vpack.c.bf16 %v6558_v33, %v6556_v30  ;;  %v6560_v43 = vpop.eup %6559  ;;  %v6345_v44 = vld [vmem:[#allocation5 + $0x1b0] ss:$12 sps:$4 sm:$0xff]   ;;  %6577 = vtanh.f32 %v395_v51  ;;  %v6386_v26 = vld [vmem:[#allocation5 + $0x200] ss:$12 sps:$4 sm:$0xff]   ;;  %v6391_v33 = vld [vmem:[#allocation5 + $0x218] ss:$12 sps:$4 sm:$0xff]  }
  0xaf   : > { %v6562_v46 = vpop.eup %6561  ;;  %6579 = vtanh.f32 %v400_v55  ;;  %v420_v29 = vld [vmem:[%s7670_s12 + $0x268] sm:$0xff]  ;;  %v6376_v49 = vld [vmem:[#allocation5 + $0x274] ss:$12 sps:$4 sm:$0xff]  }
  0xb0   : > { %v7739_v56 = vpack.c.bf16 %v6562_v46, %v6560_v43  ;;  %6581 = vtanh.f32 %v404_v59  ;;  %v6363_v39 = vld [vmem:[#allocation5 + $0x240] ss:$12 sps:$4 sm:$0xff]  }
  0xb1   : > { %1341 = vmatpush1.bf16.msra.mxu0 %v6323_v47  ;;  %v6371_v47 = vld [vmem:[#allocation5 + $0x260] ss:$12 sps:$4 sm:$0xff]   ;;  %6583 = vtanh.f32 %v399_v1 }
  0xb2   : > { %1342 = vmatprep.subr.bf16.mxu0 %v6324_v48  ;;  %1747 = vmatmul.mubr.bf16.gmra.mrb[4].mxu1 %v7706_v8  ;;  %v6564_v48 = vpop.eup %6563  ;;  %v419_v43 = vld [vmem:[%s7670_s12 + $0x260] sm:$0xff]  ;;  %v424_v45 = vld [vmem:[%s7670_s12 + $0x288] sm:$0xff] }
  0xb3   : > { %1754 = vmatprep.mubr.bf16.mxu1 %v7709_v11  ;;  %v6566_v50 = vpop.eup %6565  ;;  %5097 = vmatprep.subr.bf16.mxu1 %v6371_v47  ;;  %v428_v47 = vld [vmem:[%s7670_s12 + $0x2a8] sm:$0xff]  ;;  %v423_v55 = vld [vmem:[%s7670_s12 + $0x280] sm:$0xff] }
  0xb4   : > { %v7742_v58 = vpack.c.bf16 %v6566_v50, %v6564_v48  ;;  %5098 = vmatpush3.bf16.msra.mxu1 %v6372_v53  ;;  %v6568_v62 = vpop.eup %6567  ;;  %v6367_v48 = vld [vmem:[#allocation5 + $0x258] ss:$12 sps:$4 sm:$0xff]   ;;  %v6374_v53 = vld [vmem:[#allocation5 + $0x270] ss:$12 sps:$4 sm:$0xff]   ;;  %v432_v59 = vld [vmem:[%s7670_s12 + $0x2c8] sm:$0xff] }
  0xb5   : > { %1343 = vmatpush1.bf16.msra.mxu0 %v6326_v57  ;;  %v6373_v57 = vld [vmem:[#allocation5 + $0x278] ss:$12 sps:$4 sm:$0xff]  }
  0xb6   : > { %1344 = vmatprep.subr.bf16.mxu0 %v6327_v61  ;;  %v6377_v61 = vld [vmem:[#allocation5 + $0x1b8] ss:$12 sps:$4 sm:$0xff]   ;;  %5099 = vmatprep.subr.bf16.mxu1 %v6373_v57 }
  0xb7   : > { %v427_v57 = vld [vmem:[%s7670_s12 + $0x2a0] sm:$0xff] }
  0xb8   : > { %5100 = vmatpush3.bf16.msra.mxu1 %v6377_v61  ;;  %v436_v61 = vld [vmem:[%s7670_s12 + $0x2e8] sm:$0xff] }
  0xb9   : > { %1345 = vmatpush1.bf16.msra.mxu0 %v6329_v2  ;;  %5101 = vmatprep.subr.bf16.mxu1 %v6378_v63  ;;  %v6390_v63 = vld [vmem:[#allocation5 + $0x2a4] ss:$12 sps:$4 sm:$0xff]  }
  0xba   : > { %1346 = vmatprep.subr.bf16.mxu0 %v6330_v3  ;;  %1755 = vmatmul.mubr.bf16.gmra.mrb[8].mxu1 %v7716_v22  ;;  %v403_v3 = vld [vmem:[%s7670_s12 + $0x1e0] sm:$0xff] }
  0xbb   : > { %1762 = vmatprep.mubr.bf16.mxu1 %v7719_v25  ;;  %6585 = vtanh.f32 %v403_v3 }
  0xbc   : > { %6587 = vtanh.f32 %v408_v7  ;;  %v440_v7 = vld [vmem:[%s7670_s12 + $0x308] sm:$0xff] }
  0xbd   : > { %1347 = vmatpush1.bf16.msra.mxu0 %v6332_v10  ;;  %v6380_v10 = vld [vmem:[#allocation5 + $0x2a8] ss:$12 sps:$4 sm:$0xff]   ;;  %6589 = vtanh.f32 %v412_v9 }
  0xbe   : > { %1348 = vmatprep.subr.bf16.mxu0 %v6333_v13  ;;  %6591 = vtanh.f32 %v407_v19  ;;  %v444_v9 = vld [vmem:[%s7670_s12 + $0x328] sm:$0xff]  ;;  %v6397_v19 = vld [vmem:[#allocation5 + $0x2d0] ss:$12 sps:$4 sm:$0xff]  }
  0xbf   : > { %6593 = vtanh.f32 %v411_v21  ;;  %v448_v21 = vld [vmem:[%s7670_s12 + $0x348] sm:$0xff] }
  0xc1   : > { %1349 = vmatpush1.bf16.msra.mxu0 %v6335_v17  ;;  %v6385_v17 = vld [vmem:[#allocation5 + $0x2c0] ss:$12 sps:$4 sm:$0xff]  }
  0xc2   : > { %1350 = vmatprep.subr.bf16.mxu0 %v6336_v18  ;;  %1763 = vmatmul.mubr.bf16.gmra.mrb[12].mxu1 %v7726_v37 }
  0xc3   : > { %1770 = vmatprep.mubr.bf16.mxu1 %v7731_v40 }
  0xc5   : > { %1351 = vmatpush1.bf16.msra.mxu0 %v6338_v24  ;;  %v416_v24 = vld [vmem:[%s7670_s12 + $0x248] sm:$0xff] }
  0xc6   : > { %1513 = vmatprep.subr.bf16.mxu0 %v6341_v27  ;;  %v6387_v27 = vld [vmem:[#allocation5 + $0x2d8] ss:$12 sps:$4 sm:$0xff]   ;;  %6595 = vtanh.f32 %v416_v24  ;;  %v6400_v24 = vld [vmem:[#allocation5 + $0x2e8] ss:$12 sps:$4 sm:$0xff]  }
  0xc7   : > { %6597 = vtanh.f32 %v420_v29 }
  0xc8   : > { %1353 = vmatmul.mubr.bf16.vlgmr.msra.gmra.mrb[0].mxu0 %v7698_v60  ;;  %v6353_v60 = vld [vmem:[#allocation5 + $0x1e4] ss:$12 sps:$4 sm:$0xff]   ;;  %6599 = vtanh.f32 %v415_v38 }
  0xc9   : > { %1514 = vmatpush1.bf16.msra.mxu0 %v6339_v31  ;;  %1362 = vmatprep.mubr.bf16.mxu0 %v7701_v0  ;;  %v6570_v0 = vpop.eup %6569  ;;  %v6360_v31 = vld [vmem:[#allocation5 + $0x228] ss:$12 sps:$4 sm:$0xff]   ;;  %6601 = vtanh.f32 %v419_v43 }
  0xca   : > { %1515 = vmatprep.subr.bf16.mxu0 %v6344_v32  ;;  %1771 = vmatmul.mubr.bf16.gmra.mrb[16].mxu1 %v7739_v56  ;;  %v6572_v2 = vpop.eup %6571  ;;  %v6365_v32 = vld [vmem:[#allocation5 + $0x244] ss:$12 sps:$4 sm:$0xff]   ;;  %6603 = vtanh.f32 %v424_v45  ;;  %v464_v43 = vld [vmem:[%s7670_s12 + $0x3c8] sm:$0xff] }
  0xcb   : > { %1778 = vmatprep.mubr.bf16.mxu1 %v7742_v58  ;;  %v6574_v6 = vpop.eup %6573  ;;  %6605 = vtanh.f32 %v428_v47 }
  0xcc   : > { %v7755_v13 = vpack.c.bf16 %v6574_v6, %v6572_v2  ;;  %v6576_v16 = vpop.eup %6575  ;;  %6607 = vtanh.f32 %v423_v55  ;;  %v431_v2 = vld [vmem:[%s7670_s12 + $0x2c0] sm:$0xff] }
  0xcd   : > { %1516 = vmatpush1.bf16.msra.mxu0 %v6342_v35  ;;  %v6578_v18 = vpop.eup %6577  ;;  %v6392_v35 = vld [vmem:[#allocation5 + $0x2f0] ss:$12 sps:$4 sm:$0xff]   ;;  %6609 = vtanh.f32 %v427_v57 }
  0xce   : > { %1517 = vmatprep.subr.bf16.mxu0 %v6347_v42  ;;  %v6580_v20 = vpop.eup %6579  ;;  %v7763_v28 = vpack.c.bf16 %v6578_v18, %v6576_v16  ;;  %v6393_v42 = vld [vmem:[#allocation5 + $0x230] ss:$12 sps:$4 sm:$0xff]   ;;  %6611 = vtanh.f32 %v432_v59  ;;  %v439_v16 = vld [vmem:[%s7670_s12 + $0x300] sm:$0xff] }
  0xcf   : > { %v6582_v23 = vpop.eup %6581  ;;  %6613 = vtanh.f32 %v436_v61  ;;  %v443_v18 = vld [vmem:[%s7670_s12 + $0x320] sm:$0xff] }
  0xd0   : > { %1363 = vmatmul.mubr.bf16.gmra.mrb[4].mxu0 %v7706_v8  ;;  %v6379_v8 = vld [vmem:[#allocation5 + $0x1d0] ss:$12 sps:$4 sm:$0xff]   ;;  %v7767_v30 = vpack.c.bf16 %v6582_v23, %v6580_v20  ;;  %v6584_v34 = vpop.eup %6583  ;;  %6615 = vtanh.f32 %v431_v2  ;;  %v452_v23 = vld [vmem:[%s7670_s12 + $0x368] sm:$0xff] }
  0xd1   : > { %1372 = vmatprep.mubr.bf16.mxu0 %v7709_v11  ;;  %1518 = vmatpush1.bf16.msra.mxu0 %v6345_v44  ;;  %v7752_v11 = vpack.c.bf16 %v6570_v0, %v6568_v62  ;;  %v6586_v36 = vpop.eup %6585  ;;  %v6381_v62 = vld [vmem:[#allocation5 + $0x288] ss:$12 sps:$4 sm:$0xff]  }
  0xd2   : > { %1519 = vmatprep.subr.bf16.mxu0 %v6350_v52  ;;  %5102 = vmatpush3.bf16.msra.mxu1 %v6379_v8  ;;  %v7774_v44 = vpack.c.bf16 %v6586_v36, %v6584_v34  ;;  %v6396_v8 = vld [vmem:[#allocation5 + $0x2bc] ss:$12 sps:$4 sm:$0xff]  }
  0xd3   : > { %5103 = vmatprep.subr.bf16.mxu1 %v6380_v10  ;;  %1779 = vmatmul.mubr.bf16.gmra.mrb[20].mxu1 %v7752_v11  ;;  %v6394_v10 = vld [vmem:[#allocation5 + $0x2b8] ss:$12 sps:$4 sm:$0xff]   ;;  %v460_v34 = vld [vmem:[%s7670_s12 + $0x3a8] sm:$0xff] }
  0xd4   : > { %1786 = vmatprep.mubr.bf16.mxu1 %v7755_v13 }
  0xd5   : > { %1520 = vmatpush1.bf16.msra.mxu0 %v6348_v54 }
  0xd6   : > { %1521 = vmatprep.subr.bf16.mxu0 %v6353_v60  ;;  %5104 = vmatpush3.bf16.msra.mxu1 %v6384_v15 }
  0xd7   : > { %5105 = vmatprep.subr.bf16.mxu1 %v6385_v17 }
  0xd8   : > { %1373 = vmatmul.mubr.bf16.gmra.mrb[8].mxu0 %v7716_v22  ;;  %v6357_v22 = vld [vmem:[#allocation5 + $0x210] ss:$12 sps:$4 sm:$0xff]  }
  0xd9   : > { %1382 = vmatprep.mubr.bf16.mxu0 %v7719_v25  ;;  %1522 = vmatpush1.bf16.msra.mxu0 %v6351_v4  ;;  %v6362_v25 = vld [vmem:[#allocation5 + $0x22c] ss:$12 sps:$4 sm:$0xff]   ;;  %v435_v4 = vld [vmem:[%s7670_s12 + $0x2e0] sm:$0xff] }
  0xda   : > { %1523 = vmatprep.subr.bf16.mxu0 %v6356_v5  ;;  %5106 = vmatpush3.bf16.msra.mxu1 %v6386_v26  ;;  %v6388_v5 = vld [vmem:[#allocation5 + $0x2a0] ss:$12 sps:$4 sm:$0xff]   ;;  %6617 = vtanh.f32 %v435_v4 }
  0xdb   : > { %5107 = vmatprep.subr.bf16.mxu1 %v6387_v27  ;;  %1787 = vmatmul.mubr.bf16.gmra.mrb[24].mxu1 %v7763_v28 }
  0xdc   : > { %1794 = vmatprep.mubr.bf16.mxu1 %v7767_v30 }
  0xdd   : > { %1524 = vmatpush1.bf16.msra.mxu0 %v6354_v12  ;;  %v6399_v12 = vld [vmem:[#allocation5 + $0x2d4] ss:$12 sps:$4 sm:$0xff]  }
  0xde   : > { %1525 = vmatprep.subr.bf16.mxu0 %v6359_v14  ;;  %5108 = vmatpush3.bf16.msra.mxu1 %v6391_v33  ;;  %v456_v33 = vld [vmem:[%s7670_s12 + $0x388] sm:$0xff] }
  0xdf   : > { %5109 = vmatprep.subr.bf16.mxu1 %v6392_v35 }
  0xe0   : > { %1383 = vmatmul.mubr.bf16.gmra.mrb[12].mxu0 %v7726_v37  ;;  %v6588_v37 = vpop.eup %6587  ;;  %6619 = vtanh.f32 %v440_v7  ;;  %v357_v7 = vld [vmem:[%s7670_s12 + $0x70] sm:$0xff] }
  0xe1   : > { %1392 = vmatprep.mubr.bf16.mxu0 %v7731_v40  ;;  %1526 = vmatpush1.bf16.msra.mxu0 %v6357_v22  ;;  %v6369_v40 = vld [vmem:[#allocation5 + $0x25c] ss:$12 sps:$4 sm:$0xff]   ;;  %v6590_v41 = vpop.eup %6589  ;;  %6621 = vtanh.f32 %v444_v9  ;;  %v6402_v22 = vld [vmem:[#allocation5 + $0x2ec] ss:$12 sps:$4 sm:$0xff]  }
  0xe2   : > { %1527 = vmatprep.subr.bf16.mxu0 %v6362_v25  ;;  %v7778_v46 = vpack.c.bf16 %v6590_v41, %v6588_v37  ;;  %5110 = vmatpush3.bf16.msra.mxu1 %v6393_v42  ;;  %v6592_v50 = vpop.eup %6591  ;;  %6623 = vtanh.f32 %v439_v16  ;;  %v459_v42 = vld [vmem:[%s7670_s12 + $0x3a0] sm:$0xff]  ;;  %v362_v9 = vld [vmem:[%s7670_s12 + $0x98] sm:$0xff] }
  0xe3   : > { %v6594_v51 = vpop.eup %6593  ;;  %1795 = vmatmul.mubr.bf16.gmra.mrb[28].mxu1 %v7774_v44  ;;  %6625 = vtanh.f32 %v443_v18  ;;  %v361_v18 = vld [vmem:[%s7670_s12 + $0x90] sm:$0xff] }
  0xe4   : > { %v6596_v52 = vpop.eup %6595  ;;  %1802 = vmatprep.mubr.bf16.mxu1 %v7778_v46  ;;  %6627 = vtanh.f32 %v448_v21  ;;  %v370_v21 = vld [vmem:[%s7670_s12 + $0xd8] sm:$0xff] }
  0xe5   : > { %1528 = vmatpush1.bf16.msra.mxu0 %v6360_v31  ;;  %v6598_v54 = vpop.eup %6597  ;;  %6629 = vtanh.f32 %v452_v23  ;;  %v374_v23 = vld [vmem:[%s7670_s12 + $0xf8] sm:$0xff] }
  0xe6   : > { %1529 = vmatprep.subr.bf16.mxu0 %v6365_v32  ;;  %v7790_v60 = vpack.c.bf16 %v6598_v54, %v6596_v52  ;;  %v6600_v0 = vpop.eup %6599  ;;  %v451_v32 = vld [vmem:[%s7670_s12 + $0x360] sm:$0xff]  ;;  %v350_v54 = vld [vmem:[%s7670_s12 + $0x38] sm:$0xff] }
  0xe7   : > { %v6602_v1 = vpop.eup %6601  ;;  %v467_v52 = vld [vmem:[%s7670_s12 + $0x3e0] sm:$0xff] }
  0xe8   : > { %1393 = vmatmul.mubr.bf16.gmra.mrb[16].mxu0 %v7739_v56  ;;  %v6383_v56 = vld [vmem:[#allocation5 + $0x28c] ss:$12 sps:$4 sm:$0xff]   ;;  %v6604_v3 = vpop.eup %6603 }
  0xe9   : > { %1402 = vmatprep.mubr.bf16.mxu0 %v7742_v58  ;;  %1530 = vmatpush1.bf16.msra.mxu0 %v6363_v39  ;;  %v7786_v58 = vpack.c.bf16 %v6594_v51, %v6592_v50  ;;  %v6606_v6 = vpop.eup %6605  ;;  %v463_v50 = vld [vmem:[%s7670_s12 + $0x3c0] sm:$0xff] }
  0xea   : > { %1531 = vmatprep.subr.bf16.mxu0 %v6369_v40  ;;  %v6608_v14 = vpop.eup %6607  ;;  %v455_v40 = vld [vmem:[%s7670_s12 + $0x380] sm:$0xff] }
  0xeb   : > { %1803 = vmatmul.mubr.bf16.gmra.mrb[32].mxu1 %v7786_v58  ;;  %v6610_v15 = vpop.eup %6609 }
  0xec   : > { %1810 = vmatprep.mubr.bf16.mxu1 %v7790_v60  ;;  %v6612_v17 = vpop.eup %6611  ;;  %v639_v25 = vpack.c.bf16 %v6610_v15, %v6608_v14  ;;  %v6405_v15 = vld [vmem:[#allocation7 + $0x4] ss:$12 sps:$4 sm:$0xff]  }
  0xed   : > { %1532 = vmatpush1.bf16.msra.mxu0 %v6367_v48  ;;  %v6614_v20 = vpop.eup %6613  ;;  %2669 = vmatprep.subr.bf16.mxu1 %v6405_v15 }
  0xee   : > { %1533 = vmatprep.subr.bf16.mxu0 %v6376_v49  ;;  %v644_v26 = vpack.c.bf16 %v6614_v20, %v6612_v17  ;;  %v6616_v27 = vpop.eup %6615 }
  0xf0   : > { %1403 = vmatmul.mubr.bf16.gmra.mrb[20].mxu0 %v7752_v11  ;;  %v7800_v11 = vpack.c.bf16 %v6602_v1, %v6600_v0  ;;  %v358_v0 = vld [vmem:[%s7670_s12 + $0x78] sm:$0xff] }
  0xf1   : > { %1412 = vmatprep.mubr.bf16.mxu0 %v7755_v13  ;;  %1534 = vmatpush1.bf16.msra.mxu0 %v6374_v53  ;;  %v7803_v13 = vpack.c.bf16 %v6606_v6, %v6604_v3  ;;  %v346_v53 = vld [vmem:[%s7670_s12 + $0x18] sm:$0xff] }
  0xf2   : > { %1535 = vmatprep.subr.bf16.mxu0 %v6383_v56 }
  0xf3   : > { %1811 = vmatmul.mubr.bf16.gmra.mrb[36].mxu1 %v7800_v11 }
  0xf4   : > { %1818 = vmatprep.mubr.bf16.mxu1 %v7803_v13 }
  0xf5   : > { %1536 = vmatpush1.bf16.msra.mxu0 %v6381_v62  ;;  %v349_v62 = vld [vmem:[%s7670_s12 + $0x30] sm:$0xff] }
  0xf6   : > { %1537 = vmatprep.subr.bf16.mxu0 %v6390_v63  ;;  %v354_v63 = vld [vmem:[%s7670_s12 + $0x58] sm:$0xff] }
  0xf8   : > { %1413 = vmatmul.mubr.bf16.gmra.mrb[24].mxu0 %v7763_v28  ;;  %v6618_v28 = vpop.eup %6617 }
  0xf9   : > { %1422 = vmatprep.mubr.bf16.mxu0 %v7767_v30  ;;  %1538 = vmatpush1.bf16.msra.mxu0 %v6388_v5  ;;  %v6620_v29 = vpop.eup %6619  ;;  %v447_v30 = vld [vmem:[%s7670_s12 + $0x340] sm:$0xff]  ;;  %v643_v35 = vpack.c.bf16 %v6618_v28, %v6616_v27  ;;  %v353_v5 = vld [vmem:[%s7670_s12 + $0x50] sm:$0xff] }
  0xfa   : > { %1539 = vmatprep.subr.bf16.mxu0 %v6396_v8  ;;  %v6622_v31 = vpop.eup %6621  ;;  %6631 = vtanh.f32 %v447_v30 }
  0xfb   : > { %1819 = vmatmul.mubr.bf16.gmra.mrb[40].mxu1 %v639_v25  ;;  %v648_v36 = vpack.c.bf16 %v6622_v31, %v6620_v29  ;;  %6633 = vtanh.f32 %v451_v32  ;;  %v6624_v37 = vpop.eup %6623  ;;  %v6406_v29 = vld [vmem:[#allocation7 + $0x18] ss:$12 sps:$4 sm:$0xff]   ;;  %v369_v31 = vld [vmem:[%s7670_s12 + $0xd0] sm:$0xff] }
  0xfc   : > { %1826 = vmatprep.mubr.bf16.mxu1 %v644_v26  ;;  %6635 = vtanh.f32 %v456_v33  ;;  %v6626_v38 = vpop.eup %6625  ;;  %v373_v32 = vld [vmem:[%s7670_s12 + $0xf0] sm:$0xff] }
  0xfd   : > { %1540 = vmatpush1.bf16.msra.mxu0 %v6394_v10  ;;  %6637 = vtanh.f32 %v460_v34  ;;  %v6628_v39 = vpop.eup %6627  ;;  %v647_v45 = vpack.c.bf16 %v6626_v38, %v6624_v37  ;;  %v366_v10 = vld [vmem:[%s7670_s12 + $0xb8] sm:$0xff]  ;;  %v6411_v38 = vld [vmem:[#allocation7 + $0x34] ss:$12 sps:$4 sm:$0xff]  }
  0xfe   : > { %1541 = vmatprep.subr.bf16.mxu0 %v6399_v12  ;;  %v6630_v41 = vpop.eup %6629  ;;  %6639 = vtanh.f32 %v455_v40  ;;  %v378_v34 = vld [vmem:[%s7670_s12 + $0x118] sm:$0xff] }
  0xff   : > { %6641 = vtanh.f32 %v459_v42  ;;  %v6409_v37 = vld [vmem:[#allocation7 + $0x30] ss:$12 sps:$4 sm:$0xff]  }
 0x100   : > { %1423 = vmatmul.mubr.bf16.gmra.mrb[28].mxu0 %v7774_v44  ;;  %v468_v44 = vld [vmem:[%s7670_s12 + $0x3e8] sm:$0xff]  ;;  %6643 = vtanh.f32 %v464_v43  ;;  %v377_v43 = vld [vmem:[%s7670_s12 + $0x110] sm:$0xff] }
 0x101   : > { %1432 = vmatprep.mubr.bf16.mxu0 %v7778_v46  ;;  %1542 = vmatpush1.bf16.msra.mxu0 %v6397_v19  ;;  %v652_v46 = vpack.c.bf16 %v6630_v41, %v6628_v39  ;;  %6645 = vtanh.f32 %v468_v44  ;;  %v365_v19 = vld [vmem:[%s7670_s12 + $0xb0] sm:$0xff] }
 0x102   : > { %1543 = vmatprep.subr.bf16.mxu0 %v6402_v22  ;;  %6647 = vtanh.f32 %v463_v50  ;;  %v381_v44 = vld [vmem:[%s7670_s12 + $0x130] sm:$0xff]  ;;  %v390_v50 = vld [vmem:[%s7670_s12 + $0x178] sm:$0xff] }
 0x103   : > { %1827 = vmatmul.mubr.bf16.gmra.mrb[44].mxu1 %v643_v35  ;;  %6649 = vtanh.f32 %v467_v52  ;;  %v6418_v52 = vld [vmem:[#allocation7 + $0xc8] ss:$12 sps:$4 sm:$0xff]  }
 0x104   : > { %1834 = vmatprep.mubr.bf16.mxu1 %v648_v36  ;;  %v6632_v47 = vpop.eup %6631  ;;  %6651 = vtanh.f32 %v346_v53 }
 0x105   : > { %1544 = vmatpush1.bf16.msra.mxu0 %v6400_v24  ;;  %v6634_v48 = vpop.eup %6633  ;;  %6653 = vtanh.f32 %v350_v54  ;;  %v6403_v24 = vld [vmem:[#allocation7] ss:$12 sps:$4 sm:$0xff]  }
 0x106   : > { %v6636_v49 = vpop.eup %6635  ;;  %v651_v55 = vpack.c.bf16 %v6634_v48, %v6632_v47  ;;  %v6412_v47 = vld [vmem:[#allocation7 + $0x48] ss:$12 sps:$4 sm:$0xff]   ;;  %v6414_v48 = vld [vmem:[#allocation7 + $0x4c] ss:$12 sps:$4 sm:$0xff]   ;;  %5207 = vmatprep.subr.bf16.mxu0 %v6418_v52 }
 0x107   : > { %v6638_v51 = vpop.eup %6637  ;;  %v6415_v54 = vld [vmem:[#allocation7 + $0x60] ss:$12 sps:$4 sm:$0xff]   ;;  %v6434_v52 = vld [vmem:[#allocation7 + $0xf8] ss:$12 sps:$4 sm:$0xff]  }
 0x108   : > { %1433 = vmatmul.mubr.bf16.gmra.mrb[32].mxu0 %v7786_v58  ;;  %v656_v56 = vpack.c.bf16 %v6638_v51, %v6636_v49  ;;  %v6640_v57 = vpop.eup %6639  ;;  %v6417_v51 = vld [vmem:[#allocation7 + $0x64] ss:$12 sps:$4 sm:$0xff]  }
 0x109   : > { %1442 = vmatprep.mubr.bf16.mxu0 %v7790_v60  ;;  %v6642_v58 = vpop.eup %6641  ;;  %v345_v60 = vld [vmem:[%s7670_s12 + $0x10] sm:$0xff] }
 0x10a   : > { %v6644_v59 = vpop.eup %6643  ;;  %v655_v1 = vpack.c.bf16 %v6642_v58, %v6640_v57  ;;  %6655 = vtanh.f32 %v345_v60  ;;  %v6419_v58 = vld [vmem:[#allocation7 + $0x8] ss:$12 sps:$4 sm:$0xff]  }
 0x10b   : > { %1835 = vmatmul.mubr.bf16.gmra.mrb[48].mxu1 %v647_v45  ;;  %v6646_v61 = vpop.eup %6645  ;;  %6657 = vtanh.f32 %v349_v62  ;;  %v385_v60 = vld [vmem:[%s7670_s12 + $0x150] sm:$0xff]  ;;  %v6420_v62 = vld [vmem:[#allocation7 + $0x78] ss:$12 sps:$4 sm:$0xff]  }
 0x10c   : > { %1842 = vmatprep.mubr.bf16.mxu1 %v652_v46  ;;  %v660_v2 = vpack.c.bf16 %v6646_v61, %v6644_v59  ;;  %v6648_v3 = vpop.eup %6647  ;;  %6659 = vtanh.f32 %v354_v63  ;;  %v389_v61 = vld [vmem:[%s7670_s12 + $0x170] sm:$0xff] }
 0x10d   : > { %v6650_v4 = vpop.eup %6649  ;;  %6661 = vtanh.f32 %v358_v0  ;;  %v394_v0 = vld [vmem:[%s7670_s12 + $0x198] sm:$0xff] }
 0x10e   : > { %v6652_v6 = vpop.eup %6651  ;;  %6663 = vtanh.f32 %v353_v5  ;;  %v6423_v5 = vld [vmem:[#allocation7 + $0x90] ss:$12 sps:$4 sm:$0xff]  }
 0x10f   : > { %v6654_v8 = vpop.eup %6653  ;;  %6665 = vtanh.f32 %v357_v7  ;;  %v6427_v7 = vld [vmem:[#allocation7 + $0x20] ss:$12 sps:$4 sm:$0xff]  }
 0x110   : > { %1443 = vmatmul.mubr.bf16.gmra.mrb[36].mxu0 %v7800_v11  ;;  %v7838_v11 = vpack.c.bf16 %v6650_v4, %v6648_v3  ;;  %v7840_v12 = vpack.c.bf16 %v6654_v8, %v6652_v6  ;;  %6667 = vtanh.f32 %v362_v9  ;;  %v398_v3 = vld [vmem:[%s7670_s12 + $0x1b8] sm:$0xff]  ;;  %v6426_v6 = vld [vmem:[#allocation7 + $0xe0] ss:$12 sps:$4 sm:$0xff]  }
 0x111   : > { %1452 = vmatprep.mubr.bf16.mxu0 %v7803_v13  ;;  %6669 = vtanh.f32 %v366_v10 }
 0x112   : > { %6671 = vtanh.f32 %v361_v18  ;;  %v6428_v18 = vld [vmem:[#allocation7 + $0xa8] ss:$12 sps:$4 sm:$0xff]  }
 0x113   : > { %1843 = vmatmul.mubr.bf16.gmra.mrb[52].mxu1 %v651_v55  ;;  %6673 = vtanh.f32 %v365_v19  ;;  %v6430_v19 = vld [vmem:[#allocation7 + $0xac] ss:$12 sps:$4 sm:$0xff]  }
 0x114   : > { %1850 = vmatprep.mubr.bf16.mxu1 %v656_v56  ;;  %v6656_v13 = vpop.eup %6655  ;;  %6675 = vtanh.f32 %v370_v21 }
 0x115   : > { %v6658_v14 = vpop.eup %6657  ;;  %6677 = vtanh.f32 %v374_v23  ;;  %v401_v23 = vld [vmem:[%s7670_s12 + $0x1d0] sm:$0xff] }
 0x116   : > { %v6660_v16 = vpop.eup %6659  ;;  %v7846_v20 = vpack.c.bf16 %v6658_v14, %v6656_v13  ;;  %6679 = vtanh.f32 %v369_v31  ;;  %v402_v14 = vld [vmem:[%s7670_s12 + $0x1d8] sm:$0xff] }
 0x117   : > { %v6662_v17 = vpop.eup %6661  ;;  %6681 = vtanh.f32 %v373_v32 }
 0x118   : > { %1453 = vmatmul.mubr.bf16.gmra.mrb[40].mxu0 %v639_v25  ;;  %v7849_v22 = vpack.c.bf16 %v6662_v17, %v6660_v16  ;;  %v6408_v25 = vld [vmem:[#allocation7 + $0x1c] ss:$12 sps:$4 sm:$0xff]   ;;  %6683 = vtanh.f32 %v378_v34  ;;  %v413_v34 = vld [vmem:[%s7670_s12 + $0x230] sm:$0xff] }
 0x119   : > { %1462 = vmatprep.mubr.bf16.mxu0 %v644_v26  ;;  %v6664_v26 = vpop.eup %6663  ;;  %v406_v16 = vld [vmem:[%s7670_s12 + $0x1f8] sm:$0xff] }
 0x11a   : > { %v6666_v27 = vpop.eup %6665 }
 0x11b   : > { %1851 = vmatmul.mubr.bf16.gmra.mrb[56].mxu1 %v655_v1  ;;  %v6668_v28 = vpop.eup %6667  ;;  %v7856_v33 = vpack.c.bf16 %v6666_v27, %v6664_v26  ;;  %v410_v26 = vld [vmem:[%s7670_s12 + $0x218] sm:$0xff] }
 0x11c   : > { %1858 = vmatprep.mubr.bf16.mxu1 %v660_v2  ;;  %v6670_v30 = vpop.eup %6669 }
 0x11d   : > { %v6672_v39 = vpop.eup %6671 }
 0x11e   : > { %v6674_v40 = vpop.eup %6673 }
 0x11f   : > { %v6676_v41 = vpop.eup %6675 }
 0x120   : > { %1463 = vmatmul.mubr.bf16.gmra.mrb[44].mxu0 %v643_v35  ;;  %v7859_v35 = vpack.c.bf16 %v6670_v30, %v6668_v28  ;;  %v6678_v42 = vpop.eup %6677  ;;  %v414_v28 = vld [vmem:[%s7670_s12 + $0x238] sm:$0xff] }
 0x121   : > { %1472 = vmatprep.mubr.bf16.mxu0 %v648_v36  ;;  %v382_v36 = vld [vmem:[%s7670_s12 + $0x138] sm:$0xff]  ;;  %v7870_v49 = vpack.c.bf16 %v6678_v42, %v6676_v41  ;;  %v6680_v53 = vpop.eup %6679  ;;  %v6433_v41 = vld [vmem:[#allocation7 + $0xc4] ss:$12 sps:$4 sm:$0xff]  }
 0x122   : > { %6685 = vtanh.f32 %v382_v36  ;;  %v418_v36 = vld [vmem:[%s7670_s12 + $0x258] sm:$0xff] }
 0x123   : > { %1859 = vmatmul.mubr.bf16.gmra.mrb[60].mxu1 %v7838_v11  ;;  %6687 = vtanh.f32 %v377_v43 }
 0x124   : > { %1899 = vmatprep.mubr.bf16.mxu1 %v7840_v12  ;;  %6689 = vtanh.f32 %v381_v44 }
 0x128   : > { %1473 = vmatmul.mubr.bf16.gmra.mrb[48].mxu0 %v647_v45  ;;  %v7866_v45 = vpack.c.bf16 %v6674_v40, %v6672_v39  ;;  %v6431_v40 = vld [vmem:[#allocation7 + $0xc0] ss:$12 sps:$4 sm:$0xff]  }
 0x129   : > { %1482 = vmatprep.mubr.bf16.mxu0 %v652_v46  ;;  %v386_v46 = vld [vmem:[%s7670_s12 + $0x158] sm:$0xff] }
 0x12a   : > { %6691 = vtanh.f32 %v386_v46  ;;  %v421_v46 = vld [vmem:[%s7670_s12 + $0x270] sm:$0xff] }
 0x12b   : > { %1900 = vmatmul.mubr.bf16.vlgmr.msra.gmra.mrb[64].mxu1 %v7846_v20  ;;  %6693 = vtanh.f32 %v390_v50  ;;  %v430_v50 = vld [vmem:[%s7670_s12 + $0x2b8] sm:$0xff] }
 0x12c   : > { %1907 = vmatprep.mubr.bf16.mxu1 %v7849_v22  ;;  %2670 = vmatpush1.bf16.msra.mxu1 %v6403_v24  ;;  %6695 = vtanh.f32 %v385_v60  ;;  %v405_v24 = vld [vmem:[%s7670_s12 + $0x1f0] sm:$0xff]  ;;  %v434_v60 = vld [vmem:[%s7670_s12 + $0x2d8] sm:$0xff] }
 0x12d   : > { %2671 = vmatprep.subr.bf16.mxu1 %v6408_v25  ;;  %6697 = vtanh.f32 %v389_v61 }
 0x12e   : > { %6699 = vtanh.f32 %v394_v0  ;;  %v6436_v0 = vld [vmem:[#allocation7 + $0xd8] ss:$12 sps:$4 sm:$0xff]  }
 0x12f   : > { %6701 = vtanh.f32 %v398_v3 }
 0x130   : > { %1483 = vmatmul.mubr.bf16.gmra.mrb[52].mxu0 %v651_v55  ;;  %2672 = vmatpush1.bf16.msra.mxu1 %v6406_v29  ;;  %v6682_v55 = vpop.eup %6681 }
 0x131   : > { %1492 = vmatprep.mubr.bf16.mxu0 %v656_v56  ;;  %2673 = vmatprep.subr.bf16.mxu1 %v6411_v38  ;;  %v6422_v56 = vld [vmem:[#allocation7 + $0x7c] ss:$12 sps:$4 sm:$0xff]   ;;  %v6684_v57 = vpop.eup %6683  ;;  %v7878_v63 = vpack.c.bf16 %v6682_v55, %v6680_v53  ;;  %v6435_v53 = vld [vmem:[#allocation7 + $0x38] ss:$12 sps:$4 sm:$0xff]  }
 0x132   : > { %v6686_v59 = vpop.eup %6685  ;;  %v422_v38 = vld [vmem:[%s7670_s12 + $0x278] sm:$0xff] }
 0x133   : > { %1908 = vmatmul.mubr.bf16.gmra.mrb[68].mxu1 %v7856_v33  ;;  %v6688_v4 = vpop.eup %6687 }
 0x134   : > { %1915 = vmatprep.mubr.bf16.mxu1 %v7859_v35  ;;  %2674 = vmatpush1.bf16.msra.mxu1 %v6409_v37  ;;  %v6690_v8 = vpop.eup %6689 }
 0x135   : > { %2675 = vmatprep.subr.bf16.mxu1 %v6414_v48  ;;  %v6692_v9 = vpop.eup %6691  ;;  %v7890_v13 = vpack.c.bf16 %v6690_v8, %v6688_v4  ;;  %v426_v48 = vld [vmem:[%s7670_s12 + $0x298] sm:$0xff] }
 0x136   : > { %v6694_v10 = vpop.eup %6693  ;;  %v442_v8 = vld [vmem:[%s7670_s12 + $0x318] sm:$0xff] }
 0x137   : > { %v7894_v15 = vpack.c.bf16 %v6694_v10, %v6692_v9  ;;  %v6696_v17 = vpop.eup %6695  ;;  %v446_v10 = vld [vmem:[%s7670_s12 + $0x338] sm:$0xff] }
 0x138   : > { %1493 = vmatmul.mubr.bf16.gmra.mrb[56].mxu0 %v655_v1  ;;  %2676 = vmatpush1.bf16.msra.mxu1 %v6412_v47  ;;  %v6425_v1 = vld [vmem:[#allocation7 + $0x94] ss:$12 sps:$4 sm:$0xff]  }
 0x139   : > { %1502 = vmatprep.mubr.bf16.mxu0 %v660_v2  ;;  %2677 = vmatprep.subr.bf16.mxu1 %v6417_v51  ;;  %v7882_v2 = vpack.c.bf16 %v6686_v59, %v6684_v57  ;;  %v425_v57 = vld [vmem:[%s7670_s12 + $0x290] sm:$0xff] }
 0x13b   : > { %1916 = vmatmul.mubr.bf16.gmra.mrb[72].mxu1 %v7866_v45 }
 0x13c   : > { %1923 = vmatprep.mubr.bf16.mxu1 %v7870_v49  ;;  %2678 = vmatpush1.bf16.msra.mxu1 %v6415_v54 }
 0x13d   : > { %2679 = vmatprep.subr.bf16.mxu1 %v6422_v56 }
 0x140   : > { %1503 = vmatmul.mubr.bf16.gmra.mrb[60].mxu0 %v7838_v11  ;;  %2680 = vmatpush1.bf16.msra.mxu1 %v6420_v62  ;;  %v393_v11 = vld [vmem:[%s7670_s12 + $0x190] sm:$0xff]  ;;  %v438_v62 = vld [vmem:[%s7670_s12 + $0x2f8] sm:$0xff] }
 0x141   : > { %1545 = vmatprep.mubr.bf16.mxu0 %v7840_v12  ;;  %2681 = vmatprep.subr.bf16.mxu1 %v6425_v1  ;;  %v397_v12 = vld [vmem:[%s7670_s12 + $0x1b0] sm:$0xff]  ;;  %6703 = vtanh.f32 %v393_v11  ;;  %v6438_v1 = vld [vmem:[#allocation7 + $0xdc] ss:$12 sps:$4 sm:$0xff]  }
 0x142   : > { %6705 = vtanh.f32 %v397_v12 }
 0x143   : > { %1924 = vmatmul.mubr.bf16.gmra.mrb[76].mxu1 %v7878_v63  ;;  %6707 = vtanh.f32 %v402_v14 }
 0x144   : > { %1931 = vmatprep.mubr.bf16.mxu1 %v7882_v2  ;;  %2682 = vmatpush1.bf16.msra.mxu1 %v6423_v5  ;;  %6709 = vtanh.f32 %v406_v16  ;;  %v433_v5 = vld [vmem:[%s7670_s12 + $0x2d0] sm:$0xff] }
 0x145   : > { %2683 = vmatprep.subr.bf16.mxu1 %v6430_v19  ;;  %6711 = vtanh.f32 %v401_v23  ;;  %v445_v16 = vld [vmem:[%s7670_s12 + $0x330] sm:$0xff] }
 0x146   : > { %6713 = vtanh.f32 %v405_v24  ;;  %v6441_v23 = vld [vmem:[#allocation7 + $0xf4] ss:$12 sps:$4 sm:$0xff]  }
 0x147   : > { %6715 = vtanh.f32 %v410_v26 }
 0x148   : > { %1546 = vmatmul.mubr.bf16.vlgmr.msra.gmra.mrb[0].mxu0 %v7846_v20  ;;  %v6698_v20 = vpop.eup %6697  ;;  %2684 = vmatpush1.bf16.msra.mxu1 %v6428_v18  ;;  %6717 = vtanh.f32 %v414_v28  ;;  %v450_v18 = vld [vmem:[%s7670_s12 + $0x358] sm:$0xff]  ;;  %v453_v28 = vld [vmem:[%s7670_s12 + $0x370] sm:$0xff] }
 0x149   : > { %1555 = vmatprep.mubr.bf16.mxu0 %v7849_v22  ;;  %5208 = vmatpush3.bf16.msra.mxu0 %v6419_v58  ;;  %v6700_v21 = vpop.eup %6699  ;;  %v7902_v25 = vpack.c.bf16 %v6698_v20, %v6696_v17  ;;  %v429_v58 = vld [vmem:[%s7670_s12 + $0x2b0] sm:$0xff]  ;;  %v454_v20 = vld [vmem:[%s7670_s12 + $0x378] sm:$0xff] }
 0x14a   : > { %5209 = vmatprep.subr.bf16.mxu0 %v6426_v6  ;;  %v6702_v22 = vpop.eup %6701  ;;  %2685 = vmatprep.subr.bf16.mxu1 %v6433_v41  ;;  %v437_v6 = vld [vmem:[%s7670_s12 + $0x2f0] sm:$0xff] }
 0x14b   : > { %1932 = vmatmul.mubr.bf16.gmra.mrb[80].mxu1 %v7890_v13  ;;  %v7906_v27 = vpack.c.bf16 %v6702_v22, %v6700_v21  ;;  %v6704_v29 = vpop.eup %6703  ;;  %v6439_v22 = vld [vmem:[#allocation7 + $0xf0] ss:$12 sps:$4 sm:$0xff]  }
 0x14c   : > { %1939 = vmatprep.mubr.bf16.mxu1 %v7894_v15  ;;  %v6706_v30 = vpop.eup %6705  ;;  %2686 = vmatpush1.bf16.msra.mxu1 %v6431_v40 }
 0x14d   : > { %5210 = vmatpush3.bf16.msra.mxu0 %v6427_v7  ;;  %v6708_v31 = vpop.eup %6707  ;;  %2687 = vmatprep.subr.bf16.mxu1 %v6438_v1  ;;  %v6447_v1 = vld [vmem:[#allocation7 + $0x120] ss:$12 sps:$4 sm:$0xff]  }
 0x14e   : > { %v6710_v32 = vpop.eup %6709  ;;  %5211 = vmatprep.subr.bf16.mxu0 %v6434_v52 }
 0x14f   : > { %v7918_v37 = vpack.c.bf16 %v6710_v32, %v6708_v31  ;;  %v6712_v39 = vpop.eup %6711  ;;  %v458_v31 = vld [vmem:[%s7670_s12 + $0x398] sm:$0xff] }
 0x150   : > { %1556 = vmatmul.mubr.bf16.gmra.mrb[4].mxu0 %v7856_v33  ;;  %v409_v33 = vld [vmem:[%s7670_s12 + $0x210] sm:$0xff]  ;;  %v6714_v42 = vpop.eup %6713  ;;  %2688 = vmatpush1.bf16.msra.mxu1 %v6436_v0 }
 0x151   : > { %1565 = vmatprep.mubr.bf16.mxu0 %v7859_v35  ;;  %v7914_v35 = vpack.c.bf16 %v6706_v30, %v6704_v29  ;;  %6719 = vtanh.f32 %v409_v33  ;;  %v6716_v43 = vpop.eup %6715  ;;  %v7926_v47 = vpack.c.bf16 %v6714_v42, %v6712_v39  ;;  %5212 = vmatpush3.bf16.msra.mxu0 %v6435_v53  ;;  %v6442_v42 = vld [vmem:[#allocation7 + $0x110] ss:$12 sps:$4 sm:$0xff]  }
 0x152   : > { %6721 = vtanh.f32 %v413_v34  ;;  %v6718_v44 = vpop.eup %6717  ;;  %2689 = vmatprep.subr.bf16.mxu1 %v6441_v23  ;;  %v462_v34 = vld [vmem:[%s7670_s12 + $0x3b8] sm:$0xff]  ;;  %5213 = vmatprep.subr.bf16.mxu0 %v6442_v42 }
 0x153   : > { %1940 = vmatmul.mubr.bf16.gmra.mrb[84].mxu1 %v7902_v25  ;;  %6723 = vtanh.f32 %v418_v36  ;;  %v6463_v42 = vld [vmem:[#allocation7 + $0x158] ss:$12 sps:$4 sm:$0xff]  }
 0x154   : > { %1947 = vmatprep.mubr.bf16.mxu1 %v7906_v27  ;;  %6725 = vtanh.f32 %v422_v38  ;;  %2690 = vmatpush1.bf16.msra.mxu1 %v6439_v22 }
 0x158   : > { %1566 = vmatmul.mubr.bf16.gmra.mrb[8].mxu0 %v7866_v45  ;;  %v417_v45 = vld [vmem:[%s7670_s12 + $0x250] sm:$0xff] }
 0x159   : > { %1575 = vmatprep.mubr.bf16.mxu0 %v7870_v49  ;;  %v7930_v49 = vpack.c.bf16 %v6718_v44, %v6716_v43  ;;  %6727 = vtanh.f32 %v417_v45  ;;  %v6443_v43 = vld [vmem:[#allocation7 + $0x50] ss:$12 sps:$4 sm:$0xff]  }
 0x15a   : > { %6729 = vtanh.f32 %v421_v46  ;;  %v457_v45 = vld [vmem:[%s7670_s12 + $0x390] sm:$0xff]  ;;  %5214 = vmatpush3.bf16.msra.mxu0 %v6443_v43  ;;  %v6464_v43 = vld [vmem:[#allocation7 + $0x98] ss:$12 sps:$4 sm:$0xff]  }
 0x15b   : > { %1948 = vmatmul.mubr.bf16.gmra.mrb[88].mxu1 %v7914_v35  ;;  %v6720_v51 = vpop.eup %6719  ;;  %6731 = vtanh.f32 %v426_v48  ;;  %v461_v46 = vld [vmem:[%s7670_s12 + $0x3b0] sm:$0xff] }
 0x15c   : > { %1955 = vmatprep.mubr.bf16.mxu1 %v7918_v37  ;;  %v6722_v54 = vpop.eup %6721  ;;  %6733 = vtanh.f32 %v430_v50  ;;  %v6444_v48 = vld [vmem:[#allocation7 + $0x108] ss:$12 sps:$4 sm:$0xff]  }
 0x15d   : > { %v6724_v55 = vpop.eup %6723  ;;  %v7938_v59 = vpack.c.bf16 %v6722_v54, %v6720_v51  ;;  %6735 = vtanh.f32 %v425_v57  ;;  %v466_v51 = vld [vmem:[%s7670_s12 + $0x3d8] sm:$0xff] }
 0x15e   : > { %v6726_v56 = vpop.eup %6725  ;;  %6737 = vtanh.f32 %v429_v58  ;;  %v470_v54 = vld [vmem:[%s7670_s12 + $0x3f8] sm:$0xff] }
 0x15f   : > { %v7942_v61 = vpack.c.bf16 %v6726_v56, %v6724_v55  ;;  %6739 = vtanh.f32 %v434_v60 }
 0x160   : > { %1576 = vmatmul.mubr.bf16.gmra.mrb[12].mxu0 %v7878_v63  ;;  %6741 = vtanh.f32 %v438_v62 }
 0x161   : > { %1585 = vmatprep.mubr.bf16.mxu0 %v7882_v2  ;;  %6743 = vtanh.f32 %v433_v5 }
 0x162   : > { %6745 = vtanh.f32 %v437_v6 }
 0x163   : > { %1956 = vmatmul.mubr.bf16.gmra.mrb[92].mxu1 %v7926_v47  ;;  %v6728_v63 = vpop.eup %6727  ;;  %6747 = vtanh.f32 %v442_v8 }
 0x164   : > { %1963 = vmatprep.mubr.bf16.mxu1 %v7930_v49  ;;  %v6730_v2 = vpop.eup %6729  ;;  %6749 = vtanh.f32 %v446_v10 }
 0x165   : > { %v6732_v3 = vpop.eup %6731  ;;  %v7950_v7 = vpack.c.bf16 %v6730_v2, %v6728_v63  ;;  %v465_v63 = vld [vmem:[%s7670_s12 + $0x3d0] sm:$0xff] }
 0x166   : > { %v6734_v4 = vpop.eup %6733  ;;  %v6449_v2 = vld [vmem:[#allocation7 + $0x124] ss:$12 sps:$4 sm:$0xff]  }
 0x167   : > { %v7954_v9 = vpack.c.bf16 %v6734_v4, %v6732_v3  ;;  %v6736_v11 = vpop.eup %6735  ;;  %v469_v4 = vld [vmem:[%s7670_s12 + $0x3f0] sm:$0xff] }
 0x168   : > { %1586 = vmatmul.mubr.bf16.gmra.mrb[16].mxu0 %v7890_v13  ;;  %v6738_v12 = vpop.eup %6737 }
 0x169   : > { %1595 = vmatprep.mubr.bf16.mxu0 %v7894_v15  ;;  %v6740_v13 = vpop.eup %6739  ;;  %v441_v15 = vld [vmem:[%s7670_s12 + $0x310] sm:$0xff]  ;;  %v7962_v17 = vpack.c.bf16 %v6738_v12, %v6736_v11 }
 0x16a   : > { %v6742_v14 = vpop.eup %6741  ;;  %6751 = vtanh.f32 %v441_v15  ;;  %v6451_v15 = vld [vmem:[#allocation7 + $0x68] ss:$12 sps:$4 sm:$0xff]  }
 0x16b   : > { %1964 = vmatmul.mubr.bf16.gmra.mrb[96].mxu1 %v7938_v59  ;;  %v7966_v19 = vpack.c.bf16 %v6742_v14, %v6740_v13  ;;  %6753 = vtanh.f32 %v445_v16  ;;  %v6744_v21 = vpop.eup %6743  ;;  %v6450_v14 = vld [vmem:[#allocation7 + $0x128] ss:$12 sps:$4 sm:$0xff]  }
 0x16c   : > { %1971 = vmatprep.mubr.bf16.mxu1 %v7942_v61  ;;  %6755 = vtanh.f32 %v450_v18  ;;  %v6746_v24 = vpop.eup %6745  ;;  %5215 = vmatprep.subr.bf16.mxu0 %v6450_v14  ;;  %v6452_v18 = vld [vmem:[#allocation7 + $0x138] ss:$12 sps:$4 sm:$0xff]  }
 0x16d   : > { %6757 = vtanh.f32 %v454_v20  ;;  %v7974_v30 = vpack.c.bf16 %v6746_v24, %v6744_v21  ;;  %5216 = vmatpush3.bf16.msra.mxu0 %v6451_v15 }
 0x170   : > { %1596 = vmatmul.mubr.bf16.gmra.mrb[20].mxu0 %v7902_v25  ;;  %v6748_v25 = vpop.eup %6747 }
 0x171   : > { %1605 = vmatprep.mubr.bf16.mxu0 %v7906_v27  ;;  %v6750_v26 = vpop.eup %6749  ;;  %v449_v27 = vld [vmem:[%s7670_s12 + $0x350] sm:$0xff]  ;;  %s7345_s12 = scalar_lea.vmem %s8993_s17, 16 }
 0x172   : > { %v7978_v33 = vpack.c.bf16 %v6750_v26, %v6748_v25  ;;  %6759 = vtanh.f32 %v449_v27  ;;  %p7346_p10 = scmp.ne.s32.totalorder %s8993_s17, %s7345_s12  ;;  %p7353_p2 = scmp.lt.s32.totalorder %s7351_s9, %s7345_s12 }
 0x173   : > { %1972 = vmatmul.mubr.bf16.gmra.mrb[100].mxu1 %v7950_v7  ;;  %6761 = vtanh.f32 %v453_v28 }
 0x174   : > { %1979 = vmatprep.mubr.bf16.mxu1 %v7954_v9  ;;  %v6752_v38 = vpop.eup %6751  ;;  %6763 = vtanh.f32 %v458_v31  ;;  %v6455_v31 = vld [vmem:[#allocation7 + $0x150] ss:$12 sps:$4 sm:$0xff]   ;;  %p7347_p3 = pnand %p7346_p10, %p7618_p5  ;;  %p7354_p1 = por %p7353_p2, %p7352_p12 }
 0x175   : > { %v6754_v40 = vpop.eup %6753  ;;  %6765 = vtanh.f32 %v462_v34  ;;  %v6458_v34 = vld [vmem:[#allocation7 + $0x140] ss:$12 sps:$4 sm:$0xff]  }
 0x176   : > { %v6756_v41 = vpop.eup %6755  ;;  %v7990_v50 = vpack.c.bf16 %v6754_v40, %v6752_v38  ;;  %6767 = vtanh.f32 %v457_v45  ;;  %5217 = vmatprep.subr.bf16.mxu0 %v6458_v34  ;;  %v6460_v45 = vld [vmem:[#allocation7 + $0x168] ss:$12 sps:$4 sm:$0xff]   ;;  %p7348_p7 = pneg %p7347_p3 }
 0x177   : > { %v6758_v44 = vpop.eup %6757  ;;  %6769 = vtanh.f32 %v461_v46  ;;  %v6462_v46 = vld [vmem:[#allocation7 + $0x16c] ss:$12 sps:$4 sm:$0xff]  }
 0x178   : > { %1606 = vmatmul.mubr.bf16.gmra.mrb[24].mxu0 %v7914_v35  ;;  %v7994_v53 = vpack.c.bf16 %v6758_v44, %v6756_v41  ;;  %6771 = vtanh.f32 %v466_v51  ;;  %p7355_p4 = pnand %p7354_p1, %p7348_p7 }
 0x179   : > { %1615 = vmatprep.mubr.bf16.mxu0 %v7918_v37  ;;  %6773 = vtanh.f32 %v470_v54 }
 0x17a   : > { %6775 = vtanh.f32 %v465_v63 }
 0x17b   : > { %1980 = vmatmul.mubr.bf16.gmra.mrb[104].mxu1 %v7962_v17  ;;  %6777 = vtanh.f32 %v469_v4 }
 0x17c   : > { %1987 = vmatprep.mubr.bf16.mxu1 %v7966_v19  ;;  %v6760_v58 = vpop.eup %6759 }
 0x17d   : > { %v4999_v29 = vpop.f32.mrb[0].mxu1  ;;  %v6762_v60 = vpop.eup %6761 }
 0x17e   : > { %v5000_v32 = vpop.f32.mrb[1].mxu1  ;;  %v8005_v3 = vpack.c.bf16 %v6762_v60, %v6760_v58 }
 0x17f   : > { %v7982_v35 = vadd.f32 %v5000_v32, %v4999_v29  ;;  %v5002_v36 = vpop.f32.mrb[2].mxu1 }
 0x180   : > { %1616 = vmatmul.mubr.bf16.gmra.mrb[28].mxu0 %v7926_v47  ;;  %v5003_v37 = vpop.f32.mrb[3].mxu1 }
 0x181   : > { %1625 = vmatprep.mubr.bf16.mxu0 %v7930_v49  ;;  %v7984_v39 = vadd.f32 %v5003_v37, %v5002_v36  ;;  %v6446_v49 = vld [vmem:[#allocation7 + $0x10c] ss:$12 sps:$4 sm:$0xff]  }
 0x182   : > { %2691 = vmatprep.subr.bf16.mxu1 %v6446_v49  ;;  %v6459_v36 = vld [vmem:[#allocation7 + $0x80] ss:$12 sps:$4 sm:$0xff]   ;;  %v6466_v49 = vld [vmem:[#allocation7 + $0xb0] ss:$12 sps:$4 sm:$0xff]  }
 0x183   : > { %1988 = vmatmul.mubr.bf16.gmra.mrb[108].mxu1 %v7974_v30  ;;  %5218 = vmatpush3.bf16.msra.mxu0 %v6459_v36 }
 0x184   : > { %1995 = vmatprep.mubr.bf16.mxu1 %v7978_v33  ;;  %2692 = vmatpush1.bf16.msra.mxu1 %v6444_v48  ;;  %v6465_v48 = vld [vmem:[#allocation7 + $0x170] ss:$12 sps:$4 sm:$0xff]  }
 0x185   : > { %v5005_v47 = vpop.f32.mrb[4].mxu1  ;;  %2693 = vmatprep.subr.bf16.mxu1 %v6449_v2  ;;  %5219 = vmatprep.subr.bf16.mxu0 %v6463_v42 }
 0x186   : > { %v5006_v52 = vpop.f32.mrb[5].mxu1 }
 0x187   : > { %v7998_v55 = vadd.f32 %v5006_v52, %v5005_v47  ;;  %v5008_v56 = vpop.f32.mrb[6].mxu1  ;;  %5220 = vmatpush3.bf16.msra.mxu0 %v6464_v43 }
 0x188   : > { %1626 = vmatmul.mubr.bf16.gmra.mrb[32].mxu0 %v7938_v59  ;;  %v5009_v57 = vpop.f32.mrb[7].mxu1  ;;  %2694 = vmatpush1.bf16.msra.mxu1 %v6447_v1 }
 0x189   : > { %1635 = vmatprep.mubr.bf16.mxu0 %v7942_v61  ;;  %v8000_v59 = vadd.f32 %v5009_v57, %v5008_v56  ;;  %v6764_v61 = vpop.eup %6763  ;;  %5221 = vmatprep.subr.bf16.mxu0 %v6465_v48  ;;  %v6469_v56 = vld [vmem:[#allocation7 + $0x184] ss:$12 sps:$4 sm:$0xff]  }
 0x18a   : > { %v6766_v62 = vpop.eup %6765 }
 0x18b   : > { %1996 = vmatmul.mubr.bf16.gmra.mrb[112].mxu1 %v7990_v50  ;;  %v8009_v6 = vpack.c.bf16 %v6766_v62, %v6764_v61  ;;  %v6768_v10 = vpop.eup %6767  ;;  %5222 = vmatpush3.bf16.msra.mxu0 %v6466_v49 }
 0x18c   : > { %2003 = vmatprep.mubr.bf16.mxu1 %v7994_v53  ;;  %v6770_v12 = vpop.eup %6769 }
 0x18d   : > { %v5011_v0 = vpop.f32.mrb[8].mxu1  ;;  %v6772_v13 = vpop.eup %6771  ;;  %v657_v20 = vpack.c.bf16 %v6770_v12, %v6768_v10 }
 0x18e   : > { %v5012_v5 = vpop.f32.mrb[9].mxu1  ;;  %v6774_v16 = vpop.eup %6773 }
 0x18f   : > { %v5014_v8 = vpop.f32.mrb[10].mxu1  ;;  %v662_v22 = vpack.c.bf16 %v6774_v16, %v6772_v13  ;;  %v6776_v27 = vpop.eup %6775 }
 0x190   : > { %1636 = vmatmul.mubr.bf16.gmra.mrb[36].mxu0 %v7950_v7  ;;  %v8012_v7 = vadd.f32 %v5012_v5, %v5011_v0  ;;  %v6778_v28 = vpop.eup %6777 }
 0x191   : > { %1645 = vmatprep.mubr.bf16.mxu0 %v7954_v9  ;;  %v5015_v9 = vpop.f32.mrb[11].mxu1  ;;  %v661_v32 = vpack.c.bf16 %v6778_v28, %v6776_v27  ;;  %v8056_v27 = vld [vmem:[#allocation7 + $0x188] ss:$12 sps:$4 sm:$0xff]  }
 0x192   : > { %v8014_v11 = vadd.f32 %v5015_v9, %v5014_v8  ;;  %5575 = vmatprep.subr.bf16.mxu0 %v8056_v27 }
 0x193   : > { %2004 = vmatmul.mubr.bf16.gmra.mrb[116].mxu1 %v8005_v3 }
 0x194   : > { %2011 = vmatprep.mubr.bf16.mxu1 %v8009_v6 }
 0x198   : > { %1646 = vmatmul.mubr.bf16.gmra.mrb[40].mxu0 %v7962_v17  ;;  %v5017_v17 = vpop.f32.mrb[12].mxu1 }
 0x199   : > { %1655 = vmatprep.mubr.bf16.mxu0 %v7966_v19  ;;  %v6454_v19 = vld [vmem:[#allocation7 + $0x13c] ss:$12 sps:$4 sm:$0xff]   ;;  %v5018_v21 = vpop.f32.mrb[13].mxu1 }
 0x19a   : > { %v8020_v23 = vadd.f32 %v5018_v21, %v5017_v17  ;;  %v5020_v24 = vpop.f32.mrb[14].mxu1  ;;  %2695 = vmatprep.subr.bf16.mxu1 %v6454_v19 }
 0x19b   : > { %v5021_v25 = vpop.f32.mrb[15].mxu1  ;;  %2696 = vmatpush1.bf16.msra.mxu1 %v6452_v18 }
 0x19c   : > { %v8022_v26 = vadd.f32 %v5021_v25, %v5020_v24  ;;  %2012 = vmatmul.mubr.bf16.gmra.mrb[120].mxu1 %v657_v20 }
 0x19d   : > { %2019 = vmatprep.mubr.bf16.mxu1 %v662_v22  ;;  %v5023_v29 = vpop.f32.mrb[16].mxu1 }
 0x1a0   : > { %1656 = vmatmul.mubr.bf16.gmra.mrb[44].mxu0 %v7974_v30  ;;  %v6457_v30 = vld [vmem:[#allocation7 + $0x154] ss:$12 sps:$4 sm:$0xff]  }
 0x1a1   : > { %1665 = vmatprep.mubr.bf16.mxu0 %v7978_v33  ;;  %v5024_v33 = vpop.f32.mrb[17].mxu1  ;;  %2697 = vmatprep.subr.bf16.mxu1 %v6457_v30 }
 0x1a2   : > { %v8026_v37 = vadd.f32 %v5024_v33, %v5023_v29  ;;  %v5026_v38 = vpop.f32.mrb[18].mxu1  ;;  %2698 = vmatpush1.bf16.msra.mxu1 %v6455_v31 }
 0x1a3   : > { %v5027_v40 = vpop.f32.mrb[19].mxu1  ;;  %2699 = vmatprep.subr.bf16.mxu1 %v6462_v46 }
 0x1a4   : > { %v8028_v41 = vadd.f32 %v5027_v40, %v5026_v38  ;;  %2020 = vmatmul.mubr.bf16.gmra.mrb[124].mxu1 %v661_v32 }
 0x1a6   : > { %v5029_v44 = vpop.f32.mrb[20].mxu1  ;;  %2700 = vmatpush1.bf16.msra.mxu1 %v6460_v45 }
 0x1a7   : > { %v5030_v47 = vpop.f32.mrb[21].mxu1  ;;  %2862 = vmatprep.subr.bf16.mxu1 %v6469_v56 }
 0x1a8   : > { %1666 = vmatmul.mubr.bf16.gmra.mrb[48].mxu0 %v7990_v50  ;;  %v8032_v50 = vadd.f32 %v5030_v47, %v5029_v44  ;;  %v5032_v51 = vpop.f32.mrb[22].mxu1 }
 0x1a9   : > { %1675 = vmatprep.mubr.bf16.mxu0 %v7994_v53  ;;  %v5033_v52 = vpop.f32.mrb[23].mxu1 }
 0x1aa   : > { %v8034_v53 = vadd.f32 %v5033_v52, %v5032_v51  ;;  %v793_v51 = vlaneseq }
 0x1ac   : > { %v8072_v56 = vshrl.u32 %v793_v51, 7 }
 0x1ae   : > { %v5035_v54 = vpop.f32.mrb[24].mxu1 }
 0x1af   : > { %v5036_v57 = vpop.f32.mrb[25].mxu1 }
 0x1b0   : > { %1676 = vmatmul.mubr.bf16.gmra.mrb[52].mxu0 %v8005_v3  ;;  %v8036_v58 = vadd.f32 %v5036_v57, %v5035_v54  ;;  %v5038_v60 = vpop.f32.mrb[26].mxu1 }
 0x1b1   : > { %1685 = vmatprep.mubr.bf16.mxu0 %v8009_v6  ;;  %v5039_v61 = vpop.f32.mrb[27].mxu1 }
 0x1b2   : > { %v8038_v62 = vadd.f32 %v5039_v61, %v5038_v60 }
 0x1b6   : > { %v5041_v63 = vpop.f32.mrb[28].mxu1 }
 0x1b7   : > { %v5042_v0 = vpop.f32.mrb[29].mxu1 }
 0x1b8   : > { %1686 = vmatmul.mubr.bf16.gmra.mrb[56].mxu0 %v657_v20  ;;  %v8040_v1 = vadd.f32 %v5042_v0, %v5041_v63  ;;  %v5044_v2 = vpop.f32.mrb[30].mxu1  ;;  %v803_v0 = vsub.s32 2, %v8072_v56 }
 0x1b9   : > { %1695 = vmatprep.mubr.bf16.mxu0 %v662_v22  ;;  %v5045_v3 = vpop.f32.mrb[31].mxu1 }
 0x1ba   : > { %v8042_v4 = vadd.f32 %v5045_v3, %v5044_v2  ;;  %v791_v2 = vld [vmem:[%s9037_s2] sm:$0x7] }
 0x1be   : > { %v5047_v5 = vpop.f32.mrb[32].mxu1 }
 0x1bf   : > { %v5048_v6 = vpop.f32.mrb[33].mxu1 }
 0x1c0   : > { %1696 = vmatmul.mubr.bf16.gmra.mrb[60].mxu0 %v661_v32  ;;  %v8044_v8 = vadd.f32 %v5048_v6, %v5047_v5  ;;  %v5050_v9 = vpop.f32.mrb[34].mxu1  ;;  %v8084_v6 = vrot.slane %v791_v2, %v803_v0 }
 0x1c1   : > { %v5051_v10 = vpop.f32.mrb[35].mxu1 }
 0x1c2   : > { %v8046_v12 = vadd.f32 %v5051_v10, %v5050_v9 }
 0x1c6   : > { %v5053_v13 = vpop.f32.mrb[36].mxu1 }
 0x1c7   : > { %v5054_v14 = vpop.f32.mrb[37].mxu1 }
 0x1c8   : > { %v8048_v15 = vadd.f32 %v5054_v14, %v5053_v13  ;;  %v5056_v16 = vpop.f32.mrb[38].mxu1 }
 0x1c9   : > { %v5057_v17 = vpop.f32.mrb[39].mxu1 }
 0x1ca   : > { %v8050_v18 = vadd.f32 %v5057_v17, %v5056_v16 }
 0x1ce   : > { %v5059_v19 = vpop.f32.mrb[40].mxu1 }
 0x1cf   : > { %v5060_v20 = vpop.f32.mrb[41].mxu1 }
 0x1d0   : > { %v8052_v21 = vadd.f32 %v5060_v20, %v5059_v19  ;;  %v5062_v22 = vpop.f32.mrb[42].mxu1  ;;  %v1741_v19 = vadd.f32 %v7982_v35, %v8084_v6  ;;  %v1752_v35 = vadd.f32 %v8000_v59, %v8084_v6 }
 0x1d1   : > { %v5063_v24 = vpop.f32.mrb[43].mxu1 }
 0x1d2   : > { %v8054_v25 = vadd.f32 %v5063_v24, %v5062_v22  ;;  %v1744_v24 = vadd.f32 %v7984_v39, %v8084_v6 }
 0x1d6   : > { %v5065_v28 = vpop.f32.mrb[44].mxu1 }
 0x1d7   : > { %v5066_v29 = vpop.f32.mrb[45].mxu1 }
 0x1d8   : > { %v8059_v31 = vadd.f32 %v5066_v29, %v5065_v28  ;;  %v5068_v30 = vpop.f32.mrb[46].mxu1 }
 0x1d9   : > { %v5069_v32 = vpop.f32.mrb[47].mxu1 }
 0x1da   : > { %v8061_v33 = vadd.f32 %v5069_v32, %v5068_v30 }
 0x1de   : > { %v5071_v34 = vpop.f32.mrb[48].mxu1 }
 0x1df   : > { %v5072_v36 = vpop.f32.mrb[49].mxu1 }
 0x1e0   : > { %v8063_v38 = vadd.f32 %v5072_v36, %v5071_v34  ;;  %v5074_v40 = vpop.f32.mrb[50].mxu1 }
 0x1e1   : > { %v5075_v42 = vpop.f32.mrb[51].mxu1 }
 0x1e2   : > { %v8065_v43 = vadd.f32 %v5075_v42, %v5074_v40  ;;  %v1749_v40 = vadd.f32 %v7998_v55, %v8084_v6  ;;  %v1757_v55 = vadd.f32 %v8012_v7, %v8084_v6 }
 0x1e6   : > { %v5077_v44 = vpop.f32.mrb[52].mxu1 }
 0x1e7   : > { %v5078_v45 = vpop.f32.mrb[53].mxu1 }
 0x1e8   : > { %v8067_v46 = vadd.f32 %v5078_v45, %v5077_v44  ;;  %v5080_v47 = vpop.f32.mrb[54].mxu1 }
 0x1e9   : > { %v5081_v48 = vpop.f32.mrb[55].mxu1 }
 0x1ea   : > { %v8069_v49 = vadd.f32 %v5081_v48, %v5080_v47 }
 0x1ee   : > { %v5083_v52 = vpop.f32.mrb[56].mxu1 }
 0x1ef   : > { %v5084_v54 = vpop.f32.mrb[57].mxu1 }
 0x1f0   : > { %v8074_v57 = vadd.f32 %v5084_v54, %v5083_v52  ;;  %v5086_v60 = vpop.f32.mrb[58].mxu1  ;;  %v795_v54 = vsub.s32 0, %v8072_v56 }
 0x1f1   : > { %v5087_v61 = vpop.f32.mrb[59].mxu1 }
 0x1f2   : > { %v8076_v63 = vadd.f32 %v5087_v61, %v5086_v60  ;;  %v799_v61 = vsub.s32 1, %v8072_v56  ;;  %v8106_v59 = vrot.slane %v791_v2, %v795_v54 }
 0x1f6   : > { %v5089_v3 = vpop.f32.mrb[60].mxu1 }
 0x1f7   : > { %v5090_v5 = vpop.f32.mrb[61].mxu1 }
 0x1f8   : > { %v5091_v9 = vadd.f32 %v5090_v5, %v5089_v3  ;;  %v5092_v10 = vpop.f32.mrb[62].mxu1 }
 0x1f9   : > { %v5093_v13 = vpop.f32.mrb[63].mxu1 }
 0x1fa   : > { %v8087_v14 = vadd.f32 %v5091_v9, %v8084_v6  ;;  %v5094_v16 = vadd.f32 %v5093_v13, %v5092_v10  ;;  %v1760_v13 = vadd.f32 %v8014_v11, %v8084_v6 }
 0x1fc   : > { %v8090_v17 = vadd.f32 %v5094_v16, %v8084_v6 }
 0x1fe   : > { %v5111_v20 = vpop.f32.mrb[64].mxu1 }
 0x1ff   : > { %v5112_v22 = vpop.f32.mrb[65].mxu1 }
 0x200   : > { %v5113_v28 = vadd.f32 %v5112_v22, %v5111_v20  ;;  %v5114_v29 = vpop.f32.mrb[66].mxu1  ;;  %v8112_v20 = vrot.slane %v791_v2, %v799_v61 }
 0x201   : > { %v5115_v30 = vpop.f32.mrb[67].mxu1 }
 0x202   : > { %v1902_v32 = vadd.f32 %v5113_v28, %v1741_v19  ;;  %v5116_v34 = vadd.f32 %v5115_v30, %v5114_v29 }
 0x204   : > { %6779 = vtanh.f32 %v1902_v32  ;;  %v1905_v36 = vadd.f32 %v5116_v34, %v1744_v24 }
 0x206   : > { %6781 = vtanh.f32 %v1905_v36  ;;  %v5117_v42 = vpop.f32.mrb[68].mxu1 }
 0x207   : > { %v5118_v44 = vpop.f32.mrb[69].mxu1 }
 0x208   : > { %v5119_v45 = vadd.f32 %v5118_v44, %v5117_v42  ;;  %v5120_v47 = vpop.f32.mrb[70].mxu1  ;;  %v1765_v44 = vadd.f32 %v8020_v23, %v8084_v6 }
 0x209   : > { %v5121_v48 = vpop.f32.mrb[71].mxu1 }
 0x20a   : > { %v1910_v39 = vadd.f32 %v5119_v45, %v1749_v40  ;;  %v5122_v52 = vadd.f32 %v5121_v48, %v5120_v47 }
 0x20c   : > { %6783 = vtanh.f32 %v1910_v39  ;;  %v1913_v60 = vadd.f32 %v5122_v52, %v1752_v35  ;;  %v1768_v39 = vadd.f32 %v8022_v26, %v8084_v6 }
 0x20e   : > { %v6780_v3 = vpop.eup %6779  ;;  %6785 = vtanh.f32 %v1913_v60  ;;  %v5123_v5 = vpop.f32.mrb[72].mxu1 }
 0x20f   : > { %v5124_v9 = vpop.f32.mrb[73].mxu1 }
 0x210   : > { %v6782_v10 = vpop.eup %6781  ;;  %v5125_v16 = vadd.f32 %v5124_v9, %v5123_v5  ;;  %v5126_v19 = vpop.f32.mrb[74].mxu1 }
 0x211   : > { %v5127_v22 = vpop.f32.mrb[75].mxu1  ;;  %v8114_v24 = vpack.c.bf16 %v6782_v10, %v6780_v3 }
 0x212   : > { %v1918_v7 = vadd.f32 %v5125_v16, %v1757_v55  ;;  %v5128_v28 = vadd.f32 %v5127_v22, %v5126_v19 }
 0x214   : > { %6787 = vtanh.f32 %v1918_v7  ;;  %v1921_v34 = vadd.f32 %v5128_v28, %v1760_v13 }
 0x216   : > { %v6784_v2 = vpop.eup %6783  ;;  %v5129_v35 = vpop.f32.mrb[76].mxu1 }
 0x217   : > { %v5130_v47 = vpop.f32.mrb[77].mxu1 }
 0x218   : > { %v6786_v48 = vpop.eup %6785  ;;  %v5131_v52 = vadd.f32 %v5130_v47, %v5129_v35  ;;  %v5132_v60 = vpop.f32.mrb[78].mxu1 }
 0x219   : > { %v5133_v3 = vpop.f32.mrb[79].mxu1  ;;  %v8124_v55 = vpack.c.bf16 %v6786_v48, %v6784_v2 }
 0x21a   : > { %v1926_v5 = vadd.f32 %v5131_v52, %v1765_v44  ;;  %v5134_v9 = vadd.f32 %v5133_v3, %v5132_v60 }
 0x21b   : > { %v1547_v29 = vpop.f32.mrb[0].mxu0 }
 0x21c   : > { %v5935_v30 = vadd.f32 %v1547_v29, %v8106_v59  ;;  %v1549_v32 = vpop.f32.mrb[1].mxu0  ;;  %v1929_v16 = vadd.f32 %v5134_v9, %v1768_v39  ;;  %v1773_v29 = vadd.f32 %v8026_v37, %v8084_v6 }
 0x21d   : > { %v5936_v36 = vadd.f32 %v1549_v32, %v8112_v20  ;;  %v1551_v11 = vpop.f32.mrb[2].mxu0 }
 0x21e   : > { %6789 = vtanh.f32 %v5935_v30  ;;  %v5937_v40 = vadd.f32 %v1551_v11, %v8106_v59  ;;  %v1553_v42 = vpop.f32.mrb[3].mxu0  ;;  %v6788_v28 = vpop.eup %6787 }
 0x21f   : > { %6791 = vtanh.f32 %v1921_v34  ;;  %v5938_v45 = vadd.f32 %v1553_v42, %v8112_v20  ;;  %v5135_v30 = vpop.f32.mrb[80].mxu1 }
 0x220   : > { %6793 = vtanh.f32 %v5936_v36  ;;  %v5136_v36 = vpop.f32.mrb[81].mxu1 }
 0x221   : > { %6795 = vtanh.f32 %v5937_v40  ;;  %v1776_v40 = vadd.f32 %v8028_v41, %v8084_v6  ;;  %v5137_v42 = vadd.f32 %v5136_v36, %v5135_v30  ;;  %v5138_v2 = vpop.f32.mrb[82].mxu1 }
 0x222   : > { %6797 = vtanh.f32 %v5938_v45  ;;  %v5139_v35 = vpop.f32.mrb[83].mxu1 }
 0x223   : > { %v1557_v23 = vpop.f32.mrb[4].mxu0  ;;  %6799 = vtanh.f32 %v1926_v5  ;;  %v1934_v47 = vadd.f32 %v5137_v42, %v1773_v29  ;;  %v5140_v48 = vadd.f32 %v5139_v35, %v5138_v2  ;;  %v6475_v35 = vld [vmem:[#allocation7 + $0x1b4] ss:$12 sps:$4 sm:$0xff]  }
 0x224   : > { %v5939_v10 = vadd.f32 %v1557_v23, %v8106_v59  ;;  %v1559_v13 = vpop.f32.mrb[5].mxu0 }
 0x225   : > { %v5940_v19 = vadd.f32 %v1559_v13, %v8112_v20  ;;  %v1561_v22 = vpop.f32.mrb[6].mxu0  ;;  %v1937_v9 = vadd.f32 %v5140_v48, %v1776_v40  ;;  %v6467_v13 = vld [vmem:[#allocation7 + $0x180] ss:$12 sps:$4 sm:$0xff]  }
 0x226   : > { %6801 = vtanh.f32 %v5939_v10  ;;  %v5941_v26 = vadd.f32 %v1561_v22, %v8106_v59  ;;  %v1563_v7 = vpop.f32.mrb[7].mxu0  ;;  %v6472_v22 = vld [vmem:[#allocation7 + $0x19c] ss:$12 sps:$4 sm:$0xff]   ;;  %v5141_v29 = vpop.f32.mrb[84].mxu1 }
 0x227   : > { %6803 = vtanh.f32 %v1929_v16  ;;  %v5942_v32 = vadd.f32 %v1563_v7, %v8112_v20 }
 0x228   : > { %v6790_v34 = vpop.eup %6789  ;;  %6805 = vtanh.f32 %v5940_v19 }
 0x229   : > { %v6792_v11 = vpop.eup %6791  ;;  %6807 = vtanh.f32 %v5941_v26  ;;  %v6480_v26 = vld [vmem:[#allocation7 + $0x1a0] ss:$12 sps:$4 sm:$0xff]  }
 0x22a   : > { %v6794_v44 = vpop.eup %6793  ;;  %6809 = vtanh.f32 %v5942_v32  ;;  %v8134_v45 = vpack.c.bf16 %v6792_v11, %v6788_v28  ;;  %v1781_v28 = vadd.f32 %v8032_v50, %v8084_v6  ;;  %v1784_v11 = vadd.f32 %v8034_v53, %v8084_v6  ;;  %v6470_v50 = vld [vmem:[#allocation7 + $0x198] ss:$12 sps:$4 sm:$0xff]  }
 0x22b   : > { %v6796_v37 = vpop.eup %6795  ;;  %v1567_v39 = vpop.f32.mrb[8].mxu0  ;;  %6811 = vtanh.f32 %v1934_v47 }
 0x22c   : > { %v6798_v52 = vpop.eup %6797  ;;  %v5943_v60 = vadd.f32 %v1567_v39, %v8106_v59  ;;  %v1569_v3 = vpop.f32.mrb[9].mxu0  ;;  %v2124_v5 = vpack.c.bf16 %v6796_v37, %v6790_v34  ;;  %v6484_v37 = vld [vmem:[#allocation7 + $0x1b8] ss:$12 sps:$4 sm:$0xff]  }
 0x22d   : > { %v5944_v41 = vadd.f32 %v1569_v3, %v8112_v20  ;;  %v1571_v23 = vpop.f32.mrb[10].mxu0  ;;  %v2125_v10 = vpack.c.bf16 %v6798_v52, %v6794_v44  ;;  %v6800_v7 = vpop.eup %6799 }
 0x22e   : > { %6813 = vtanh.f32 %v5943_v60  ;;  %v5945_v16 = vadd.f32 %v1571_v23, %v8106_v59  ;;  %v1573_v19 = vpop.f32.mrb[11].mxu0  ;;  %v5142_v34 = vpop.f32.mrb[85].mxu1 }
 0x22f   : > { %6815 = vtanh.f32 %v1937_v9  ;;  %v5946_v30 = vadd.f32 %v1573_v19, %v8112_v20  ;;  %2701 = vmatprep.mubr.bf16.mxu1 %v2125_v10  ;;  %3087 = vmatprep.mubr.bf16.mxu0 %v2125_v10  ;;  %v5143_v40 = vadd.f32 %v5142_v34, %v5141_v29  ;;  %v5144_v42 = vpop.f32.mrb[86].mxu1  ;;  %v1789_v29 = vadd.f32 %v8036_v58, %v8084_v6  ;;  %v6477_v58 = vld [vmem:[#allocation7 + $0x1c8] ss:$12 sps:$4 sm:$0xff]  }
 0x230   : > { %v6802_v32 = vpop.eup %6801  ;;  %6817 = vtanh.f32 %v5944_v41  ;;  %2702 = vmatmul.mubr.bf16.vlgmr.msra.gmra.mrb[128].mxu1 %v2124_v5  ;;  %3088 = vmatmul.mubr.bf16.vlgmr.msra.gmra.mrb[64].mxu0 %v2124_v5  ;;  %v5145_v44 = vpop.f32.mrb[87].mxu1 }
 0x231   : > { %v6804_v36 = vpop.eup %6803  ;;  %6819 = vtanh.f32 %v5945_v16  ;;  %2863 = vmatpush1.bf16.msra.mxu1 %v6467_v13  ;;  %5576 = vmatpush3.bf16.msra.mxu0 %v8056_v27  ;;  %v1942_v39 = vadd.f32 %v5143_v40, %v1781_v28  ;;  %v5146_v52 = vadd.f32 %v5145_v44, %v5144_v42  ;;  %v6473_v13 = vld [vmem:[#allocation7 + $0x1b0] ss:$12 sps:$4 sm:$0xff]  }
 0x232   : > { %v6806_v2 = vpop.eup %6805  ;;  %6821 = vtanh.f32 %v5946_v30  ;;  %2864 = vmatprep.subr.bf16.mxu1 %v6472_v22  ;;  %5577 = vmatprep.subr.bf16.mxu0 %v6480_v26  ;;  %v8145_v47 = vpack.c.bf16 %v6804_v36, %v6800_v7  ;;  %v6479_v22 = vld [vmem:[#allocation7 + $0x1cc] ss:$12 sps:$4 sm:$0xff]   ;;  %v6488_v7 = vld [vmem:[#allocation7 + $0x1d0] ss:$12 sps:$4 sm:$0xff]   ;;  %v5147_v30 = vpop.f32.mrb[88].mxu1 }
 0x233   : > { %v6808_v48 = vpop.eup %6807  ;;  %v1577_v53 = vpop.f32.mrb[12].mxu0  ;;  %6823 = vtanh.f32 %v1942_v39  ;;  %v1945_v27 = vadd.f32 %v5146_v52, %v1784_v11  ;;  %v1792_v11 = vadd.f32 %v8038_v62, %v8084_v6  ;;  %v6483_v44 = vld [vmem:[#allocation7 + $0x1e4] ss:$12 sps:$4 sm:$0xff]  }
 0x234   : > { %v6810_v60 = vpop.eup %6809  ;;  %v5947_v3 = vadd.f32 %v1577_v53, %v8106_v59  ;;  %v1579_v5 = vpop.f32.mrb[13].mxu0  ;;  %v2127_v9 = vpack.c.bf16 %v6808_v48, %v6802_v32 }
 0x235   : > { %v5948_v41 = vadd.f32 %v1579_v5, %v8112_v20  ;;  %v1581_v23 = vpop.f32.mrb[14].mxu0  ;;  %v2128_v10 = vpack.c.bf16 %v6810_v60, %v6806_v2  ;;  %2865 = vmatpush1.bf16.msra.mxu1 %v6470_v50  ;;  %5578 = vmatpush3.bf16.msra.mxu0 %v6480_v26  ;;  %v6812_v28 = vpop.eup %6811 }
 0x236   : > { %6825 = vtanh.f32 %v5947_v3  ;;  %v5949_v16 = vadd.f32 %v1581_v23, %v8106_v59  ;;  %v1583_v19 = vpop.f32.mrb[15].mxu0  ;;  %2866 = vmatprep.subr.bf16.mxu1 %v6475_v35  ;;  %5579 = vmatprep.subr.bf16.mxu0 %v6484_v37  ;;  %v5148_v26 = vpop.f32.mrb[89].mxu1  ;;  %v6492_v35 = vld [vmem:[#allocation7 + $0x1e8] ss:$12 sps:$4 sm:$0xff]  }
 0x237   : > { %6827 = vtanh.f32 %v1945_v27  ;;  %v5950_v32 = vadd.f32 %v1583_v19, %v8112_v20  ;;  %2711 = vmatprep.mubr.bf16.mxu1 %v2128_v10  ;;  %3095 = vmatprep.mubr.bf16.mxu0 %v2128_v10  ;;  %v5149_v40 = vadd.f32 %v5148_v26, %v5147_v30  ;;  %v5150_v42 = vpop.f32.mrb[90].mxu1  ;;  %v6481_v10 = vld [vmem:[#allocation7 + $0x1e0] ss:$12 sps:$4 sm:$0xff]   ;;  %v6487_v19 = vld [vmem:[#allocation7 + $0x1fc] ss:$12 sps:$4 sm:$0xff]  }
 0x238   : > { %v6814_v34 = vpop.eup %6813  ;;  %6829 = vtanh.f32 %v5948_v41  ;;  %2712 = vmatmul.mubr.bf16.gmra.mrb[132].mxu1 %v2127_v9  ;;  %3096 = vmatmul.mubr.bf16.gmra.mrb[68].mxu0 %v2127_v9  ;;  %v5151_v2 = vpop.f32.mrb[91].mxu1 }
 0x239   : > { %v6816_v36 = vpop.eup %6815  ;;  %6831 = vtanh.f32 %v5949_v16  ;;  %2867 = vmatpush1.bf16.msra.mxu1 %v6473_v13  ;;  %5580 = vmatpush3.bf16.msra.mxu0 %v6484_v37  ;;  %v1950_v52 = vadd.f32 %v5149_v40, %v1789_v29  ;;  %v5152_v53 = vadd.f32 %v5151_v2, %v5150_v42  ;;  %v1797_v29 = vadd.f32 %v8040_v1, %v8084_v6  ;;  %v5153_v30 = vpop.f32.mrb[92].mxu1  ;;  %v6485_v1 = vld [vmem:[#allocation7 + $0x1f8] ss:$12 sps:$4 sm:$0xff]  }
 0x23a   : > { %v6818_v50 = vpop.eup %6817  ;;  %6833 = vtanh.f32 %v5950_v32  ;;  %2868 = vmatprep.subr.bf16.mxu1 %v6479_v22  ;;  %5581 = vmatprep.subr.bf16.mxu0 %v6488_v7  ;;  %v8155_v48 = vpack.c.bf16 %v6816_v36, %v6812_v28  ;;  %v6496_v22 = vld [vmem:[#allocation7 + $0x200] ss:$12 sps:$4 sm:$0xff]   ;;  %v1800_v36 = vadd.f32 %v8042_v4, %v8084_v6  ;;  %v6497_v2 = vld [vmem:[#allocation7 + $0x218] ss:$12 sps:$4 sm:$0xff]  }
 0x23b   : > { %v6820_v39 = vpop.eup %6819  ;;  %v1587_v60 = vpop.f32.mrb[16].mxu0  ;;  %6835 = vtanh.f32 %v1950_v52  ;;  %v1953_v37 = vadd.f32 %v5152_v53, %v1792_v11 }
 0x23c   : > { %v6822_v62 = vpop.eup %6821  ;;  %v5951_v3 = vadd.f32 %v1587_v60, %v8106_v59  ;;  %v1589_v5 = vpop.f32.mrb[17].mxu0  ;;  %v2130_v9 = vpack.c.bf16 %v6820_v39, %v6814_v34 }
 0x23d   : > { %v5952_v27 = vadd.f32 %v1589_v5, %v8112_v20  ;;  %v1591_v41 = vpop.f32.mrb[18].mxu0  ;;  %v2131_v23 = vpack.c.bf16 %v6822_v62, %v6818_v50  ;;  %2869 = vmatpush1.bf16.msra.mxu1 %v6477_v58  ;;  %5582 = vmatpush3.bf16.msra.mxu0 %v6488_v7  ;;  %v6824_v28 = vpop.eup %6823  ;;  %v6491_v50 = vld [vmem:[#allocation7 + $0x214] ss:$12 sps:$4 sm:$0xff]  }
 0x23e   : > { %6837 = vtanh.f32 %v5951_v3  ;;  %v5953_v13 = vadd.f32 %v1591_v41, %v8106_v59  ;;  %v1593_v16 = vpop.f32.mrb[19].mxu0  ;;  %2870 = vmatprep.subr.bf16.mxu1 %v6483_v44  ;;  %5583 = vmatprep.subr.bf16.mxu0 %v6492_v35  ;;  %v5154_v7 = vpop.f32.mrb[93].mxu1  ;;  %v6489_v41 = vld [vmem:[#allocation7 + $0x210] ss:$12 sps:$4 sm:$0xff]  }
 0x23f   : > { %6839 = vtanh.f32 %v1953_v37  ;;  %v5954_v32 = vadd.f32 %v1593_v16, %v8112_v20  ;;  %2721 = vmatprep.mubr.bf16.mxu1 %v2131_v23  ;;  %3103 = vmatprep.mubr.bf16.mxu0 %v2131_v23  ;;  %v5155_v11 = vadd.f32 %v5154_v7, %v5153_v30  ;;  %v5156_v40 = vpop.f32.mrb[94].mxu1  ;;  %v6498_v16 = vld [vmem:[#allocation7 + $0x230] ss:$12 sps:$4 sm:$0xff]   ;;  %v1808_v7 = vadd.f32 %v8046_v12, %v8084_v6 }
 0x240   : > { %v6826_v34 = vpop.eup %6825  ;;  %6841 = vtanh.f32 %v5952_v27  ;;  %2722 = vmatmul.mubr.bf16.gmra.mrb[136].mxu1 %v2130_v9  ;;  %3104 = vmatmul.mubr.bf16.gmra.mrb[72].mxu0 %v2130_v9  ;;  %v5157_v58 = vpop.f32.mrb[95].mxu1 }
 0x241   : > { %v6828_v26 = vpop.eup %6827  ;;  %6843 = vtanh.f32 %v5953_v13  ;;  %2871 = vmatpush1.bf16.msra.mxu1 %v6481_v10  ;;  %5584 = vmatpush3.bf16.msra.mxu0 %v6492_v35  ;;  %v1958_v52 = vadd.f32 %v5155_v11, %v1797_v29  ;;  %v5158_v53 = vadd.f32 %v5157_v58, %v5156_v40  ;;  %v6495_v13 = vld [vmem:[#allocation7 + $0x22c] ss:$12 sps:$4 sm:$0xff]   ;;  %v5159_v29 = vpop.f32.mrb[96].mxu1 }
 0x242   : > { %v6830_v42 = vpop.eup %6829  ;;  %6845 = vtanh.f32 %v5954_v32  ;;  %2872 = vmatprep.subr.bf16.mxu1 %v6487_v19  ;;  %5585 = vmatprep.subr.bf16.mxu0 %v6496_v22  ;;  %v8165_v44 = vpack.c.bf16 %v6828_v26, %v6824_v28  ;;  %v1805_v28 = vadd.f32 %v8044_v8, %v8084_v6  ;;  %v6493_v8 = vld [vmem:[#allocation7 + $0x228] ss:$12 sps:$4 sm:$0xff]  }
 0x243   : > { %v6832_v39 = vpop.eup %6831  ;;  %v1597_v60 = vpop.f32.mrb[20].mxu0  ;;  %6847 = vtanh.f32 %v1958_v52  ;;  %v1961_v35 = vadd.f32 %v5158_v53, %v1800_v36 }
 0x244   : > { %v6834_v4 = vpop.eup %6833  ;;  %v5955_v62 = vadd.f32 %v1597_v60, %v8106_v59  ;;  %v1599_v3 = vpop.f32.mrb[21].mxu0  ;;  %v2133_v5 = vpack.c.bf16 %v6832_v39, %v6826_v34 }
 0x245   : > { %v5956_v9 = vadd.f32 %v1599_v3, %v8112_v20  ;;  %v1601_v37 = vpop.f32.mrb[22].mxu0  ;;  %v2134_v27 = vpack.c.bf16 %v6834_v4, %v6830_v42  ;;  %2873 = vmatpush1.bf16.msra.mxu1 %v6485_v1  ;;  %5586 = vmatpush3.bf16.msra.mxu0 %v6496_v22  ;;  %v6836_v19 = vpop.eup %6835 }
 0x246   : > { %6849 = vtanh.f32 %v5955_v62  ;;  %v5957_v23 = vadd.f32 %v1601_v37, %v8106_v59  ;;  %v1603_v10 = vpop.f32.mrb[23].mxu0  ;;  %2874 = vmatprep.subr.bf16.mxu1 %v6491_v50  ;;  %5587 = vmatprep.subr.bf16.mxu0 %v6497_v2  ;;  %v5160_v22 = vpop.f32.mrb[97].mxu1  ;;  %v1813_v37 = vadd.f32 %v8048_v15, %v8084_v6 }
 0x247   : > { %6851 = vtanh.f32 %v1961_v35  ;;  %v5958_v30 = vadd.f32 %v1603_v10, %v8112_v20  ;;  %2731 = vmatprep.mubr.bf16.mxu1 %v2134_v27  ;;  %3111 = vmatprep.mubr.bf16.mxu0 %v2134_v27  ;;  %v5161_v26 = vadd.f32 %v5160_v22, %v5159_v29  ;;  %v5162_v36 = vpop.f32.mrb[98].mxu1 }
 0x248   : > { %v6838_v32 = vpop.eup %6837  ;;  %6853 = vtanh.f32 %v5956_v9  ;;  %2732 = vmatmul.mubr.bf16.gmra.mrb[140].mxu1 %v2133_v5  ;;  %3112 = vmatmul.mubr.bf16.gmra.mrb[76].mxu0 %v2133_v5  ;;  %v5163_v40 = vpop.f32.mrb[99].mxu1 }
 0x249   : > { %v6840_v34 = vpop.eup %6839  ;;  %6855 = vtanh.f32 %v5957_v23  ;;  %2875 = vmatpush1.bf16.msra.mxu1 %v6489_v41  ;;  %5588 = vmatpush3.bf16.msra.mxu0 %v6497_v2  ;;  %v1966_v58 = vadd.f32 %v5161_v26, %v1805_v28  ;;  %v5164_v50 = vadd.f32 %v5163_v40, %v5162_v36  ;;  %v5165_v27 = vpop.f32.mrb[100].mxu1 }
 0x24a   : > { %v6842_v11 = vpop.eup %6841  ;;  %6857 = vtanh.f32 %v5958_v30  ;;  %2876 = vmatprep.subr.bf16.mxu1 %v6495_v13  ;;  %5589 = vmatprep.subr.bf16.mxu0 %v6498_v16  ;;  %v8175_v1 = vpack.c.bf16 %v6840_v34, %v6836_v19  ;;  %v5166_v10 = vpop.f32.mrb[101].mxu1 }
 0x24b   : > { %v6844_v42 = vpop.eup %6843  ;;  %v1607_v39 = vpop.f32.mrb[24].mxu0  ;;  %6859 = vtanh.f32 %v1966_v58  ;;  %v1969_v4 = vadd.f32 %v5164_v50, %v1808_v7  ;;  %v5167_v19 = vadd.f32 %v5166_v10, %v5165_v27 }
 0x24c   : > { %v6846_v52 = vpop.eup %6845  ;;  %v5959_v12 = vadd.f32 %v1607_v39, %v8106_v59  ;;  %v1609_v53 = vpop.f32.mrb[25].mxu0  ;;  %v2136_v60 = vpack.c.bf16 %v6844_v42, %v6838_v32 }
 0x24d   : > { %v5960_v2 = vadd.f32 %v1609_v53, %v8112_v20  ;;  %v1611_v62 = vpop.f32.mrb[26].mxu0  ;;  %v2137_v3 = vpack.c.bf16 %v6846_v52, %v6842_v11  ;;  %2877 = vmatpush1.bf16.msra.mxu1 %v6493_v8  ;;  %5590 = vmatpush3.bf16.msra.mxu0 %v6498_v16  ;;  %v6848_v9 = vpop.eup %6847  ;;  %v1816_v16 = vadd.f32 %v8050_v18, %v8084_v6 }
 0x24e   : > { %6861 = vtanh.f32 %v5959_v12  ;;  %v5961_v5 = vadd.f32 %v1611_v62, %v8106_v59  ;;  %v1613_v35 = vpop.f32.mrb[27].mxu0  ;;  %v5168_v28 = vpop.f32.mrb[102].mxu1  ;;  %v1974_v22 = vadd.f32 %v5167_v19, %v1813_v37  ;;  %v1821_v12 = vadd.f32 %v8052_v21, %v8084_v6 }
 0x24f   : > { %6863 = vtanh.f32 %v1969_v4  ;;  %v5962_v41 = vadd.f32 %v1613_v35, %v8112_v20  ;;  %2741 = vmatprep.mubr.bf16.mxu1 %v2137_v3  ;;  %3119 = vmatprep.mubr.bf16.mxu0 %v2137_v3  ;;  %v5169_v15 = vpop.f32.mrb[103].mxu1  ;;  %v1824_v3 = vadd.f32 %v8054_v25, %v8084_v6 }
 0x250   : > { %v6850_v23 = vpop.eup %6849  ;;  %6865 = vtanh.f32 %v5960_v2  ;;  %2742 = vmatmul.mubr.bf16.gmra.mrb[144].mxu1 %v2136_v60  ;;  %3120 = vmatmul.mubr.bf16.gmra.mrb[80].mxu0 %v2136_v60  ;;  %v5170_v34 = vadd.f32 %v5169_v15, %v5168_v28  ;;  %v5171_v53 = vpop.f32.mrb[104].mxu1 }
 0x251   : > { %v6852_v13 = vpop.eup %6851  ;;  %6867 = vtanh.f32 %v5961_v5  ;;  %v5172_v2 = vpop.f32.mrb[105].mxu1 }
 0x252   : > { %v6854_v29 = vpop.eup %6853  ;;  %6869 = vtanh.f32 %v5962_v41  ;;  %v8185_v30 = vpack.c.bf16 %v6852_v13, %v6848_v9  ;;  %v1977_v40 = vadd.f32 %v5170_v34, %v1816_v16  ;;  %v5173_v5 = vadd.f32 %v5172_v2, %v5171_v53  ;;  %v5174_v35 = vpop.f32.mrb[106].mxu1 }
 0x253   : > { %v6856_v32 = vpop.eup %6855  ;;  %v1617_v7 = vpop.f32.mrb[28].mxu0  ;;  %6871 = vtanh.f32 %v1974_v22 }
 0x254   : > { %v6858_v26 = vpop.eup %6857  ;;  %v5963_v36 = vadd.f32 %v1617_v7, %v8106_v59  ;;  %v1619_v8 = vpop.f32.mrb[29].mxu0  ;;  %v2139_v11 = vpack.c.bf16 %v6856_v32, %v6850_v23  ;;  %v1982_v41 = vadd.f32 %v5173_v5, %v1821_v12 }
 0x255   : > { %v5964_v18 = vadd.f32 %v1619_v8, %v8112_v20  ;;  %v1621_v42 = vpop.f32.mrb[30].mxu0  ;;  %v2140_v58 = vpack.c.bf16 %v6858_v26, %v6854_v29  ;;  %v6860_v52 = vpop.eup %6859  ;;  %v1829_v26 = vadd.f32 %v8059_v31, %v8084_v6 }
 0x256   : > { %6873 = vtanh.f32 %v5963_v36  ;;  %v5965_v50 = vadd.f32 %v1621_v42, %v8106_v59  ;;  %v1623_v39 = vpop.f32.mrb[31].mxu0  ;;  %v5175_v21 = vpop.f32.mrb[107].mxu1  ;;  %v1832_v42 = vadd.f32 %v8061_v33, %v8084_v6 }
 0x257   : > { %6875 = vtanh.f32 %v1977_v40  ;;  %v5966_v60 = vadd.f32 %v1623_v39, %v8112_v20  ;;  %2751 = vmatprep.mubr.bf16.mxu1 %v2140_v58  ;;  %3127 = vmatprep.mubr.bf16.mxu0 %v2140_v58  ;;  %v5176_v23 = vadd.f32 %v5175_v21, %v5174_v35  ;;  %v5177_v36 = vpop.f32.mrb[108].mxu1 }
 0x258   : > { %v6862_v4 = vpop.eup %6861  ;;  %6877 = vtanh.f32 %v5964_v18  ;;  %2752 = vmatmul.mubr.bf16.gmra.mrb[148].mxu1 %v2139_v11  ;;  %3128 = vmatmul.mubr.bf16.gmra.mrb[84].mxu0 %v2139_v11  ;;  %v5178_v40 = vpop.f32.mrb[109].mxu1 }
 0x259   : > { %v6864_v62 = vpop.eup %6863  ;;  %6879 = vtanh.f32 %v5965_v50  ;;  %v1985_v29 = vadd.f32 %v5176_v23, %v1824_v3  ;;  %v5179_v58 = vadd.f32 %v5178_v40, %v5177_v36  ;;  %v5180_v50 = vpop.f32.mrb[110].mxu1 }
 0x25a   : > { %v6866_v9 = vpop.eup %6865  ;;  %6881 = vtanh.f32 %v5966_v60  ;;  %v8195_v37 = vpack.c.bf16 %v6864_v62, %v6860_v52  ;;  %v5181_v31 = vpop.f32.mrb[111].mxu1 }
 0x25b   : > { %v6868_v27 = vpop.eup %6867  ;;  %v1627_v10 = vpop.f32.mrb[32].mxu0  ;;  %6883 = vtanh.f32 %v1982_v41  ;;  %v1990_v53 = vadd.f32 %v5179_v58, %v1829_v26  ;;  %v5182_v60 = vadd.f32 %v5181_v31, %v5180_v50 }
 0x25c   : > { %v6870_v13 = vpop.eup %6869  ;;  %v5967_v16 = vadd.f32 %v1627_v10, %v8106_v59  ;;  %v1629_v19 = vpop.f32.mrb[33].mxu0  ;;  %v2142_v28 = vpack.c.bf16 %v6868_v27, %v6862_v4  ;;  %v1837_v10 = vadd.f32 %v8063_v38, %v8084_v6 }
 0x25d   : > { %v5968_v25 = vadd.f32 %v1629_v19, %v8112_v20  ;;  %v1631_v15 = vpop.f32.mrb[34].mxu0  ;;  %v2143_v32 = vpack.c.bf16 %v6870_v13, %v6866_v9  ;;  %v6872_v7 = vpop.eup %6871  ;;  %v1993_v35 = vadd.f32 %v5182_v60, %v1832_v42  ;;  %v1845_v60 = vadd.f32 %v8067_v46, %v8084_v6 }
 0x25e   : > { %6885 = vtanh.f32 %v5967_v16  ;;  %v5969_v22 = vadd.f32 %v1631_v15, %v8106_v59  ;;  %v1633_v34 = vpop.f32.mrb[35].mxu0  ;;  %v5183_v13 = vpop.f32.mrb[112].mxu1 }
 0x25f   : > { %6887 = vtanh.f32 %v1985_v29  ;;  %v5970_v8 = vadd.f32 %v1633_v34, %v8112_v20  ;;  %2761 = vmatprep.mubr.bf16.mxu1 %v2143_v32  ;;  %3135 = vmatprep.mubr.bf16.mxu0 %v2143_v32 }
 0x260   : > { %v6874_v11 = vpop.eup %6873  ;;  %6889 = vtanh.f32 %v5968_v25  ;;  %2762 = vmatmul.mubr.bf16.gmra.mrb[152].mxu1 %v2142_v28  ;;  %3136 = vmatmul.mubr.bf16.gmra.mrb[88].mxu0 %v2142_v28  ;;  %v5184_v28 = vpop.f32.mrb[113].mxu1  ;;  %v1840_v25 = vadd.f32 %v8065_v43, %v8084_v6 }
 0x261   : > { %v6876_v18 = vpop.eup %6875  ;;  %6891 = vtanh.f32 %v5969_v22  ;;  %v5185_v15 = vadd.f32 %v5184_v28, %v5183_v13  ;;  %v5186_v32 = vpop.f32.mrb[114].mxu1 }
 0x262   : > { %v6878_v39 = vpop.eup %6877  ;;  %6893 = vtanh.f32 %v5970_v8  ;;  %v8205_v52 = vpack.c.bf16 %v6876_v18, %v6872_v7  ;;  %v5187_v38 = vpop.f32.mrb[115].mxu1 }
 0x263   : > { %v6880_v12 = vpop.eup %6879  ;;  %v1637_v4 = vpop.f32.mrb[36].mxu0  ;;  %6895 = vtanh.f32 %v1990_v53  ;;  %v1998_v26 = vadd.f32 %v5185_v15, %v1837_v10  ;;  %v5188_v36 = vadd.f32 %v5187_v38, %v5186_v32 }
 0x264   : > { %v6882_v2 = vpop.eup %6881  ;;  %v5971_v62 = vadd.f32 %v1637_v4, %v8106_v59  ;;  %v1639_v3 = vpop.f32.mrb[37].mxu0  ;;  %v2145_v5 = vpack.c.bf16 %v6880_v12, %v6874_v11 }
 0x265   : > { %v5972_v33 = vadd.f32 %v1639_v3, %v8112_v20  ;;  %v1641_v9 = vpop.f32.mrb[38].mxu0  ;;  %v2146_v21 = vpack.c.bf16 %v6882_v2, %v6878_v39  ;;  %v6884_v23 = vpop.eup %6883  ;;  %v2001_v58 = vadd.f32 %v5188_v36, %v1840_v25 }
 0x266   : > { %6897 = vtanh.f32 %v5971_v62  ;;  %v5973_v27 = vadd.f32 %v1641_v9, %v8106_v59  ;;  %v1643_v41 = vpop.f32.mrb[39].mxu0  ;;  %v5189_v4 = vpop.f32.mrb[116].mxu1 }
 0x267   : > { %6899 = vtanh.f32 %v1993_v35  ;;  %v5974_v16 = vadd.f32 %v1643_v41, %v8112_v20  ;;  %2771 = vmatprep.mubr.bf16.mxu1 %v2146_v21  ;;  %3143 = vmatprep.mubr.bf16.mxu0 %v2146_v21  ;;  %v5190_v3 = vpop.f32.mrb[117].mxu1  ;;  %v1848_v35 = vadd.f32 %v8069_v49, %v8084_v6 }
 0x268   : > { %v6886_v19 = vpop.eup %6885  ;;  %6901 = vtanh.f32 %v5972_v33  ;;  %2772 = vmatmul.mubr.bf16.gmra.mrb[156].mxu1 %v2145_v5  ;;  %3144 = vmatmul.mubr.bf16.gmra.mrb[92].mxu0 %v2145_v5  ;;  %v5191_v33 = vadd.f32 %v5190_v3, %v5189_v4  ;;  %v5192_v9 = vpop.f32.mrb[118].mxu1 }
 0x269   : > { %v6888_v29 = vpop.eup %6887  ;;  %6903 = vtanh.f32 %v5973_v27  ;;  %v5193_v46 = vpop.f32.mrb[119].mxu1 }
 0x26a   : > { %v6890_v22 = vpop.eup %6889  ;;  %6905 = vtanh.f32 %v5974_v16  ;;  %v8215_v34 = vpack.c.bf16 %v6888_v29, %v6884_v23  ;;  %v2006_v23 = vadd.f32 %v5191_v33, %v1845_v60  ;;  %v5194_v10 = vadd.f32 %v5193_v46, %v5192_v9 }
 0x26b   : > { %v6892_v7 = vpop.eup %6891  ;;  %v1647_v8 = vpop.f32.mrb[40].mxu0  ;;  %6907 = vtanh.f32 %v1998_v26  ;;  %v1853_v26 = vadd.f32 %v8074_v57, %v8084_v6 }
 0x26c   : > { %v6894_v11 = vpop.eup %6893  ;;  %v5975_v40 = vadd.f32 %v1647_v8, %v8106_v59  ;;  %v1649_v18 = vpop.f32.mrb[41].mxu0  ;;  %v2148_v42 = vpack.c.bf16 %v6892_v7, %v6886_v19  ;;  %v2009_v25 = vadd.f32 %v5194_v10, %v1848_v35 }
 0x26d   : > { %v5976_v43 = vadd.f32 %v1649_v18, %v8112_v20  ;;  %v1651_v50 = vpop.f32.mrb[42].mxu0  ;;  %v2149_v39 = vpack.c.bf16 %v6894_v11, %v6890_v22  ;;  %v6896_v53 = vpop.eup %6895 }
 0x26e   : > { %6909 = vtanh.f32 %v5975_v40  ;;  %v5977_v31 = vadd.f32 %v1651_v50, %v8106_v59  ;;  %v1653_v12 = vpop.f32.mrb[43].mxu0 }
 0x26f   : > { %6911 = vtanh.f32 %v2001_v58  ;;  %v5978_v2 = vadd.f32 %v1653_v12, %v8112_v20  ;;  %2781 = vmatprep.mubr.bf16.mxu1 %v2149_v39  ;;  %3151 = vmatprep.mubr.bf16.mxu0 %v2149_v39  ;;  %v5195_v36 = vpop.f32.mrb[120].mxu1 }
 0x270   : > { %v6898_v62 = vpop.eup %6897  ;;  %6913 = vtanh.f32 %v5976_v43  ;;  %2782 = vmatmul.mubr.bf16.gmra.mrb[160].mxu1 %v2148_v42  ;;  %3152 = vmatmul.mubr.bf16.gmra.mrb[96].mxu0 %v2148_v42  ;;  %v5196_v40 = vpop.f32.mrb[121].mxu1  ;;  %v1856_v42 = vadd.f32 %v8076_v63, %v8084_v6 }
 0x271   : > { %v6900_v5 = vpop.eup %6899  ;;  %6915 = vtanh.f32 %v5977_v31  ;;  %v5197_v58 = vadd.f32 %v5196_v40, %v5195_v36  ;;  %v5198_v43 = vpop.f32.mrb[122].mxu1 }
 0x272   : > { %v6902_v21 = vpop.eup %6901  ;;  %6917 = vtanh.f32 %v5978_v2  ;;  %v8225_v27 = vpack.c.bf16 %v6900_v5, %v6896_v53  ;;  %v5199_v57 = vpop.f32.mrb[123].mxu1 }
 0x273   : > { %v6904_v41 = vpop.eup %6903  ;;  %v1657_v13 = vpop.f32.mrb[44].mxu0  ;;  %6919 = vtanh.f32 %v2006_v23  ;;  %v2014_v12 = vadd.f32 %v5197_v58, %v1853_v26  ;;  %v5200_v53 = vadd.f32 %v5199_v57, %v5198_v43 }
 0x274   : > { %v6906_v16 = vpop.eup %6905  ;;  %v5979_v19 = vadd.f32 %v1657_v13, %v8106_v59  ;;  %v1659_v28 = vpop.f32.mrb[45].mxu0  ;;  %v2151_v29 = vpack.c.bf16 %v6904_v41, %v6898_v62 }
 0x275   : > { %v5980_v49 = vadd.f32 %v1659_v28, %v8112_v20  ;;  %v1661_v15 = vpop.f32.mrb[46].mxu0  ;;  %v2152_v32 = vpack.c.bf16 %v6906_v16, %v6902_v21  ;;  %v6908_v7 = vpop.eup %6907  ;;  %v2017_v5 = vadd.f32 %v5200_v53, %v1856_v42 }
 0x276   : > { %6921 = vtanh.f32 %v5979_v19  ;;  %v5981_v22 = vadd.f32 %v1661_v15, %v8106_v59  ;;  %v1663_v38 = vpop.f32.mrb[47].mxu0 }
 0x277   : > { %6923 = vtanh.f32 %v2009_v25  ;;  %v5982_v8 = vadd.f32 %v1663_v38, %v8112_v20  ;;  %2791 = vmatprep.mubr.bf16.mxu1 %v2152_v32  ;;  %3159 = vmatprep.mubr.bf16.mxu0 %v2152_v32  ;;  %v5201_v46 = vpop.f32.mrb[124].mxu1 }
 0x278   : > { %v6910_v11 = vpop.eup %6909  ;;  %6925 = vtanh.f32 %v5980_v49  ;;  %2792 = vmatmul.mubr.bf16.gmra.mrb[164].mxu1 %v2151_v29  ;;  %3160 = vmatmul.mubr.bf16.gmra.mrb[100].mxu0 %v2151_v29  ;;  %v5202_v10 = vpop.f32.mrb[125].mxu1 }
 0x279   : > { %v6912_v18 = vpop.eup %6911  ;;  %6927 = vtanh.f32 %v5981_v22  ;;  %v5203_v16 = vadd.f32 %v5202_v10, %v5201_v46  ;;  %v5204_v19 = vpop.f32.mrb[126].mxu1 }
 0x27a   : > { %v6914_v50 = vpop.eup %6913  ;;  %6929 = vtanh.f32 %v5982_v8  ;;  %v8235_v39 = vpack.c.bf16 %v6912_v18, %v6908_v7  ;;  %v5205_v29 = vpop.f32.mrb[127].mxu1 }
 0x27b   : > { %v6916_v31 = vpop.eup %6915  ;;  %v1667_v60 = vpop.f32.mrb[48].mxu0  ;;  %6931 = vtanh.f32 %v2014_v12  ;;  %v2022_v15 = vadd.f32 %v5203_v16, %v8087_v14  ;;  %v5206_v32 = vadd.f32 %v5205_v29, %v5204_v19 }
 0x27c   : > { %v6918_v4 = vpop.eup %6917  ;;  %v5983_v2 = vadd.f32 %v1667_v60, %v8106_v59  ;;  %v1669_v62 = vpop.f32.mrb[49].mxu0  ;;  %v2154_v3 = vpack.c.bf16 %v6916_v31, %v6910_v11 }
 0x27d   : > { %v5984_v63 = vadd.f32 %v1669_v62, %v8112_v20  ;;  %v1671_v6 = vpop.f32.mrb[50].mxu0  ;;  %v2155_v35 = vpack.c.bf16 %v6918_v4, %v6914_v50  ;;  %v6920_v21 = vpop.eup %6919  ;;  %v2025_v8 = vadd.f32 %v5206_v32, %v8090_v17 }
 0x27e   : > { %6933 = vtanh.f32 %v5983_v2  ;;  %v5985_v33 = vadd.f32 %v1671_v6, %v8106_v59  ;;  %v1673_v9 = vpop.f32.mrb[51].mxu0 }
 0x27f   : > { %6935 = vtanh.f32 %v2017_v5  ;;  %v5986_v41 = vadd.f32 %v1673_v9, %v8112_v20  ;;  %2801 = vmatprep.mubr.bf16.mxu1 %v2155_v35  ;;  %3167 = vmatprep.mubr.bf16.mxu0 %v2155_v35 }
 0x280   : > { %v6922_v23 = vpop.eup %6921  ;;  %6937 = vtanh.f32 %v5984_v63  ;;  %2802 = vmatmul.mubr.bf16.gmra.mrb[168].mxu1 %v2154_v3  ;;  %3168 = vmatmul.mubr.bf16.gmra.mrb[104].mxu0 %v2154_v3 }
 0x281   : > { %v6924_v13 = vpop.eup %6923  ;;  %6939 = vtanh.f32 %v5985_v33 }
 0x282   : > { %v6926_v28 = vpop.eup %6925  ;;  %6941 = vtanh.f32 %v5986_v41  ;;  %v8241_v25 = vpack.c.bf16 %v6924_v13, %v6920_v21 }
 0x283   : > { %v6928_v49 = vpop.eup %6927  ;;  %v1677_v22 = vpop.f32.mrb[52].mxu0  ;;  %6943 = vtanh.f32 %v2022_v15 }
 0x284   : > { %v6930_v38 = vpop.eup %6929  ;;  %v5987_v7 = vadd.f32 %v1677_v22, %v8106_v59  ;;  %v1679_v26 = vpop.f32.mrb[53].mxu0  ;;  %v2157_v36 = vpack.c.bf16 %v6928_v49, %v6922_v23 }
 0x285   : > { %v5988_v11 = vadd.f32 %v1679_v26, %v8112_v20  ;;  %v1681_v40 = vpop.f32.mrb[54].mxu0  ;;  %v2158_v18 = vpack.c.bf16 %v6930_v38, %v6926_v28  ;;  %v6932_v43 = vpop.eup %6931 }
 0x286   : > { %6945 = vtanh.f32 %v5987_v7  ;;  %v5989_v42 = vadd.f32 %v1681_v40, %v8106_v59  ;;  %v1683_v58 = vpop.f32.mrb[55].mxu0 }
 0x287   : > { %6947 = vtanh.f32 %v2025_v8  ;;  %v5990_v14 = vadd.f32 %v1683_v58, %v8112_v20  ;;  %2811 = vmatprep.mubr.bf16.mxu1 %v2158_v18  ;;  %3175 = vmatprep.mubr.bf16.mxu0 %v2158_v18 }
 0x288   : > { %v6934_v50 = vpop.eup %6933  ;;  %6949 = vtanh.f32 %v5988_v11  ;;  %2812 = vmatmul.mubr.bf16.gmra.mrb[172].mxu1 %v2157_v36  ;;  %3176 = vmatmul.mubr.bf16.gmra.mrb[108].mxu0 %v2157_v36 }
 0x289   : > { %v6936_v57 = vpop.eup %6935  ;;  %6951 = vtanh.f32 %v5989_v42 }
 0x28a   : > { %v6938_v17 = vpop.eup %6937  ;;  %6953 = vtanh.f32 %v5990_v14  ;;  %v8249_v31 = vpack.c.bf16 %v6936_v57, %v6932_v43  ;;  %v6499_v57 = vld [vmem:[#allocation8 + $0x80] sm:$0xff]  }
 0x28b   : > { %v6940_v12 = vpop.eup %6939  ;;  %v1687_v53 = vpop.f32.mrb[56].mxu0  ;;  %5623 = vmatprep.subr.bf16.mxu1 %v6499_v57 }
 0x28c   : > { %v6942_v60 = vpop.eup %6941  ;;  %v5991_v4 = vadd.f32 %v1687_v53, %v8106_v59  ;;  %v1689_v2 = vpop.f32.mrb[57].mxu0  ;;  %v2160_v62 = vpack.c.bf16 %v6940_v12, %v6934_v50  ;;  %v7431_v50 = vmov 0   ;;  %v6507_v12 = vld [vmem:[#allocation8 + $0x10] sm:$0xff]   ;;  %v6508_v53 = vld [vmem:[#allocation8 + $0x98] sm:$0xff]  }
 0x28d   : > { %v5992_v3 = vadd.f32 %v1689_v2, %v8112_v20  ;;  %v1691_v5 = vpop.f32.mrb[58].mxu0  ;;  %v2161_v63 = vpack.c.bf16 %v6942_v60, %v6938_v17  ;;  %v6944_v33 = vpop.eup %6943  ;;  %v6505_v17 = vld [vmem:[#allocation8 + $0x8] sm:$0xff]   ;;  %v6510_v60 = vld [vmem:[#allocation8 + $0x18] sm:$0xff]   ;;  %v6512_v2 = vld [vmem:[#allocation8 + $0x20] sm:$0xff]  }
 0x28e   : > { %6955 = vtanh.f32 %v5991_v4  ;;  %v5993_v6 = vadd.f32 %v1691_v5, %v8106_v59  ;;  %v1693_v35 = vpop.f32.mrb[59].mxu0  ;;  %v6511_v4 = vld [vmem:[#allocation8 + $0x60] sm:$0xff]  }
 0x28f   : > { %6957 = vtanh.f32 %v5992_v3  ;;  %v5994_v9 = vadd.f32 %v1693_v35, %v8112_v20  ;;  %2821 = vmatprep.mubr.bf16.mxu1 %v2161_v63  ;;  %3183 = vmatprep.mubr.bf16.mxu0 %v2161_v63  ;;  %v6515_v3 = vld [vmem:[#allocation8 + $0x28] sm:$0xff]  }
 0x290   : > { %v6946_v21 = vpop.eup %6945  ;;  %6959 = vtanh.f32 %v5993_v6  ;;  %2822 = vmatmul.mubr.bf16.gmra.mrb[176].mxu1 %v2160_v62  ;;  %3184 = vmatmul.mubr.bf16.gmra.mrb[112].mxu0 %v2160_v62  ;;  %v6514_v62 = vld [vmem:[#allocation8 + $0x68] sm:$0xff]  }
 0x291   : > { %v6948_v46 = vpop.eup %6947  ;;  %6961 = vtanh.f32 %v5994_v9 }
 0x292   : > { %v6950_v41 = vpop.eup %6949  ;;  %v8255_v23 = vpack.c.bf16 %v6948_v46, %v6944_v33  ;;  %v6516_v46 = vld [vmem:[#allocation8 + $0x70] sm:$0xff]  }
 0x293   : > { %v6952_v10 = vpop.eup %6951  ;;  %v1697_v13 = vpop.f32.mrb[60].mxu0 }
 0x294   : > { %v6954_v16 = vpop.eup %6953  ;;  %v5995_v19 = vadd.f32 %v1697_v13, %v8106_v59  ;;  %v1699_v28 = vpop.f32.mrb[61].mxu0  ;;  %v2163_v29 = vpack.c.bf16 %v6952_v10, %v6946_v21  ;;  %v6518_v13 = vld [vmem:[#allocation8 + $0xa8] sm:$0xff]  }
 0x295   : > { %v5996_v49 = vadd.f32 %v1699_v28, %v8112_v20  ;;  %v1701_v15 = vpop.f32.mrb[62].mxu0  ;;  %v2164_v32 = vpack.c.bf16 %v6954_v16, %v6950_v41  ;;  %v6517_v41 = vld [vmem:[#allocation8 + $0x30] sm:$0xff]  }
 0x296   : > { %6963 = vtanh.f32 %v5995_v19  ;;  %v5997_v22 = vadd.f32 %v1701_v15, %v8106_v59  ;;  %v1703_v38 = vpop.f32.mrb[63].mxu0  ;;  %v6519_v15 = vld [vmem:[#allocation8 + $0x78] sm:$0xff]  }
 0x297   : > { %6965 = vtanh.f32 %v5996_v49  ;;  %v5998_v7 = vadd.f32 %v1703_v38, %v8112_v20  ;;  %2831 = vmatprep.mubr.bf16.mxu1 %v2164_v32  ;;  %3191 = vmatprep.mubr.bf16.mxu0 %v2164_v32  ;;  %v6521_v32 = vld [vmem:[#allocation8 + $0x38] sm:$0xff]  }
 0x298   : > { %v6956_v26 = vpop.eup %6955  ;;  %6967 = vtanh.f32 %v5997_v22  ;;  %2832 = vmatmul.mubr.bf16.gmra.mrb[180].mxu1 %v2163_v29  ;;  %3192 = vmatmul.mubr.bf16.gmra.mrb[116].mxu0 %v2163_v29  ;;  %v6522_v38 = vld [vmem:[#allocation8 + $0xb8] sm:$0xff]  }
 0x299   : > { %v6958_v36 = vpop.eup %6957  ;;  %6969 = vtanh.f32 %v5998_v7 }
 0x29a   : > { %v6960_v8 = vpop.eup %6959 }
 0x29b   : > { %v6962_v11 = vpop.eup %6961  ;;  %v2166_v40 = vpack.c.bf16 %v6960_v8, %v6956_v26 }
 0x29c   : > { %v2167_v18 = vpack.c.bf16 %v6962_v11, %v6958_v36 }
 0x29e   : > { %2841 = vmatprep.mubr.bf16.mxu1 %v2167_v18  ;;  %3199 = vmatprep.mubr.bf16.mxu0 %v2167_v18 }
 0x2a0   : > { %v6964_v42 = vpop.eup %6963  ;;  %2842 = vmatmul.mubr.bf16.gmra.mrb[184].mxu1 %v2166_v40  ;;  %3200 = vmatmul.mubr.bf16.gmra.mrb[120].mxu0 %v2166_v40 }
 0x2a1   : > { %v6966_v59 = vpop.eup %6965 }
 0x2a2   : > { %v6968_v58 = vpop.eup %6967 }
 0x2a3   : > { %v6970_v20 = vpop.eup %6969  ;;  %v2169_v43 = vpack.c.bf16 %v6968_v58, %v6964_v42 }
 0x2a4   : > { %v2170_v14 = vpack.c.bf16 %v6970_v20, %v6966_v59 }
 0x2a6   : > { %2851 = vmatprep.mubr.bf16.mxu1 %v2170_v14  ;;  %3207 = vmatprep.mubr.bf16.mxu0 %v2170_v14 }
 0x2a8   : > { %2852 = vmatmul.mubr.bf16.gmra.mrb[188].mxu1 %v2169_v43  ;;  %3208 = vmatmul.mubr.bf16.gmra.mrb[124].mxu0 %v2169_v43 }
 0x2a9   : > { %5591 = vmatprep.mubr.bf16.mxu0 %v8114_v24  ;;  %2894 = vmatprep.mubr.bf16.mxu1 %v7431_v50 }
 0x2b0   : > { %2895 = vmatmul.mubr.bf16.vlgmr.msra.gmra.mrb[128].mxu1 %v8114_v24  ;;  %5592 = vmatmul.mubr.bf16.vlgmr.msra.gmra.mrb[128].mxu0 %v8124_v55  ;;  %v6500_v24 = vld [vmem:[#allocation8 + $0x88] sm:$0xff]  }
 0x2b1   : > { %5595 = vmatprep.mubr.bf16.mxu0 %v8134_v45  ;;  %2904 = vmatprep.mubr.bf16.mxu1 %v7431_v50 }
 0x2b2   : > { %5624 = vmatpush3.bf16.msra.mxu1 %v6499_v57 }
 0x2b3   : > { %5625 = vmatprep.subr.bf16.mxu1 %v6500_v24 }
 0x2b6   : > { %5626 = vmatpush3.bf16.msra.mxu1 %v6500_v24 }
 0x2b8   : > { %2905 = vmatmul.mubr.bf16.gmra.mrb[132].mxu1 %v8124_v55  ;;  %5596 = vmatmul.mubr.bf16.gmra.mrb[132].mxu0 %v8145_v47  ;;  %v6501_v55 = vld [vmem:[#allocation8 + $0x40] sm:$0xff]  }
 0x2b9   : > { %5599 = vmatprep.mubr.bf16.mxu0 %v8155_v48  ;;  %2914 = vmatprep.mubr.bf16.mxu1 %v7431_v50 }
 0x2ba   : > { %5343 = vmatprep.subr.bf16.mxu0 %v6501_v55 }
 0x2c0   : > { %2915 = vmatmul.mubr.bf16.gmra.mrb[136].mxu1 %v8134_v45  ;;  %5600 = vmatmul.mubr.bf16.gmra.mrb[136].mxu0 %v8165_v44  ;;  %v6502_v45 = vld [vmem:[#allocation8] sm:$0xff]  }
 0x2c1   : > { %5603 = vmatprep.mubr.bf16.mxu0 %v8175_v1  ;;  %2924 = vmatprep.mubr.bf16.mxu1 %v7431_v50 }
 0x2c2   : > { %5344 = vmatpush3.bf16.msra.mxu0 %v6502_v45 }
 0x2c8   : > { %2925 = vmatmul.mubr.bf16.gmra.mrb[140].mxu1 %v8145_v47  ;;  %5604 = vmatmul.mubr.bf16.gmra.mrb[140].mxu0 %v8185_v30  ;;  %v6503_v47 = vld [vmem:[#allocation8 + $0x90] sm:$0xff]  }
 0x2c9   : > { %5607 = vmatprep.mubr.bf16.mxu0 %v8195_v37  ;;  %2934 = vmatprep.mubr.bf16.mxu1 %v7431_v50 }
 0x2ca   : > { %5627 = vmatprep.subr.bf16.mxu1 %v6503_v47 }
 0x2cb   : > { %5628 = vmatpush3.bf16.msra.mxu1 %v6503_v47 }
 0x2cc   : > { %5629 = vmatprep.subr.bf16.mxu1 %v6508_v53 }
 0x2cf   : > { %5630 = vmatpush3.bf16.msra.mxu1 %v6508_v53 }
 0x2d0   : > { %2935 = vmatmul.mubr.bf16.gmra.mrb[144].mxu1 %v8155_v48  ;;  %5608 = vmatmul.mubr.bf16.gmra.mrb[144].mxu0 %v8205_v52  ;;  %v6504_v48 = vld [vmem:[#allocation8 + $0x48] sm:$0xff]  }
 0x2d1   : > { %5611 = vmatprep.mubr.bf16.mxu0 %v8215_v34  ;;  %2944 = vmatprep.mubr.bf16.mxu1 %v7431_v50 }
 0x2d2   : > { %5345 = vmatprep.subr.bf16.mxu0 %v6504_v48 }
 0x2d3   : > { %5346 = vmatpush3.bf16.msra.mxu0 %v6505_v17 }
 0x2d8   : > { %2945 = vmatmul.mubr.bf16.gmra.mrb[148].mxu1 %v8165_v44  ;;  %5612 = vmatmul.mubr.bf16.gmra.mrb[148].mxu0 %v8225_v27  ;;  %v6506_v44 = vld [vmem:[#allocation8 + $0x50] sm:$0xff]  }
 0x2d9   : > { %5615 = vmatprep.mubr.bf16.mxu0 %v8235_v39  ;;  %2954 = vmatprep.mubr.bf16.mxu1 %v7431_v50 }
 0x2da   : > { %5347 = vmatprep.subr.bf16.mxu0 %v6506_v44 }
 0x2db   : > { %5348 = vmatpush3.bf16.msra.mxu0 %v6507_v12 }
 0x2e0   : > { %2955 = vmatmul.mubr.bf16.gmra.mrb[152].mxu1 %v8175_v1  ;;  %5616 = vmatmul.mubr.bf16.gmra.mrb[152].mxu0 %v8241_v25  ;;  %v6509_v1 = vld [vmem:[#allocation8 + $0x58] sm:$0xff]  }
 0x2e1   : > { %5619 = vmatprep.mubr.bf16.mxu0 %v8249_v31  ;;  %2964 = vmatprep.mubr.bf16.mxu1 %v7431_v50 }
 0x2e2   : > { %5349 = vmatprep.subr.bf16.mxu0 %v6509_v1 }
 0x2e3   : > { %5350 = vmatpush3.bf16.msra.mxu0 %v6510_v60 }
 0x2e4   : > { %5351 = vmatprep.subr.bf16.mxu0 %v6511_v4 }
 0x2e7   : > { %5352 = vmatpush3.bf16.msra.mxu0 %v6512_v2 }
 0x2e8   : > { %2965 = vmatmul.mubr.bf16.gmra.mrb[156].mxu1 %v8185_v30  ;;  %5620 = vmatmul.mubr.bf16.gmra.mrb[156].mxu0 %v8255_v23  ;;  %v6513_v30 = vld [vmem:[#allocation8 + $0xa0] sm:$0xff]  }
 0x2e9   : > { %2974 = vmatprep.mubr.bf16.mxu1 %v7431_v50  ;;  %5631 = vmatprep.subr.bf16.mxu1 %v6513_v30 }
 0x2ea   : > { %5632 = vmatpush3.bf16.msra.mxu1 %v6513_v30  ;;  %5353 = vmatprep.subr.bf16.mxu0 %v6514_v62 }
 0x2eb   : > { %5354 = vmatpush3.bf16.msra.mxu0 %v6515_v3  ;;  %5633 = vmatprep.subr.bf16.mxu1 %v6518_v13 }
 0x2ec   : > { %5355 = vmatprep.subr.bf16.mxu0 %v6516_v46 }
 0x2ee   : > { %5634 = vmatpush3.bf16.msra.mxu1 %v6518_v13 }
 0x2ef   : > { %5356 = vmatpush3.bf16.msra.mxu0 %v6517_v41 }
 0x2f0   : > { %2975 = vmatmul.mubr.bf16.gmra.mrb[160].mxu1 %v8195_v37  ;;  %5357 = vmatprep.subr.bf16.mxu0 %v6519_v15 }
 0x2f1   : > { %2984 = vmatprep.mubr.bf16.mxu1 %v7431_v50 }
 0x2f3   : > { %5358 = vmatpush3.bf16.msra.mxu0 %v6521_v32 }
 0x2f8   : > { %2985 = vmatmul.mubr.bf16.gmra.mrb[164].mxu1 %v8205_v52 }
 0x2f9   : > { %2994 = vmatprep.mubr.bf16.mxu1 %v7431_v50 }
 0x300   : > { %2995 = vmatmul.mubr.bf16.gmra.mrb[168].mxu1 %v8215_v34 }
 0x301   : > { %3004 = vmatprep.mubr.bf16.mxu1 %v7431_v50 }
 0x303   : > { %v5223_v37 = vpop.f32.mrb[64].mxu0 }
 0x304   : > { %v5224_v5 = vpop.f32.mrb[65].mxu0 }
 0x305   : > { %v8300_v63 = vadd.f32 %v5224_v5, %v5223_v37  ;;  %v5226_v52 = vpop.f32.mrb[66].mxu0 }
 0x306   : > { %v5227_v6 = vpop.f32.mrb[67].mxu0 }
 0x307   : > { %v8302_v35 = vadd.f32 %v5227_v6, %v5226_v52 }
 0x308   : > { %3005 = vmatmul.mubr.bf16.gmra.mrb[172].mxu1 %v8225_v27  ;;  %v6520_v27 = vld [vmem:[#allocation8 + $0xb0] sm:$0xff]  }
 0x309   : > { %3014 = vmatprep.mubr.bf16.mxu1 %v7431_v50  ;;  %5635 = vmatprep.subr.bf16.mxu1 %v6520_v27 }
 0x30a   : > { %5636 = vmatpush3.bf16.msra.mxu1 %v6520_v27 }
 0x30b   : > { %v5229_v33 = vpop.f32.mrb[68].mxu0  ;;  %5637 = vmatprep.subr.bf16.mxu1 %v6522_v38 }
 0x30c   : > { %v5230_v9 = vpop.f32.mrb[69].mxu0 }
 0x30d   : > { %v8306_v21 = vadd.f32 %v5230_v9, %v5229_v33  ;;  %v5232_v34 = vpop.f32.mrb[70].mxu0 }
 0x30e   : > { %v5233_v10 = vpop.f32.mrb[71].mxu0  ;;  %5638 = vmatpush3.bf16.msra.mxu1 %v6522_v38 }
 0x30f   : > { %v8308_v16 = vadd.f32 %v5233_v10, %v5232_v34 }
 0x310   : > { %3015 = vmatmul.mubr.bf16.gmra.mrb[176].mxu1 %v8235_v39 }
 0x311   : > { %3024 = vmatprep.mubr.bf16.mxu1 %v7431_v50 }
 0x313   : > { %v5235_v19 = vpop.f32.mrb[72].mxu0 }
 0x314   : > { %v5236_v28 = vpop.f32.mrb[73].mxu0 }
 0x315   : > { %v8312_v29 = vadd.f32 %v5236_v28, %v5235_v19  ;;  %v5238_v49 = vpop.f32.mrb[74].mxu0 }
 0x316   : > { %v5239_v22 = vpop.f32.mrb[75].mxu0 }
 0x317   : > { %v8314_v7 = vadd.f32 %v5239_v22, %v5238_v49 }
 0x318   : > { %3025 = vmatmul.mubr.bf16.gmra.mrb[180].mxu1 %v8241_v25 }
 0x319   : > { %3034 = vmatprep.mubr.bf16.mxu1 %v7431_v50 }
 0x31b   : > { %v5241_v39 = vpop.f32.mrb[76].mxu0 }
 0x31c   : > { %v5242_v26 = vpop.f32.mrb[77].mxu0 }
 0x31d   : > { %v8318_v36 = vadd.f32 %v5242_v26, %v5241_v39  ;;  %v5244_v8 = vpop.f32.mrb[78].mxu0 }
 0x31e   : > { %v5245_v11 = vpop.f32.mrb[79].mxu0 }
 0x31f   : > { %v8320_v40 = vadd.f32 %v5245_v11, %v5244_v8 }
 0x320   : > { %3035 = vmatmul.mubr.bf16.gmra.mrb[184].mxu1 %v8249_v31 }
 0x321   : > { %3044 = vmatprep.mubr.bf16.mxu1 %v7431_v50 }
 0x323   : > { %v5247_v18 = vpop.f32.mrb[80].mxu0 }
 0x324   : > { %v5248_v42 = vpop.f32.mrb[81].mxu0 }
 0x325   : > { %v8324_v25 = vadd.f32 %v5248_v42, %v5247_v18  ;;  %v5250_v59 = vpop.f32.mrb[82].mxu0 }
 0x326   : > { %v5251_v58 = vpop.f32.mrb[83].mxu0 }
 0x327   : > { %v8326_v20 = vadd.f32 %v5251_v58, %v5250_v59 }
 0x328   : > { %3045 = vmatmul.mubr.bf16.gmra.mrb[188].mxu1 %v8255_v23 }
 0x32b   : > { %v5253_v43 = vpop.f32.mrb[84].mxu0 }
 0x32c   : > { %v5254_v14 = vpop.f32.mrb[85].mxu0 }
 0x32d   : > { %v8329_v57 = vadd.f32 %v5254_v14, %v5253_v43  ;;  %v5256_v24 = vpop.f32.mrb[86].mxu0 }
 0x32e   : > { %v5257_v55 = vpop.f32.mrb[87].mxu0 }
 0x32f   : > { %v8331_v45 = vadd.f32 %v5257_v55, %v5256_v24 }
 0x333   : > { %v5259_v31 = vpop.f32.mrb[88].mxu0 }
 0x334   : > { %v5260_v50 = vpop.f32.mrb[89].mxu0 }
 0x335   : > { %v8333_v47 = vadd.f32 %v5260_v50, %v5259_v31  ;;  %v5262_v48 = vpop.f32.mrb[90].mxu0 }
 0x336   : > { %v5263_v17 = vpop.f32.mrb[91].mxu0 }
 0x337   : > { %v8335_v44 = vadd.f32 %v5263_v17, %v5262_v48 }
 0x33b   : > { %v5265_v12 = vpop.f32.mrb[92].mxu0 }
 0x33c   : > { %v5266_v53 = vpop.f32.mrb[93].mxu0 }
 0x33d   : > { %v8337_v1 = vadd.f32 %v5266_v53, %v5265_v12  ;;  %v5268_v23 = vpop.f32.mrb[94].mxu0 }
 0x33e   : > { %v5269_v60 = vpop.f32.mrb[95].mxu0 }
 0x33f   : > { %v8339_v4 = vadd.f32 %v5269_v60, %v5268_v23 }
 0x343   : > { %v5271_v2 = vpop.f32.mrb[96].mxu0 }
 0x344   : > { %v5272_v30 = vpop.f32.mrb[97].mxu0 }
 0x345   : > { %v8341_v62 = vadd.f32 %v5272_v30, %v5271_v2  ;;  %v5274_v3 = vpop.f32.mrb[98].mxu0  ;;  %v2268_v30 = vld [vmem:[%s9039_s4] sm:$0x7] }
 0x346   : > { %v5275_v37 = vpop.f32.mrb[99].mxu0 }
 0x347   : > { %v8343_v5 = vadd.f32 %v5275_v37, %v5274_v3 }
 0x34b   : > { %v5277_v52 = vpop.f32.mrb[100].mxu0 }
 0x34c   : > { %v5278_v6 = vpop.f32.mrb[101].mxu0 }
 0x34d   : > { %v8345_v33 = vadd.f32 %v5278_v6, %v5277_v52  ;;  %v5280_v9 = vpop.f32.mrb[102].mxu0 }
 0x34e   : > { %v5281_v34 = vpop.f32.mrb[103].mxu0 }
 0x34f   : > { %v8347_v46 = vadd.f32 %v5281_v34, %v5280_v9  ;;  %v8378_v9 = vrot.slane %v2268_v30, %v803_v0  ;;  %v8382_v34 = vrot.slane %v2268_v30, %v795_v54 }
 0x351   : > { %v3101_v54 = vadd.f32 %v8308_v16, %v8378_v9  ;;  %v3114_v16 = vadd.f32 %v8318_v36, %v8378_v9 }
 0x353   : > { %v5283_v41 = vpop.f32.mrb[104].mxu0 }
 0x354   : > { %v5284_v10 = vpop.f32.mrb[105].mxu0 }
 0x355   : > { %v8349_v13 = vadd.f32 %v5284_v10, %v5283_v41  ;;  %v5286_v27 = vpop.f32.mrb[106].mxu0  ;;  %v8386_v41 = vrot.slane %v2268_v30, %v799_v61  ;;  %v3098_v10 = vadd.f32 %v8306_v21, %v8378_v9  ;;  %v3093_v21 = vadd.f32 %v8302_v35, %v8378_v9 }
 0x356   : > { %v5287_v19 = vpop.f32.mrb[107].mxu0  ;;  %v3106_v35 = vadd.f32 %v8312_v29, %v8378_v9  ;;  %v3117_v30 = vadd.f32 %v8320_v40, %v8378_v9 }
 0x357   : > { %v8351_v28 = vadd.f32 %v5287_v19, %v5286_v27 }
 0x35b   : > { %v5289_v49 = vpop.f32.mrb[108].mxu0 }
 0x35c   : > { %v5290_v15 = vpop.f32.mrb[109].mxu0 }
 0x35d   : > { %v8353_v32 = vadd.f32 %v5290_v15, %v5289_v49  ;;  %v5292_v22 = vpop.f32.mrb[110].mxu0  ;;  %v3090_v49 = vadd.f32 %v8300_v63, %v8378_v9 }
 0x35e   : > { %v5293_v38 = vpop.f32.mrb[111].mxu0 }
 0x35f   : > { %v8355_v39 = vadd.f32 %v5293_v38, %v5292_v22 }
 0x363   : > { %v5295_v26 = vpop.f32.mrb[112].mxu0 }
 0x364   : > { %v5296_v8 = vpop.f32.mrb[113].mxu0 }
 0x365   : > { %v8357_v11 = vadd.f32 %v5296_v8, %v5295_v26  ;;  %v5298_v18 = vpop.f32.mrb[114].mxu0 }
 0x366   : > { %v5299_v42 = vpop.f32.mrb[115].mxu0 }
 0x367   : > { %v8359_v59 = vadd.f32 %v5299_v42, %v5298_v18 }
 0x36b   : > { %v5301_v58 = vpop.f32.mrb[116].mxu0 }
 0x36c   : > { %v5302_v43 = vpop.f32.mrb[117].mxu0 }
 0x36d   : > { %v8361_v14 = vadd.f32 %v5302_v43, %v5301_v58  ;;  %v5304_v24 = vpop.f32.mrb[118].mxu0 }
 0x36e   : > { %v5305_v55 = vpop.f32.mrb[119].mxu0 }
 0x36f   : > { %v8363_v31 = vadd.f32 %v5305_v55, %v5304_v24 }
 0x373   : > { %v5307_v50 = vpop.f32.mrb[120].mxu0 }
 0x374   : > { %v5308_v48 = vpop.f32.mrb[121].mxu0 }
 0x375   : > { %v8365_v17 = vadd.f32 %v5308_v48, %v5307_v50  ;;  %v5310_v12 = vpop.f32.mrb[122].mxu0 }
 0x376   : > { %v5311_v53 = vpop.f32.mrb[123].mxu0 }
 0x377   : > { %v8367_v23 = vadd.f32 %v5311_v53, %v5310_v12 }
 0x37b   : > { %v5313_v60 = vpop.f32.mrb[124].mxu0 }
 0x37c   : > { %v5314_v2 = vpop.f32.mrb[125].mxu0 }
 0x37d   : > { %v8372_v3 = vadd.f32 %v5314_v2, %v5313_v60  ;;  %v5316_v37 = vpop.f32.mrb[126].mxu0 }
 0x37e   : > { %v5317_v52 = vpop.f32.mrb[127].mxu0 }
 0x37f   : > { %v8374_v6 = vadd.f32 %v5317_v52, %v5316_v37 }
 0x383   : > { %v2896_v27 = vpop.f32.mrb[128].mxu1  ;;  %v5593_v19 = vpop.f32.mrb[128].mxu0 }
 0x384   : > { %v5999_v15 = vadd.f32 %v2896_v27, %v8382_v34  ;;  %v3259_v0 = vadd.f32 %v5593_v19, %v3098_v10  ;;  %v2898_v22 = vpop.f32.mrb[129].mxu1  ;;  %v3250_v38 = vpop.f32.mrb[129].mxu0  ;;  %v3109_v27 = vadd.f32 %v8314_v7, %v8378_v9 }
 0x385   : > { %v6000_v26 = vadd.f32 %v2898_v22, %v8386_v41  ;;  %v3251_v61 = vadd.f32 %v3250_v38, %v3090_v49  ;;  %v2900_v8 = vpop.f32.mrb[130].mxu1  ;;  %v5594_v18 = vpop.f32.mrb[130].mxu0 }
 0x386   : > { %6971 = vtanh.f32 %v5999_v15  ;;  %v6001_v42 = vadd.f32 %v2900_v8, %v8382_v34  ;;  %v3262_v63 = vadd.f32 %v5594_v18, %v3101_v54  ;;  %v2902_v58 = vpop.f32.mrb[131].mxu1  ;;  %v3253_v43 = vpop.f32.mrb[131].mxu0  ;;  %v3122_v18 = vadd.f32 %v8324_v25, %v8378_v9 }
 0x387   : > { %6973 = vtanh.f32 %v3259_v0  ;;  %v3254_v24 = vadd.f32 %v3253_v43, %v3093_v21  ;;  %v6002_v55 = vadd.f32 %v2902_v58, %v8386_v41  ;;  %v3125_v21 = vadd.f32 %v8326_v20, %v8378_v9 }
 0x388   : > { %6975 = vtanh.f32 %v6000_v26  ;;  %v3130_v26 = vadd.f32 %v8329_v57, %v8378_v9  ;;  %v3133_v57 = vadd.f32 %v8331_v45, %v8378_v9 }
 0x389   : > { %6977 = vtanh.f32 %v3251_v61 }
 0x38a   : > { %6979 = vtanh.f32 %v6001_v42 }
 0x38b   : > { %6981 = vtanh.f32 %v3262_v63  ;;  %v2906_v50 = vpop.f32.mrb[132].mxu1  ;;  %v5597_v48 = vpop.f32.mrb[132].mxu0 }
 0x38c   : > { %6983 = vtanh.f32 %v6002_v55  ;;  %v6003_v12 = vadd.f32 %v2906_v50, %v8382_v34  ;;  %v3275_v53 = vadd.f32 %v5597_v48, %v3114_v16  ;;  %v2908_v60 = vpop.f32.mrb[133].mxu1  ;;  %v3266_v2 = vpop.f32.mrb[133].mxu0 }
 0x38d   : > { %6985 = vtanh.f32 %v3254_v24  ;;  %v6004_v37 = vadd.f32 %v2908_v60, %v8386_v41  ;;  %v3267_v52 = vadd.f32 %v3266_v2, %v3106_v35  ;;  %v2910_v36 = vpop.f32.mrb[134].mxu1  ;;  %v5598_v10 = vpop.f32.mrb[134].mxu0 }
 0x38e   : > { %6987 = vtanh.f32 %v6003_v12  ;;  %v6005_v29 = vadd.f32 %v2910_v36, %v8382_v34  ;;  %v3278_v19 = vadd.f32 %v5598_v10, %v3117_v30  ;;  %v2912_v49 = vpop.f32.mrb[135].mxu1  ;;  %v3269_v15 = vpop.f32.mrb[135].mxu0 }
 0x38f   : > { %6989 = vtanh.f32 %v3275_v53  ;;  %v3270_v0 = vadd.f32 %v3269_v15, %v3109_v27  ;;  %v6006_v40 = vadd.f32 %v2912_v49, %v8386_v41  ;;  %v3146_v49 = vadd.f32 %v8337_v1, %v8378_v9 }
 0x390   : > { %v6972_v22 = vpop.eup %6971  ;;  %6991 = vtanh.f32 %v6004_v37  ;;  %v3149_v1 = vadd.f32 %v8339_v4, %v8378_v9 }
 0x391   : > { %v6974_v38 = vpop.eup %6973  ;;  %6993 = vtanh.f32 %v3267_v52 }
 0x392   : > { %v6976_v54 = vpop.eup %6975  ;;  %6995 = vtanh.f32 %v6005_v29 }
 0x393   : > { %v6978_v7 = vpop.eup %6977  ;;  %6997 = vtanh.f32 %v3278_v19  ;;  %v2916_v61 = vpop.f32.mrb[136].mxu1 }
 0x394   : > { %v5601_v8 = vpop.f32.mrb[136].mxu0  ;;  %v6980_v42 = vpop.eup %6979  ;;  %6999 = vtanh.f32 %v6006_v40  ;;  %v6007_v63 = vadd.f32 %v2916_v61, %v8382_v34  ;;  %v3138_v40 = vadd.f32 %v8333_v47, %v8378_v9 }
 0x395   : > { %v3291_v58 = vadd.f32 %v5601_v8, %v3130_v26  ;;  %v2918_v43 = vpop.f32.mrb[137].mxu1  ;;  %v3282_v24 = vpop.f32.mrb[137].mxu0  ;;  %7001 = vtanh.f32 %v3270_v0  ;;  %v3473_v35 = vpack.c.bf16 %v6980_v42, %v6972_v22 }
 0x396   : > { %v6982_v55 = vpop.eup %6981  ;;  %v6008_v16 = vadd.f32 %v2918_v43, %v8386_v41  ;;  %v3283_v50 = vadd.f32 %v3282_v24, %v3122_v18  ;;  %v2920_v48 = vpop.f32.mrb[138].mxu1  ;;  %7003 = vtanh.f32 %v6007_v63 }
 0x397   : > { %v5602_v25 = vpop.f32.mrb[138].mxu0  ;;  %v6984_v12 = vpop.eup %6983  ;;  %v6009_v20 = vadd.f32 %v2920_v48, %v8382_v34  ;;  %v3478_v30 = vpack.c.bf16 %v6982_v55, %v6974_v38  ;;  %7005 = vtanh.f32 %v3291_v58  ;;  %v3141_v38 = vadd.f32 %v8335_v44, %v8378_v9 }
 0x398   : > { %v3294_v53 = vadd.f32 %v5602_v25, %v3133_v57  ;;  %v2922_v60 = vpop.f32.mrb[139].mxu1  ;;  %v3285_v2 = vpop.f32.mrb[139].mxu0  ;;  %v3474_v45 = vpack.c.bf16 %v6984_v12, %v6976_v54  ;;  %7007 = vtanh.f32 %v6008_v16 }
 0x399   : > { %v6986_v37 = vpop.eup %6985  ;;  %v3286_v52 = vadd.f32 %v3285_v2, %v3125_v21  ;;  %v6010_v10 = vadd.f32 %v2922_v60, %v8386_v41  ;;  %7009 = vtanh.f32 %v3283_v50  ;;  %v3162_v60 = vadd.f32 %v8345_v33, %v8378_v9 }
 0x39a   : > { %v6988_v36 = vpop.eup %6987  ;;  %v3475_v27 = vpack.c.bf16 %v6986_v37, %v6978_v7  ;;  %3752 = vmatprep.mubr.bf16.mxu0 %v3474_v45  ;;  %7011 = vtanh.f32 %v6009_v20  ;;  %v3157_v45 = vadd.f32 %v8343_v5, %v8378_v9  ;;  %v3165_v33 = vadd.f32 %v8347_v46, %v8378_v9 }
 0x39b   : > { %v6990_v29 = vpop.eup %6989  ;;  %3753 = vmatmul.mubr.bf16.vlgmr.msra.gmra.mrb[160].mxu0 %v3473_v35  ;;  %7013 = vtanh.f32 %v3294_v53  ;;  %v2926_v0 = vpop.f32.mrb[140].mxu1 }
 0x39c   : > { %v6992_v19 = vpop.eup %6991  ;;  %5639 = vmatprep.mubr.bf16.mxu1 %v3475_v27  ;;  %v5605_v22 = vpop.f32.mrb[140].mxu0  ;;  %7015 = vtanh.f32 %v6010_v10  ;;  %v6011_v26 = vadd.f32 %v2926_v0, %v8382_v34 }
 0x39d   : > { %v6994_v15 = vpop.eup %6993  ;;  %5640 = vmatmul.mubr.bf16.vlgmr.msra.gmra.mrb[192].mxu1 %v3478_v30  ;;  %v3307_v7 = vadd.f32 %v5605_v22, %v3146_v49  ;;  %v2928_v61 = vpop.f32.mrb[141].mxu1  ;;  %7017 = vtanh.f32 %v3286_v52  ;;  %v3154_v52 = vadd.f32 %v8341_v62, %v8378_v9 }
 0x39e   : > { %v6996_v54 = vpop.eup %6995  ;;  %v3298_v8 = vpop.f32.mrb[141].mxu0  ;;  %v6012_v21 = vadd.f32 %v2928_v61, %v8386_v41  ;;  %7019 = vtanh.f32 %v6011_v26 }
 0x39f   : > { %v6998_v18 = vpop.eup %6997  ;;  %v3299_v42 = vadd.f32 %v3298_v8, %v3138_v40  ;;  %v2930_v63 = vpop.f32.mrb[142].mxu1  ;;  %v3476_v58 = vpack.c.bf16 %v6996_v54, %v6988_v36  ;;  %7021 = vtanh.f32 %v3307_v7 }
 0x3a0   : > { %v5606_v47 = vpop.f32.mrb[142].mxu0  ;;  %v7000_v43 = vpop.eup %6999  ;;  %v6013_v44 = vadd.f32 %v2930_v63, %v8382_v34  ;;  %v3484_v16 = vpack.c.bf16 %v6998_v18, %v6990_v29  ;;  %7023 = vtanh.f32 %v6012_v21 }
 0x3a1   : > { %v3310_v24 = vadd.f32 %v5606_v47, %v3149_v1  ;;  %v2932_v57 = vpop.f32.mrb[143].mxu1  ;;  %v3301_v55 = vpop.f32.mrb[143].mxu0  ;;  %v3477_v4 = vpack.c.bf16 %v7000_v43, %v6992_v19  ;;  %7025 = vtanh.f32 %v3299_v42 }
 0x3a2   : > { %v7002_v50 = vpop.eup %7001  ;;  %v3302_v48 = vadd.f32 %v3301_v55, %v3141_v38  ;;  %v6014_v35 = vadd.f32 %v2932_v57, %v8386_v41  ;;  %7027 = vtanh.f32 %v6013_v44  ;;  %v3170_v57 = vadd.f32 %v8349_v13, %v8378_v9 }
 0x3a3   : > { %v7004_v25 = vpop.eup %7003  ;;  %v3481_v12 = vpack.c.bf16 %v7002_v50, %v6994_v15  ;;  %3760 = vmatprep.mubr.bf16.mxu0 %v3477_v4  ;;  %7029 = vtanh.f32 %v3310_v24  ;;  %v2936_v30 = vpop.f32.mrb[144].mxu1  ;;  %v3173_v55 = vadd.f32 %v8351_v28, %v8378_v9 }
 0x3a4   : > { %v7006_v20 = vpop.eup %7005  ;;  %3761 = vmatmul.mubr.bf16.gmra.mrb[164].mxu0 %v3476_v58  ;;  %v5609_v37 = vpop.f32.mrb[144].mxu0  ;;  %7031 = vtanh.f32 %v6014_v35  ;;  %v6015_v10 = vadd.f32 %v2936_v30, %v8382_v34  ;;  %v3178_v58 = vadd.f32 %v8353_v32, %v8378_v9  ;;  %v3181_v32 = vadd.f32 %v8355_v39, %v8378_v9 }
 0x3a5   : > { %v7008_v53 = vpop.eup %7007  ;;  %5643 = vmatprep.mubr.bf16.mxu1 %v3481_v12  ;;  %v3323_v27 = vadd.f32 %v5609_v37, %v3162_v60  ;;  %v2938_v29 = vpop.f32.mrb[145].mxu1  ;;  %7033 = vtanh.f32 %v3302_v48 }
 0x3a6   : > { %v7010_v2 = vpop.eup %7009  ;;  %5644 = vmatmul.mubr.bf16.gmra.mrb[196].mxu1 %v3484_v16  ;;  %v3314_v19 = vpop.f32.mrb[145].mxu0  ;;  %v6016_v15 = vadd.f32 %v2938_v29, %v8386_v41  ;;  %7035 = vtanh.f32 %v6015_v10 }
 0x3a7   : > { %v7012_v36 = vpop.eup %7011  ;;  %v3315_v0 = vadd.f32 %v3314_v19, %v3154_v52  ;;  %v2940_v22 = vpop.f32.mrb[146].mxu1  ;;  %7037 = vtanh.f32 %v3323_v27 }
 0x3a8   : > { %v7014_v49 = vpop.eup %7013  ;;  %v5610_v62 = vpop.f32.mrb[146].mxu0  ;;  %v3479_v40 = vpack.c.bf16 %v7012_v36, %v7004_v25  ;;  %v6017_v5 = vadd.f32 %v2940_v22, %v8382_v34  ;;  %7039 = vtanh.f32 %v6016_v15  ;;  %v3194_v15 = vadd.f32 %v8361_v14, %v8378_v9 }
 0x3a9   : > { %v7016_v38 = vpop.eup %7015  ;;  %v3326_v54 = vadd.f32 %v5610_v62, %v3165_v33  ;;  %v2942_v26 = vpop.f32.mrb[147].mxu1  ;;  %v3490_v61 = vpack.c.bf16 %v7014_v49, %v7006_v20  ;;  %7041 = vtanh.f32 %v3315_v0  ;;  %v3197_v14 = vadd.f32 %v8363_v31, %v8378_v9 }
 0x3aa   : > { %v3317_v7 = vpop.f32.mrb[147].mxu0  ;;  %v7018_v8 = vpop.eup %7017  ;;  %v3480_v46 = vpack.c.bf16 %v7016_v38, %v7008_v53  ;;  %v6018_v21 = vadd.f32 %v2942_v26, %v8386_v41  ;;  %7043 = vtanh.f32 %v6017_v5  ;;  %v3189_v38 = vadd.f32 %v8359_v59, %v8378_v9 }
 0x3ab   : > { %v3318_v1 = vadd.f32 %v3317_v7, %v3157_v45  ;;  %v7020_v18 = vpop.eup %7019  ;;  %v3487_v42 = vpack.c.bf16 %v7018_v8, %v7010_v2  ;;  %7045 = vtanh.f32 %v3326_v54  ;;  %v2946_v44 = vpop.f32.mrb[148].mxu1 }
 0x3ac   : > { %v7022_v63 = vpop.eup %7021  ;;  %3768 = vmatprep.mubr.bf16.mxu0 %v3480_v46  ;;  %v5613_v24 = vpop.f32.mrb[148].mxu0  ;;  %7047 = vtanh.f32 %v6018_v21  ;;  %v6019_v50 = vadd.f32 %v2946_v44, %v8382_v34 }
 0x3ad   : > { %v7024_v47 = vpop.eup %7023  ;;  %5647 = vmatprep.mubr.bf16.mxu1 %v3487_v42  ;;  %3769 = vmatmul.mubr.bf16.gmra.mrb[168].mxu0 %v3479_v40  ;;  %v3339_v48 = vadd.f32 %v5613_v24, %v3178_v58  ;;  %v2948_v4 = vpop.f32.mrb[149].mxu1  ;;  %7049 = vtanh.f32 %v3318_v1  ;;  %v3186_v40 = vadd.f32 %v8357_v11, %v8378_v9 }
 0x3ae   : > { %v7026_v43 = vpop.eup %7025  ;;  %5648 = vmatmul.mubr.bf16.gmra.mrb[200].mxu1 %v3490_v61  ;;  %v3330_v25 = vpop.f32.mrb[149].mxu0  ;;  %v6020_v12 = vadd.f32 %v2948_v4, %v8386_v41  ;;  %7051 = vtanh.f32 %v6019_v50  ;;  %v3210_v4 = vadd.f32 %v8372_v3, %v8378_v9  ;;  %v3213_v3 = vadd.f32 %v8374_v6, %v8378_v9 }
 0x3af   : > { %v7028_v16 = vpop.eup %7027  ;;  %v3331_v20 = vadd.f32 %v3330_v25, %v3170_v57  ;;  %v2950_v53 = vpop.f32.mrb[150].mxu1  ;;  %7053 = vtanh.f32 %v3339_v48 }
 0x3b0   : > { %v7030_v35 = vpop.eup %7029  ;;  %v5614_v13 = vpop.f32.mrb[150].mxu0  ;;  %v3482_v60 = vpack.c.bf16 %v7028_v16, %v7020_v18  ;;  %v6021_v28 = vadd.f32 %v2950_v53, %v8382_v34  ;;  %7055 = vtanh.f32 %v6020_v12  ;;  %v3202_v12 = vadd.f32 %v8365_v17, %v8378_v9 }
 0x3b1   : > { %v7032_v2 = vpop.eup %7031  ;;  %v3342_v30 = vadd.f32 %v5614_v13, %v3181_v32  ;;  %v2952_v37 = vpop.f32.mrb[151].mxu1  ;;  %v3496_v45 = vpack.c.bf16 %v7030_v35, %v7022_v63  ;;  %7057 = vtanh.f32 %v3331_v20  ;;  %v3205_v20 = vadd.f32 %v8367_v23, %v8378_v9 }
 0x3b2   : > { %v3333_v52 = vpop.f32.mrb[151].mxu0  ;;  %v7034_v36 = vpop.eup %7033  ;;  %v3483_v39 = vpack.c.bf16 %v7032_v2, %v7024_v47  ;;  %v6022_v29 = vadd.f32 %v2952_v37, %v8386_v41  ;;  %7059 = vtanh.f32 %v6021_v28 }
 0x3b3   : > { %v3334_v10 = vadd.f32 %v3333_v52, %v3173_v55  ;;  %v7036_v27 = vpop.eup %7035  ;;  %v3493_v19 = vpack.c.bf16 %v7034_v36, %v7026_v43  ;;  %7061 = vtanh.f32 %v3342_v30  ;;  %v2956_v22 = vpop.f32.mrb[152].mxu1 }
 0x3b4   : > { %v7038_v33 = vpop.eup %7037  ;;  %3776 = vmatprep.mubr.bf16.mxu0 %v3483_v39  ;;  %v5617_v62 = vpop.f32.mrb[152].mxu0  ;;  %7063 = vtanh.f32 %v6022_v29  ;;  %v6023_v54 = vadd.f32 %v2956_v22, %v8382_v34 }
 0x3b5   : > { %v7040_v49 = vpop.eup %7039  ;;  %5651 = vmatprep.mubr.bf16.mxu1 %v3493_v19  ;;  %3777 = vmatmul.mubr.bf16.gmra.mrb[172].mxu0 %v3482_v60  ;;  %v3355_v26 = vadd.f32 %v5617_v62, %v3194_v15  ;;  %v2958_v7 = vpop.f32.mrb[153].mxu1  ;;  %7065 = vtanh.f32 %v3334_v10 }
 0x3b6   : > { %v7042_v0 = vpop.eup %7041  ;;  %5652 = vmatmul.mubr.bf16.gmra.mrb[204].mxu1 %v3496_v45  ;;  %v3346_v61 = vpop.f32.mrb[153].mxu0  ;;  %v6024_v1 = vadd.f32 %v2958_v7, %v8386_v41  ;;  %7067 = vtanh.f32 %v6023_v54 }
 0x3b7   : > { %v7044_v5 = vpop.eup %7043  ;;  %v3347_v46 = vadd.f32 %v3346_v61, %v3186_v40  ;;  %v2960_v18 = vpop.f32.mrb[154].mxu1  ;;  %7069 = vtanh.f32 %v3355_v26 }
 0x3b8   : > { %v7046_v8 = vpop.eup %7045  ;;  %v5618_v11 = vpop.f32.mrb[154].mxu0  ;;  %v3485_v21 = vpack.c.bf16 %v7044_v5, %v7036_v27  ;;  %v6025_v59 = vadd.f32 %v2960_v18, %v8382_v34  ;;  %7071 = vtanh.f32 %v6024_v1 }
 0x3b9   : > { %v7048_v42 = vpop.eup %7047  ;;  %v3358_v63 = vadd.f32 %v5618_v11, %v3197_v14  ;;  %v2962_v47 = vpop.f32.mrb[155].mxu1  ;;  %v3502_v43 = vpack.c.bf16 %v7046_v8, %v7038_v33  ;;  %7073 = vtanh.f32 %v3347_v46 }
 0x3ba   : > { %v3349_v58 = vpop.f32.mrb[155].mxu0  ;;  %v7050_v44 = vpop.eup %7049  ;;  %v3486_v31 = vpack.c.bf16 %v7048_v42, %v7040_v49  ;;  %v6026_v55 = vadd.f32 %v2962_v47, %v8386_v41  ;;  %7075 = vtanh.f32 %v6025_v59 }
 0x3bb   : > { %v3350_v24 = vadd.f32 %v3349_v58, %v3189_v38  ;;  %v7052_v57 = vpop.eup %7051  ;;  %v3499_v16 = vpack.c.bf16 %v7050_v44, %v7042_v0  ;;  %7077 = vtanh.f32 %v3358_v63  ;;  %v2966_v32 = vpop.f32.mrb[156].mxu1 }
 0x3bc   : > { %v7054_v50 = vpop.eup %7053  ;;  %3784 = vmatprep.mubr.bf16.mxu0 %v3486_v31  ;;  %v5621_v35 = vpop.f32.mrb[156].mxu0  ;;  %7079 = vtanh.f32 %v6026_v55  ;;  %v6027_v13 = vadd.f32 %v2966_v32, %v8382_v34 }
 0x3bd   : > { %v7056_v48 = vpop.eup %7055  ;;  %5655 = vmatprep.mubr.bf16.mxu1 %v3499_v16  ;;  %3785 = vmatmul.mubr.bf16.gmra.mrb[176].mxu0 %v3485_v21  ;;  %v3371_v60 = vadd.f32 %v5621_v35, %v3210_v4  ;;  %v2968_v2 = vpop.f32.mrb[157].mxu1  ;;  %7081 = vtanh.f32 %v3350_v24 }
 0x3be   : > { %v7058_v25 = vpop.eup %7057  ;;  %5656 = vmatmul.mubr.bf16.gmra.mrb[208].mxu1 %v3502_v43  ;;  %v3362_v28 = vpop.f32.mrb[157].mxu0  ;;  %v6028_v37 = vadd.f32 %v2968_v2, %v8386_v41  ;;  %7083 = vtanh.f32 %v6027_v13 }
 0x3bf   : > { %v7060_v53 = vpop.eup %7059  ;;  %v3363_v52 = vadd.f32 %v3362_v28, %v3202_v12  ;;  %v2970_v45 = vpop.f32.mrb[158].mxu1  ;;  %7085 = vtanh.f32 %v3371_v60 }
 0x3c0   : > { %v7062_v30 = vpop.eup %7061  ;;  %v5622_v17 = vpop.f32.mrb[158].mxu0  ;;  %v3488_v36 = vpack.c.bf16 %v7060_v53, %v7052_v57  ;;  %v6029_v23 = vadd.f32 %v2970_v45, %v8382_v34  ;;  %7087 = vtanh.f32 %v6028_v37 }
 0x3c1   : > { %v7064_v10 = vpop.eup %7063  ;;  %v3374_v39 = vadd.f32 %v5622_v17, %v3213_v3  ;;  %v2972_v27 = vpop.f32.mrb[159].mxu1  ;;  %v3508_v19 = vpack.c.bf16 %v7062_v30, %v7054_v50  ;;  %7089 = vtanh.f32 %v3363_v52 }
 0x3c2   : > { %v3365_v29 = vpop.f32.mrb[159].mxu0  ;;  %v7066_v33 = vpop.eup %7065  ;;  %v3489_v6 = vpack.c.bf16 %v7064_v10, %v7056_v48  ;;  %v6030_v15 = vadd.f32 %v2972_v27, %v8386_v41  ;;  %7091 = vtanh.f32 %v6029_v23 }
 0x3c3   : > { %v3366_v49 = vadd.f32 %v3365_v29, %v3205_v20  ;;  %v7068_v9 = vpop.eup %7067  ;;  %v3505_v0 = vpack.c.bf16 %v7066_v33, %v7058_v25  ;;  %7093 = vtanh.f32 %v3374_v39  ;;  %v2976_v38 = vpop.f32.mrb[160].mxu1 }
 0x3c4   : > { %v7070_v22 = vpop.eup %7069  ;;  %3792 = vmatprep.mubr.bf16.mxu0 %v3489_v6  ;;  %7095 = vtanh.f32 %v6030_v15  ;;  %v6031_v54 = vadd.f32 %v2976_v38, %v8382_v34  ;;  %v2978_v26 = vpop.f32.mrb[161].mxu1 }
 0x3c5   : > { %v7072_v62 = vpop.eup %7071  ;;  %5659 = vmatprep.mubr.bf16.mxu1 %v3505_v0  ;;  %3793 = vmatmul.mubr.bf16.gmra.mrb[180].mxu0 %v3488_v36  ;;  %7097 = vtanh.f32 %v3366_v49  ;;  %v6032_v61 = vadd.f32 %v2978_v26, %v8386_v41  ;;  %v2980_v14 = vpop.f32.mrb[162].mxu1 }
 0x3c6   : > { %v7074_v40 = vpop.eup %7073  ;;  %5660 = vmatmul.mubr.bf16.gmra.mrb[212].mxu1 %v3508_v19  ;;  %7099 = vtanh.f32 %v6031_v54  ;;  %v6033_v46 = vadd.f32 %v2980_v14, %v8382_v34  ;;  %v2982_v18 = vpop.f32.mrb[163].mxu1 }
 0x3c7   : > { %v7076_v5 = vpop.eup %7075  ;;  %7101 = vtanh.f32 %v6032_v61  ;;  %v6034_v42 = vadd.f32 %v2982_v18, %v8386_v41 }
 0x3c8   : > { %v7078_v7 = vpop.eup %7077  ;;  %v3491_v8 = vpack.c.bf16 %v7076_v5, %v7068_v9  ;;  %7103 = vtanh.f32 %v6033_v46 }
 0x3c9   : > { %v7080_v1 = vpop.eup %7079  ;;  %v3514_v11 = vpack.c.bf16 %v7078_v7, %v7070_v22  ;;  %7105 = vtanh.f32 %v6034_v42 }
 0x3ca   : > { %v7082_v21 = vpop.eup %7081  ;;  %v3492_v59 = vpack.c.bf16 %v7080_v1, %v7072_v62 }
 0x3cb   : > { %v7084_v63 = vpop.eup %7083  ;;  %v3511_v47 = vpack.c.bf16 %v7082_v21, %v7074_v40  ;;  %v2986_v24 = vpop.f32.mrb[164].mxu1 }
 0x3cc   : > { %v7086_v58 = vpop.eup %7085  ;;  %3800 = vmatprep.mubr.bf16.mxu0 %v3492_v59  ;;  %v6035_v57 = vadd.f32 %v2986_v24, %v8382_v34  ;;  %v2988_v55 = vpop.f32.mrb[165].mxu1 }
 0x3cd   : > { %v7088_v43 = vpop.eup %7087  ;;  %5663 = vmatprep.mubr.bf16.mxu1 %v3511_v47  ;;  %3801 = vmatmul.mubr.bf16.gmra.mrb[184].mxu0 %v3491_v8  ;;  %v6036_v50 = vadd.f32 %v2988_v55, %v8386_v41  ;;  %v2990_v48 = vpop.f32.mrb[166].mxu1 }
 0x3ce   : > { %v7090_v44 = vpop.eup %7089  ;;  %5664 = vmatmul.mubr.bf16.gmra.mrb[216].mxu1 %v3514_v11  ;;  %7107 = vtanh.f32 %v6035_v57  ;;  %v6037_v32 = vadd.f32 %v2990_v48, %v8382_v34  ;;  %v2992_v35 = vpop.f32.mrb[167].mxu1 }
 0x3cf   : > { %v7092_v31 = vpop.eup %7091  ;;  %7109 = vtanh.f32 %v6036_v50  ;;  %v6038_v53 = vadd.f32 %v2992_v35, %v8386_v41 }
 0x3d0   : > { %v7094_v16 = vpop.eup %7093  ;;  %v3494_v4 = vpack.c.bf16 %v7092_v31, %v7084_v63  ;;  %7111 = vtanh.f32 %v6037_v32 }
 0x3d1   : > { %v7096_v25 = vpop.eup %7095  ;;  %v3520_v12 = vpack.c.bf16 %v7094_v16, %v7086_v58  ;;  %7113 = vtanh.f32 %v6038_v53 }
 0x3d2   : > { %v7098_v20 = vpop.eup %7097  ;;  %v3495_v13 = vpack.c.bf16 %v7096_v25, %v7088_v43 }
 0x3d3   : > { %v7100_v60 = vpop.eup %7099  ;;  %v3517_v2 = vpack.c.bf16 %v7098_v20, %v7090_v44  ;;  %v2996_v37 = vpop.f32.mrb[168].mxu1 }
 0x3d4   : > { %v7102_v28 = vpop.eup %7101  ;;  %3808 = vmatprep.mubr.bf16.mxu0 %v3495_v13  ;;  %v6039_v45 = vadd.f32 %v2996_v37, %v8382_v34  ;;  %v2998_v17 = vpop.f32.mrb[169].mxu1 }
 0x3d5   : > { %v7104_v3 = vpop.eup %7103  ;;  %5667 = vmatprep.mubr.bf16.mxu1 %v3517_v2  ;;  %3809 = vmatmul.mubr.bf16.gmra.mrb[188].mxu0 %v3494_v4  ;;  %v6040_v10 = vadd.f32 %v2998_v17, %v8386_v41  ;;  %v3000_v23 = vpop.f32.mrb[170].mxu1 }
 0x3d6   : > { %v7106_v30 = vpop.eup %7105  ;;  %5668 = vmatmul.mubr.bf16.gmra.mrb[220].mxu1 %v3520_v12  ;;  %v3497_v52 = vpack.c.bf16 %v7104_v3, %v7100_v60  ;;  %7115 = vtanh.f32 %v6039_v45  ;;  %v6041_v39 = vadd.f32 %v3000_v23, %v8382_v34  ;;  %v3002_v27 = vpop.f32.mrb[171].mxu1 }
 0x3d7   : > { %v3498_v36 = vpack.c.bf16 %v7106_v30, %v7102_v28  ;;  %7117 = vtanh.f32 %v6040_v10  ;;  %v6042_v29 = vadd.f32 %v3002_v27, %v8386_v41 }
 0x3d8   : > { %v7108_v19 = vpop.eup %7107  ;;  %7119 = vtanh.f32 %v6041_v39 }
 0x3d9   : > { %3816 = vmatprep.mubr.bf16.mxu0 %v3498_v36  ;;  %v7110_v33 = vpop.eup %7109  ;;  %7121 = vtanh.f32 %v6042_v29 }
 0x3da   : > { %v7112_v49 = vpop.eup %7111 }
 0x3db   : > { %v7114_v6 = vpop.eup %7113  ;;  %v3006_v9 = vpop.f32.mrb[172].mxu1  ;;  %v3500_v15 = vpack.c.bf16 %v7112_v49, %v7108_v19 }
 0x3dc   : > { %v6043_v0 = vadd.f32 %v3006_v9, %v8382_v34  ;;  %v3008_v22 = vpop.f32.mrb[173].mxu1  ;;  %v3501_v62 = vpack.c.bf16 %v7114_v6, %v7110_v33 }
 0x3dd   : > { %3817 = vmatmul.mubr.bf16.gmra.mrb[192].mxu0 %v3497_v52  ;;  %v6044_v40 = vadd.f32 %v3008_v22, %v8386_v41  ;;  %v3010_v38 = vpop.f32.mrb[174].mxu1 }
 0x3de   : > { %7123 = vtanh.f32 %v6043_v0  ;;  %v6045_v5 = vadd.f32 %v3010_v38, %v8382_v34  ;;  %v3012_v54 = vpop.f32.mrb[175].mxu1  ;;  %3824 = vmatprep.mubr.bf16.mxu0 %v3501_v62 }
 0x3df   : > { %7125 = vtanh.f32 %v6044_v40  ;;  %v6046_v26 = vadd.f32 %v3012_v54, %v8386_v41 }
 0x3e0   : > { %v7116_v7 = vpop.eup %7115  ;;  %7127 = vtanh.f32 %v6045_v5 }
 0x3e1   : > { %v7118_v61 = vpop.eup %7117  ;;  %7129 = vtanh.f32 %v6046_v26 }
 0x3e2   : > { %v7120_v14 = vpop.eup %7119 }
 0x3e3   : > { %v7122_v8 = vpop.eup %7121  ;;  %v3016_v1 = vpop.f32.mrb[176].mxu1  ;;  %v3503_v46 = vpack.c.bf16 %v7120_v14, %v7116_v7 }
 0x3e4   : > { %v6047_v18 = vadd.f32 %v3016_v1, %v8382_v34  ;;  %v3018_v11 = vpop.f32.mrb[177].mxu1  ;;  %v3504_v21 = vpack.c.bf16 %v7122_v8, %v7118_v61 }
 0x3e5   : > { %3825 = vmatmul.mubr.bf16.gmra.mrb[196].mxu0 %v3500_v15  ;;  %v6048_v42 = vadd.f32 %v3018_v11, %v8386_v41  ;;  %v3020_v59 = vpop.f32.mrb[178].mxu1 }
 0x3e6   : > { %7131 = vtanh.f32 %v6047_v18  ;;  %v6049_v63 = vadd.f32 %v3020_v59, %v8382_v34  ;;  %v3022_v47 = vpop.f32.mrb[179].mxu1  ;;  %3832 = vmatprep.mubr.bf16.mxu0 %v3504_v21 }
 0x3e7   : > { %7133 = vtanh.f32 %v6048_v42  ;;  %v6050_v58 = vadd.f32 %v3022_v47, %v8386_v41  ;;  %v8519_v42 = vld [vmem:[%s9041_s6] ss:$0 sm:$0xff] }
 0x3e8   : > { %v7124_v43 = vpop.eup %7123  ;;  %7135 = vtanh.f32 %v6049_v63 }
 0x3e9   : > { %v7126_v44 = vpop.eup %7125  ;;  %7137 = vtanh.f32 %v6050_v58 }
 0x3ea   : > { %v7128_v24 = vpop.eup %7127 }
 0x3eb   : > { %v7130_v31 = vpop.eup %7129  ;;  %v3026_v57 = vpop.f32.mrb[180].mxu1  ;;  %v3506_v55 = vpack.c.bf16 %v7128_v24, %v7124_v43 }
 0x3ec   : > { %v6051_v16 = vadd.f32 %v3026_v57, %v8382_v34  ;;  %v3028_v50 = vpop.f32.mrb[181].mxu1  ;;  %v3507_v48 = vpack.c.bf16 %v7130_v31, %v7126_v44 }
 0x3ed   : > { %3833 = vmatmul.mubr.bf16.gmra.mrb[200].mxu0 %v3503_v46  ;;  %v6052_v4 = vadd.f32 %v3028_v50, %v8386_v41  ;;  %v3030_v25 = vpop.f32.mrb[182].mxu1 }
 0x3ee   : > { %7139 = vtanh.f32 %v6051_v16  ;;  %v6053_v32 = vadd.f32 %v3030_v25, %v8382_v34  ;;  %v3032_v35 = vpop.f32.mrb[183].mxu1  ;;  %3840 = vmatprep.mubr.bf16.mxu0 %v3507_v48 }
 0x3ef   : > { %7141 = vtanh.f32 %v6052_v4  ;;  %v6054_v12 = vadd.f32 %v3032_v35, %v8386_v41 }
 0x3f0   : > { %v7132_v20 = vpop.eup %7131  ;;  %7143 = vtanh.f32 %v6053_v32 }
 0x3f1   : > { %v7134_v53 = vpop.eup %7133  ;;  %7145 = vtanh.f32 %v6054_v12 }
 0x3f2   : > { %v7136_v13 = vpop.eup %7135 }
 0x3f3   : > { %v7138_v60 = vpop.eup %7137  ;;  %v3036_v2 = vpop.f32.mrb[184].mxu1  ;;  %v3509_v28 = vpack.c.bf16 %v7136_v13, %v7132_v20 }
 0x3f4   : > { %v6055_v3 = vadd.f32 %v3036_v2, %v8382_v34  ;;  %v3038_v30 = vpop.f32.mrb[185].mxu1  ;;  %v3510_v37 = vpack.c.bf16 %v7138_v60, %v7134_v53 }
 0x3f5   : > { %3841 = vmatmul.mubr.bf16.gmra.mrb[204].mxu0 %v3506_v55  ;;  %v6056_v52 = vadd.f32 %v3038_v30, %v8386_v41  ;;  %v3040_v45 = vpop.f32.mrb[186].mxu1 }
 0x3f6   : > { %7147 = vtanh.f32 %v6055_v3  ;;  %v6057_v17 = vadd.f32 %v3040_v45, %v8382_v34  ;;  %v3042_v36 = vpop.f32.mrb[187].mxu1  ;;  %3848 = vmatprep.mubr.bf16.mxu0 %v3510_v37 }
 0x3f7   : > { %7149 = vtanh.f32 %v6056_v52  ;;  %v6058_v10 = vadd.f32 %v3042_v36, %v8386_v41 }
 0x3f8   : > { %v7140_v23 = vpop.eup %7139  ;;  %7151 = vtanh.f32 %v6057_v17 }
 0x3f9   : > { %v7142_v39 = vpop.eup %7141  ;;  %7153 = vtanh.f32 %v6058_v10 }
 0x3fa   : > { %v7144_v27 = vpop.eup %7143 }
 0x3fb   : > { %v7146_v29 = vpop.eup %7145  ;;  %v3046_v19 = vpop.f32.mrb[188].mxu1  ;;  %v3512_v33 = vpack.c.bf16 %v7144_v27, %v7140_v23 }
 0x3fc   : > { %v6059_v49 = vadd.f32 %v3046_v19, %v8382_v34  ;;  %v3048_v6 = vpop.f32.mrb[189].mxu1  ;;  %v3513_v9 = vpack.c.bf16 %v7146_v29, %v7142_v39 }
 0x3fd   : > { %3849 = vmatmul.mubr.bf16.gmra.mrb[208].mxu0 %v3509_v28  ;;  %v6060_v15 = vadd.f32 %v3048_v6, %v8386_v41  ;;  %v3050_v0 = vpop.f32.mrb[190].mxu1 }
 0x3fe   : > { %7155 = vtanh.f32 %v6059_v49  ;;  %v6061_v22 = vadd.f32 %v3050_v0, %v8382_v34  ;;  %v3052_v62 = vpop.f32.mrb[191].mxu1  ;;  %3856 = vmatprep.mubr.bf16.mxu0 %v3513_v9 }
 0x3ff   : > { %7157 = vtanh.f32 %v6060_v15  ;;  %v6062_v40 = vadd.f32 %v3052_v62, %v8386_v41 }
 0x400   : > { %v7148_v38 = vpop.eup %7147  ;;  %7159 = vtanh.f32 %v6061_v22 }
 0x401   : > { %v7150_v5 = vpop.eup %7149  ;;  %7161 = vtanh.f32 %v6062_v40 }
 0x402   : > { %v7152_v54 = vpop.eup %7151 }
 0x403   : > { %v7154_v26 = vpop.eup %7153  ;;  %v3515_v7 = vpack.c.bf16 %v7152_v54, %v7148_v38 }
 0x404   : > { %v3516_v61 = vpack.c.bf16 %v7154_v26, %v7150_v5 }
 0x405   : > { %3857 = vmatmul.mubr.bf16.gmra.mrb[212].mxu0 %v3512_v33 }
 0x406   : > { %3864 = vmatprep.mubr.bf16.mxu0 %v3516_v61 }
 0x408   : > { %v7156_v14 = vpop.eup %7155 }
 0x409   : > { %v7158_v8 = vpop.eup %7157 }
 0x40a   : > { %v7160_v1 = vpop.eup %7159 }
 0x40b   : > { %v7162_v34 = vpop.eup %7161  ;;  %v3518_v46 = vpack.c.bf16 %v7160_v1, %v7156_v14 }
 0x40c   : > { %v3519_v18 = vpack.c.bf16 %v7162_v34, %v7158_v8 }
 0x40d   : > { %3865 = vmatmul.mubr.bf16.gmra.mrb[216].mxu0 %v3515_v7 }
 0x40e   : > { %3872 = vmatprep.mubr.bf16.mxu0 %v3519_v18 }
 0x415   : > { %3873 = vmatmul.mubr.bf16.gmra.mrb[220].mxu0 %v3518_v46 }
 0x46e   : > { %v5359_v41 = vpop.f32.mrb[160].mxu0 }
 0x46f   : > { %v5360_v21 = vpop.f32.mrb[161].mxu0 }
 0x470   : > { %v5641_v11 = vpop.f32.mrb[192].mxu1  ;;  %v5361_v59 = vadd.f32 %v5360_v21, %v5359_v41  ;;  %v5362_v47 = vpop.f32.mrb[162].mxu0 }
 0x471   : > { %v3915_v63 = vpop.f32.mrb[193].mxu1  ;;  %v5363_v43 = vpop.f32.mrb[163].mxu0 }
 0x472   : > { %v5642_v58 = vpop.f32.mrb[194].mxu1  ;;  %v3755_v44 = vadd.f32 %v5361_v59, %v8519_v42  ;;  %v5364_v24 = vadd.f32 %v5363_v43, %v5362_v47 }
 0x473   : > { %v3918_v31 = vpop.f32.mrb[195].mxu1 }
 0x474   : > { %v3916_v57 = vadd.f32 %v3915_v63, %v3755_v44  ;;  %v3758_v55 = vadd.f32 %v5364_v24, %v8519_v42 }
 0x476   : > { %7163 = vtanh.f32 %v3916_v57  ;;  %v3919_v16 = vadd.f32 %v3918_v31, %v3758_v55 }
 0x477   : > { %v5365_v50 = vpop.f32.mrb[164].mxu0 }
 0x478   : > { %v5366_v4 = vpop.f32.mrb[165].mxu0  ;;  %7165 = vtanh.f32 %v3919_v16 }
 0x479   : > { %v5645_v48 = vpop.f32.mrb[196].mxu1  ;;  %v5367_v25 = vadd.f32 %v5366_v4, %v5365_v50  ;;  %v5368_v35 = vpop.f32.mrb[166].mxu0 }
 0x47a   : > { %v3931_v32 = vpop.f32.mrb[197].mxu1  ;;  %v5369_v20 = vpop.f32.mrb[167].mxu0 }
 0x47b   : > { %v5646_v12 = vpop.f32.mrb[198].mxu1  ;;  %v3763_v53 = vadd.f32 %v5367_v25, %v8519_v42  ;;  %v5370_v13 = vadd.f32 %v5369_v20, %v5368_v35 }
 0x47c   : > { %v3934_v60 = vpop.f32.mrb[199].mxu1 }
 0x47d   : > { %v3924_v2 = vadd.f32 %v5641_v11, %v3763_v53  ;;  %v3766_v28 = vadd.f32 %v5370_v13, %v8519_v42 }
 0x47f   : > { %v3927_v3 = vadd.f32 %v5642_v58, %v3766_v28  ;;  %7167 = vtanh.f32 %v3924_v2 }
 0x480   : > { %v5371_v30 = vpop.f32.mrb[168].mxu0  ;;  %v7164_v45 = vpop.eup %7163 }
 0x481   : > { %v8525_v37 = vpop.f32.mrb[200].mxu1  ;;  %v5372_v52 = vpop.f32.mrb[169].mxu0  ;;  %7169 = vtanh.f32 %v3927_v3  ;;  %5703 = vmatprep.mubr.f32.mxu1 %v7164_v45  ;;  %5759 = vmatprep.mubr.f32.mxu0 %v7164_v45 }
 0x482   : > { %v5373_v17 = vadd.f32 %v5372_v52, %v5371_v30  ;;  %v3947_v36 = vpop.f32.mrb[201].mxu1  ;;  %v5374_v10 = vpop.f32.mrb[170].mxu0 }
 0x483   : > { %v8527_v23 = vpop.f32.mrb[202].mxu1  ;;  %v5375_v39 = vpop.f32.mrb[171].mxu0 }
 0x484   : > { %v8529_v27 = vpop.eup %7165  ;;  %v3771_v29 = vadd.f32 %v5373_v17, %v8519_v42  ;;  %v5376_v19 = vadd.f32 %v5375_v39, %v5374_v10  ;;  %v3950_v33 = vpop.f32.mrb[203].mxu1 }
 0x485   : > { %v5871_v49 = vpack.c.bf16 %v8529_v27, %v7164_v45 }
 0x486   : > { %v3932_v6 = vadd.f32 %v3931_v32, %v3771_v29  ;;  %v3774_v9 = vadd.f32 %v5376_v19, %v8519_v42 }
 0x487   : > { %5872 = vmatprep.subr.bf16.mxu0 %v5871_v49 }
 0x488   : > { %v3935_v15 = vadd.f32 %v3934_v60, %v3774_v9  ;;  %v5377_v0 = vpop.f32.mrb[172].mxu0  ;;  %5874 = vmatpush3.bf16.xpose.msra.mxu0 %v5871_v49  ;;  %7171 = vtanh.f32 %v3932_v6 }
 0x489   : > { %v8534_v22 = vpop.f32.mrb[204].mxu1  ;;  %v5378_v62 = vpop.f32.mrb[173].mxu0 }
 0x48a   : > { %7173 = vtanh.f32 %v3935_v15  ;;  %v5379_v40 = vadd.f32 %v5378_v62, %v5377_v0  ;;  %v8536_v38 = vpop.f32.mrb[205].mxu1  ;;  %v5380_v5 = vpop.f32.mrb[174].mxu0 }
 0x48b   : > { %v8538_v54 = vpop.eup %7167  ;;  %v8540_v26 = vpop.f32.mrb[206].mxu1 }
 0x48c   : > { %v5381_v7 = vpop.f32.mrb[175].mxu0  ;;  %v8542_v61 = vpop.eup %7169  ;;  %v3779_v14 = vadd.f32 %v5379_v40, %v8519_v42 }
 0x48d   : > { %v5382_v8 = vadd.f32 %v5381_v7, %v5380_v5  ;;  %v8545_v1 = vpop.f32.mrb[207].mxu1  ;;  %v5875_v34 = vpack.c.bf16 %v8542_v61, %v8538_v54 }
 0x48e   : > { %v3940_v46 = vadd.f32 %v5645_v48, %v3779_v14 }
 0x48f   : > { %v3782_v18 = vadd.f32 %v5382_v8, %v8519_v42  ;;  %5876 = vmatprep.subr.bf16.mxu0 %v5875_v34 }
 0x490   : > { %v5383_v11 = vpop.f32.mrb[176].mxu0  ;;  %5878 = vmatpush3.bf16.xpose.msra.mxu0 %v5875_v34  ;;  %7175 = vtanh.f32 %v3940_v46 }
 0x491   : > { %v3943_v41 = vadd.f32 %v5646_v12, %v3782_v18  ;;  %v8550_v21 = vpop.f32.mrb[208].mxu1  ;;  %v5384_v59 = vpop.f32.mrb[177].mxu0 }
 0x492   : > { %v5385_v63 = vadd.f32 %v5384_v59, %v5383_v11  ;;  %v8552_v47 = vpop.f32.mrb[209].mxu1  ;;  %v5386_v58 = vpop.f32.mrb[178].mxu0 }
 0x493   : > { %7177 = vtanh.f32 %v3943_v41  ;;  %v8554_v43 = vpop.eup %7171  ;;  %v8556_v44 = vpop.f32.mrb[210].mxu1 }
 0x494   : > { %v5387_v24 = vpop.f32.mrb[179].mxu0  ;;  %v8558_v31 = vpop.eup %7173  ;;  %v3787_v57 = vadd.f32 %v5385_v63, %v8519_v42 }
 0x495   : > { %v5388_v55 = vadd.f32 %v5387_v24, %v5386_v58  ;;  %v8561_v16 = vpop.f32.mrb[211].mxu1  ;;  %v5879_v50 = vpack.c.bf16 %v8558_v31, %v8554_v43 }
 0x496   : > { %v3948_v48 = vadd.f32 %v3947_v36, %v3787_v57 }
 0x497   : > { %v3790_v4 = vadd.f32 %v5388_v55, %v8519_v42  ;;  %5880 = vmatprep.subr.bf16.mxu0 %v5879_v50 }
 0x498   : > { %v5389_v32 = vpop.f32.mrb[180].mxu0  ;;  %5882 = vmatpush3.bf16.xpose.msra.mxu0 %v5879_v50  ;;  %7179 = vtanh.f32 %v3948_v48 }
 0x499   : > { %v3951_v25 = vadd.f32 %v3950_v33, %v3790_v4  ;;  %v8566_v35 = vpop.f32.mrb[212].mxu1  ;;  %v5390_v12 = vpop.f32.mrb[181].mxu0 }
 0x49a   : > { %v5391_v20 = vadd.f32 %v5390_v12, %v5389_v32  ;;  %v8568_v53 = vpop.f32.mrb[213].mxu1  ;;  %v5392_v13 = vpop.f32.mrb[182].mxu0 }
 0x49b   : > { %7181 = vtanh.f32 %v3951_v25  ;;  %v8570_v60 = vpop.eup %7175  ;;  %v8572_v2 = vpop.f32.mrb[214].mxu1 }
 0x49c   : > { %v5393_v28 = vpop.f32.mrb[183].mxu0  ;;  %v3795_v30 = vadd.f32 %v5391_v20, %v8519_v42  ;;  %v8577_v45 = vpop.f32.mrb[215].mxu1 }
 0x49d   : > { %v8574_v3 = vpop.eup %7177  ;;  %v5394_v52 = vadd.f32 %v5393_v28, %v5392_v13 }
 0x49e   : > { %v5883_v17 = vpack.c.bf16 %v8574_v3, %v8570_v60  ;;  %v3956_v36 = vadd.f32 %v8525_v37, %v3795_v30 }
 0x49f   : > { %v3798_v10 = vadd.f32 %v5394_v52, %v8519_v42 }
 0x4a0   : > { %5884 = vmatprep.subr.bf16.mxu0 %v5883_v17  ;;  %v5395_v29 = vpop.f32.mrb[184].mxu0  ;;  %7183 = vtanh.f32 %v3956_v36 }
 0x4a1   : > { %v3959_v39 = vadd.f32 %v8527_v23, %v3798_v10  ;;  %5886 = vmatpush3.bf16.xpose.msra.mxu0 %v5883_v17  ;;  %v8584_v19 = vpop.f32.mrb[216].mxu1  ;;  %v5396_v33 = vpop.f32.mrb[185].mxu0 }
 0x4a2   : > { %v5397_v49 = vadd.f32 %v5396_v33, %v5395_v29  ;;  %v8586_v6 = vpop.f32.mrb[217].mxu1  ;;  %v5398_v9 = vpop.f32.mrb[186].mxu0 }
 0x4a3   : > { %7185 = vtanh.f32 %v3959_v39  ;;  %v8588_v15 = vpop.eup %7179  ;;  %v8590_v0 = vpop.f32.mrb[218].mxu1 }
 0x4a4   : > { %v5399_v37 = vpop.f32.mrb[187].mxu0  ;;  %v3803_v23 = vadd.f32 %v5397_v49, %v8519_v42  ;;  %v8595_v5 = vpop.f32.mrb[219].mxu1 }
 0x4a5   : > { %v8592_v62 = vpop.eup %7181  ;;  %v5400_v40 = vadd.f32 %v5399_v37, %v5398_v9 }
 0x4a6   : > { %v5887_v7 = vpack.c.bf16 %v8592_v62, %v8588_v15  ;;  %v3964_v14 = vadd.f32 %v8536_v38, %v3803_v23 }
 0x4a7   : > { %v3806_v8 = vadd.f32 %v5400_v40, %v8519_v42 }
 0x4a8   : > { %5888 = vmatprep.subr.bf16.mxu0 %v5887_v7  ;;  %v5401_v46 = vpop.f32.mrb[188].mxu0  ;;  %7187 = vtanh.f32 %v3964_v14 }
 0x4a9   : > { %v3967_v34 = vadd.f32 %v8545_v1, %v3806_v8  ;;  %5890 = vmatpush3.bf16.xpose.msra.mxu0 %v5887_v7  ;;  %v8602_v18 = vpop.f32.mrb[220].mxu1  ;;  %v5402_v41 = vpop.f32.mrb[189].mxu0 }
 0x4aa   : > { %v5403_v11 = vadd.f32 %v5402_v41, %v5401_v46  ;;  %v8604_v59 = vpop.f32.mrb[221].mxu1  ;;  %v5404_v63 = vpop.f32.mrb[190].mxu0 }
 0x4ab   : > { %7189 = vtanh.f32 %v3967_v34  ;;  %v8606_v58 = vpop.eup %7183  ;;  %v8608_v24 = vpop.f32.mrb[222].mxu1 }
 0x4ac   : > { %v5405_v38 = vpop.f32.mrb[191].mxu0  ;;  %v3811_v1 = vadd.f32 %v5403_v11, %v8519_v42  ;;  %v8613_v50 = vpop.f32.mrb[223].mxu1 }
 0x4ad   : > { %v8610_v57 = vpop.eup %7185  ;;  %v5406_v55 = vadd.f32 %v5405_v38, %v5404_v63 }
 0x4ae   : > { %v5891_v48 = vpack.c.bf16 %v8610_v57, %v8606_v58  ;;  %v3972_v4 = vadd.f32 %v8534_v22, %v3811_v1 }
 0x4af   : > { %v3814_v25 = vadd.f32 %v5406_v55, %v8519_v42 }
 0x4b0   : > { %5892 = vmatprep.subr.bf16.mxu0 %v5891_v48  ;;  %v5407_v12 = vpop.f32.mrb[192].mxu0  ;;  %7191 = vtanh.f32 %v3972_v4 }
 0x4b1   : > { %v3975_v32 = vadd.f32 %v8540_v26, %v3814_v25  ;;  %5894 = vmatpush3.bf16.xpose.msra.mxu0 %v5891_v48  ;;  %v5408_v20 = vpop.f32.mrb[193].mxu0 }
 0x4b2   : > { %v5409_v13 = vadd.f32 %v5408_v20, %v5407_v12  ;;  %v5410_v28 = vpop.f32.mrb[194].mxu0  ;;  %v8620_v30 = vpop.eup %7187 }
 0x4b3   : > { %7193 = vtanh.f32 %v3975_v32  ;;  %v5411_v52 = vpop.f32.mrb[195].mxu0 }
 0x4b4   : > { %v3819_v36 = vadd.f32 %v5409_v13, %v8519_v42  ;;  %v5412_v22 = vadd.f32 %v5411_v52, %v5410_v28 }
 0x4b5   : > { %v8622_v17 = vpop.eup %7189 }
 0x4b6   : > { %v5895_v10 = vpack.c.bf16 %v8622_v17, %v8620_v30  ;;  %v3980_v26 = vadd.f32 %v8552_v47, %v3819_v36  ;;  %v3822_v39 = vadd.f32 %v5412_v22, %v8519_v42 }
 0x4b8   : > { %5896 = vmatprep.subr.bf16.mxu0 %v5895_v10  ;;  %v3983_v29 = vadd.f32 %v8561_v16, %v3822_v39  ;;  %v5413_v33 = vpop.f32.mrb[196].mxu0  ;;  %7195 = vtanh.f32 %v3980_v26 }
 0x4b9   : > { %5898 = vmatpush3.bf16.xpose.msra.mxu0 %v5895_v10  ;;  %v5414_v49 = vpop.f32.mrb[197].mxu0 }
 0x4ba   : > { %7197 = vtanh.f32 %v3983_v29  ;;  %v5415_v9 = vadd.f32 %v5414_v49, %v5413_v33  ;;  %v5416_v37 = vpop.f32.mrb[198].mxu0  ;;  %v8630_v23 = vpop.eup %7191 }
 0x4bb   : > { %v5417_v40 = vpop.f32.mrb[199].mxu0 }
 0x4bc   : > { %v3827_v14 = vadd.f32 %v5415_v9, %v8519_v42  ;;  %v5418_v47 = vadd.f32 %v5417_v40, %v5416_v37 }
 0x4bd   : > { %v8632_v7 = vpop.eup %7193 }
 0x4be   : > { %v5899_v8 = vpack.c.bf16 %v8632_v7, %v8630_v23  ;;  %v3988_v16 = vadd.f32 %v8550_v21, %v3827_v14  ;;  %v3830_v34 = vadd.f32 %v5418_v47, %v8519_v42 }
 0x4c0   : > { %5900 = vmatprep.subr.bf16.mxu0 %v5899_v8  ;;  %v3991_v46 = vadd.f32 %v8556_v44, %v3830_v34  ;;  %v5419_v41 = vpop.f32.mrb[200].mxu0  ;;  %7199 = vtanh.f32 %v3988_v16 }
 0x4c1   : > { %5902 = vmatpush3.bf16.xpose.msra.mxu0 %v5899_v8  ;;  %v5420_v11 = vpop.f32.mrb[201].mxu0 }
 0x4c2   : > { %7201 = vtanh.f32 %v3991_v46  ;;  %v5421_v63 = vadd.f32 %v5420_v11, %v5419_v41  ;;  %v5422_v38 = vpop.f32.mrb[202].mxu0  ;;  %v8640_v1 = vpop.eup %7195 }
 0x4c3   : > { %v5423_v55 = vpop.f32.mrb[203].mxu0 }
 0x4c4   : > { %v8642_v48 = vpop.eup %7197  ;;  %v3835_v4 = vadd.f32 %v5421_v63, %v8519_v42  ;;  %v5424_v21 = vadd.f32 %v5423_v55, %v5422_v38 }
 0x4c5   : > { %v8647_v25 = vpack.c.bf16 %v8642_v48, %v8640_v1 }
 0x4c6   : > { %v3996_v44 = vadd.f32 %v8568_v53, %v3835_v4  ;;  %v3838_v32 = vadd.f32 %v5424_v21, %v8519_v42 }
 0x4c7   : > { %5840 = vmatprep.subr.bf16.mxu1 %v8647_v25 }
 0x4c8   : > { %5760 = vmatmul.mubr.f32.vlgmr.msra.gmra.mrb[224].mxu0 %v8529_v27  ;;  %v3999_v12 = vadd.f32 %v8577_v45, %v3838_v32  ;;  %v5425_v20 = vpop.f32.mrb[204].mxu0  ;;  %5842 = vmatpush3.bf16.xpose.msra.mxu1 %v8647_v25  ;;  %7203 = vtanh.f32 %v3996_v44 }
 0x4c9   : > { %5762 = vmatprep.mubr.f32.mxu0 %v8538_v54  ;;  %v5426_v13 = vpop.f32.mrb[205].mxu0 }
 0x4ca   : > { %7205 = vtanh.f32 %v3999_v12  ;;  %v5427_v28 = vadd.f32 %v5426_v13, %v5425_v20  ;;  %v5428_v52 = vpop.f32.mrb[206].mxu0  ;;  %v8656_v36 = vpop.eup %7199 }
 0x4cb   : > { %v5429_v53 = vpop.f32.mrb[207].mxu0 }
 0x4cc   : > { %5763 = vmatmul.mubr.f32.gmra.mrb[226].mxu0 %v8542_v61  ;;  %v8659_v22 = vpop.eup %7201  ;;  %v3843_v10 = vadd.f32 %v5427_v28, %v8519_v42  ;;  %v5430_v45 = vadd.f32 %v5429_v53, %v5428_v52 }
 0x4cd   : > { %5765 = vmatprep.mubr.f32.mxu0 %v8554_v43  ;;  %v8665_v26 = vpack.c.bf16 %v8659_v22, %v8656_v36 }
 0x4ce   : > { %v4004_v39 = vadd.f32 %v8566_v35, %v3843_v10  ;;  %v3846_v29 = vadd.f32 %v5430_v45, %v8519_v42 }
 0x4cf   : > { %5844 = vmatprep.subr.bf16.mxu1 %v8665_v26 }
 0x4d0   : > { %5766 = vmatmul.mubr.f32.gmra.mrb[228].mxu0 %v8558_v31  ;;  %v4007_v33 = vadd.f32 %v8572_v2, %v3846_v29  ;;  %v5431_v49 = vpop.f32.mrb[208].mxu0  ;;  %5846 = vmatpush3.bf16.xpose.msra.mxu1 %v8665_v26  ;;  %7207 = vtanh.f32 %v4004_v39 }
 0x4d1   : > { %5768 = vmatprep.mubr.f32.mxu0 %v8570_v60  ;;  %v5432_v9 = vpop.f32.mrb[209].mxu0 }
 0x4d2   : > { %7209 = vtanh.f32 %v4007_v33  ;;  %v5433_v37 = vadd.f32 %v5432_v9, %v5431_v49  ;;  %v5434_v40 = vpop.f32.mrb[210].mxu0  ;;  %v8674_v14 = vpop.eup %7203 }
 0x4d3   : > { %v5435_v35 = vpop.f32.mrb[211].mxu0 }
 0x4d4   : > { %5769 = vmatmul.mubr.f32.gmra.mrb[230].mxu0 %v8574_v3  ;;  %v8677_v47 = vpop.eup %7205  ;;  %v3851_v8 = vadd.f32 %v5433_v37, %v8519_v42  ;;  %v5436_v2 = vadd.f32 %v5435_v35, %v5434_v40 }
 0x4d5   : > { %5771 = vmatprep.mubr.f32.mxu0 %v8588_v15  ;;  %v8683_v16 = vpack.c.bf16 %v8677_v47, %v8674_v14 }
 0x4d6   : > { %v4012_v34 = vadd.f32 %v8586_v6, %v3851_v8  ;;  %v3854_v46 = vadd.f32 %v5436_v2, %v8519_v42 }
 0x4d7   : > { %5848 = vmatprep.subr.bf16.mxu1 %v8683_v16 }
 0x4d8   : > { %5772 = vmatmul.mubr.f32.gmra.mrb[232].mxu0 %v8592_v62  ;;  %v4015_v41 = vadd.f32 %v8595_v5, %v3854_v46  ;;  %v5437_v11 = vpop.f32.mrb[212].mxu0  ;;  %5850 = vmatpush3.bf16.xpose.msra.mxu1 %v8683_v16  ;;  %7211 = vtanh.f32 %v4012_v34 }
 0x4d9   : > { %5774 = vmatprep.mubr.f32.mxu0 %v8606_v58  ;;  %v5438_v63 = vpop.f32.mrb[213].mxu0 }
 0x4da   : > { %7213 = vtanh.f32 %v4015_v41  ;;  %v5439_v38 = vadd.f32 %v5438_v63, %v5437_v11  ;;  %v5440_v55 = vpop.f32.mrb[214].mxu0  ;;  %v8692_v4 = vpop.eup %7207 }
 0x4db   : > { %v5441_v6 = vpop.f32.mrb[215].mxu0 }
 0x4dc   : > { %5775 = vmatmul.mubr.f32.gmra.mrb[234].mxu0 %v8610_v57  ;;  %v8695_v21 = vpop.eup %7209  ;;  %v3859_v44 = vadd.f32 %v5439_v38, %v8519_v42  ;;  %v5442_v5 = vadd.f32 %v5441_v6, %v5440_v55 }
 0x4dd   : > { %5777 = vmatprep.mubr.f32.mxu0 %v8620_v30  ;;  %v8701_v32 = vpack.c.bf16 %v8695_v21, %v8692_v4 }
 0x4de   : > { %v4020_v12 = vadd.f32 %v8584_v19, %v3859_v44  ;;  %v3862_v20 = vadd.f32 %v5442_v5, %v8519_v42 }
 0x4df   : > { %5852 = vmatprep.subr.bf16.mxu1 %v8701_v32 }
 0x4e0   : > { %5778 = vmatmul.mubr.f32.gmra.mrb[236].mxu0 %v8622_v17  ;;  %v4023_v13 = vadd.f32 %v8590_v0, %v3862_v20  ;;  %v5443_v28 = vpop.f32.mrb[216].mxu0  ;;  %5854 = vmatpush3.bf16.xpose.msra.mxu1 %v8701_v32  ;;  %7215 = vtanh.f32 %v4020_v12 }
 0x4e1   : > { %5780 = vmatprep.mubr.f32.mxu0 %v8630_v23  ;;  %v5444_v52 = vpop.f32.mrb[217].mxu0 }
 0x4e2   : > { %7217 = vtanh.f32 %v4023_v13  ;;  %v5445_v53 = vadd.f32 %v5444_v52, %v5443_v28  ;;  %v5446_v10 = vpop.f32.mrb[218].mxu0  ;;  %v8710_v45 = vpop.eup %7211  ;;  %v8832_v28 = vadd.s32 80, %v8072_v56 }
 0x4e3   : > { %v5447_v19 = vpop.f32.mrb[219].mxu0 }
 0x4e4   : > { %5781 = vmatmul.mubr.f32.gmra.mrb[238].mxu0 %v8632_v7  ;;  %v8713_v39 = vpop.eup %7213  ;;  %v3867_v29 = vadd.f32 %v5445_v53, %v8519_v42  ;;  %v5448_v0 = vadd.f32 %v5447_v19, %v5446_v10  ;;  %v8840_v19 = vadd.s32 88, %v8072_v56 }
 0x4e5   : > { %v5855_v33 = vpack.c.bf16 %v8713_v39, %v8710_v45 }
 0x4e6   : > { %v4028_v49 = vadd.f32 %v8604_v59, %v3867_v29  ;;  %v3870_v9 = vadd.f32 %v5448_v0, %v8519_v42  ;;  %v8848_v0 = vadd.s32 96, %v8072_v56 }
 0x4e7   : > { %5856 = vmatprep.subr.bf16.mxu1 %v5855_v33 }
 0x4e8   : > { %v4031_v37 = vadd.f32 %v8613_v50, %v3870_v9  ;;  %v5449_v40 = vpop.f32.mrb[220].mxu0  ;;  %5858 = vmatpush3.bf16.xpose.msra.mxu1 %v5855_v33  ;;  %7219 = vtanh.f32 %v4028_v49 }
 0x4e9   : > { %v5450_v35 = vpop.f32.mrb[221].mxu0 }
 0x4ea   : > { %7221 = vtanh.f32 %v4031_v37  ;;  %v5451_v8 = vadd.f32 %v5450_v35, %v5449_v40  ;;  %v5452_v2 = vpop.f32.mrb[222].mxu0  ;;  %v8721_v34 = vpop.eup %7215  ;;  %v8856_v40 = vadd.s32 104, %v8072_v56 }
 0x4eb   : > { %v5453_v46 = vpop.f32.mrb[223].mxu0 }
 0x4ec   : > { %v7218_v41 = vpop.eup %7217  ;;  %v3875_v11 = vadd.f32 %v5451_v8, %v8519_v42  ;;  %v5454_v63 = vadd.f32 %v5453_v46, %v5452_v2  ;;  %v8864_v2 = vadd.s32 112, %v8072_v56 }
 0x4ed   : > { %v5859_v59 = vpack.c.bf16 %v7218_v41, %v8721_v34 }
 0x4ee   : > { %v4036_v38 = vadd.f32 %v8602_v18, %v3875_v11  ;;  %v3878_v50 = vadd.f32 %v5454_v63, %v8519_v42  ;;  %v8763_v42 = vadd.s32 8, %v8072_v56  ;;  %v8872_v63 = vadd.s32 120, %v8072_v56 }
 0x4ef   : > { %5860 = vmatprep.subr.bf16.mxu1 %v5859_v59 }
 0x4f0   : > { %v4039_v55 = vadd.f32 %v8608_v24, %v3878_v50  ;;  %5862 = vmatpush3.bf16.xpose.msra.mxu1 %v5859_v59  ;;  %7223 = vtanh.f32 %v4036_v38 }
 0x4f2   : > { %7225 = vtanh.f32 %v4039_v55  ;;  %v7220_v6 = vpop.eup %7219 }
 0x4f4   : > { %v7222_v44 = vpop.eup %7221 }
 0x4f5   : > { %v5863_v5 = vpack.c.bf16 %v7222_v44, %v7220_v6 }
 0x4f7   : > { %5864 = vmatprep.subr.bf16.mxu1 %v5863_v5 }
 0x4f8   : > { %5866 = vmatpush3.bf16.xpose.msra.mxu1 %v5863_v5 }
 0x4fa   : > { %v7224_v12 = vpop.eup %7223 }
 0x4fc   : > { %v7226_v20 = vpop.eup %7225 }
 0x4fd   : > { %v5867_v13 = vpack.c.bf16 %v7226_v20, %v7224_v12 }
 0x4ff   : > { %5868 = vmatprep.subr.bf16.mxu1 %v5867_v13 }
 0x500   : > { %5870 = vmatpush3.bf16.xpose.msra.mxu1 %v5867_v13 }
 0x501   : > { %5904 = vmatprep.subr.bf16.mxu1 %v8647_v25 }
 0x507   : > { %5704 = vmatmul.mubr.f32.vlgmr.msra.gmra.mrb[224].mxu1 %v8529_v27  ;;  %v8766_v27 = vand.u32 127, %v793_v51 }
 0x508   : > { %5706 = vmatprep.mubr.f32.mxu1 %v8538_v54  ;;  %5906 = vmatpush3.bf16.xpose.msra.mxu1 %v8647_v25  ;;  %v8773_v54 = vadd.s32 16, %v8072_v56 }
 0x509   : > { %5908 = vmatprep.subr.bf16.mxu1 %v8665_v26  ;;  %vm4529_vm0 = vcmp.eq.s32.totalorder %v8763_v42, %v8766_v27  ;;  %vm4528_vm1 = vcmp.eq.s32.totalorder %v8072_v56, %v8766_v27  ;;  %vm4538_vm10 = vcmp.eq.s32.totalorder %v8832_v28, %v8766_v27  ;;  %vm4539_vm11 = vcmp.eq.s32.totalorder %v8840_v19, %v8766_v27 }
 0x50a   : > { %vm4530_vm2 = vcmp.eq.s32.totalorder %v8773_v54, %v8766_v27  ;;  %vm4540_vm12 = vcmp.eq.s32.totalorder %v8848_v0, %v8766_v27  ;;  %vm4541_vm13 = vcmp.eq.s32.totalorder %v8856_v40, %v8766_v27  ;;  %vm4542_vm14 = vcmp.eq.s32.totalorder %v8864_v2, %v8766_v27 }
 0x50b   : > { %5707 = vmatmul.mubr.f32.gmra.mrb[226].mxu1 %v8542_v61  ;;  %vm4543_vm15 = vcmp.eq.s32.totalorder %v8872_v63, %v8766_v27 }
 0x50c   : > { %5709 = vmatprep.mubr.f32.mxu1 %v8554_v43 }
 0x50f   : > { %5710 = vmatmul.mubr.f32.gmra.mrb[228].mxu1 %v8558_v31 }
 0x510   : > { %5712 = vmatprep.mubr.f32.mxu1 %v8570_v60  ;;  %5910 = vmatpush3.bf16.xpose.msra.mxu1 %v8665_v26  ;;  %v8779_v60 = vadd.s32 24, %v8072_v56 }
 0x511   : > { %5912 = vmatprep.subr.bf16.mxu1 %v8683_v16 }
 0x512   : > { %vm4531_vm3 = vcmp.eq.s32.totalorder %v8779_v60, %v8766_v27 }
 0x513   : > { %5713 = vmatmul.mubr.f32.gmra.mrb[230].mxu1 %v8574_v3 }
 0x514   : > { %5715 = vmatprep.mubr.f32.mxu1 %v8588_v15  ;;  %v8787_v15 = vadd.s32 32, %v8072_v56 }
 0x516   : > { %vm4532_vm4 = vcmp.eq.s32.totalorder %v8787_v15, %v8766_v27 }
 0x517   : > { %5716 = vmatmul.mubr.f32.gmra.mrb[232].mxu1 %v8592_v62 }
 0x518   : > { %5718 = vmatprep.mubr.f32.mxu1 %v8606_v58  ;;  %5914 = vmatpush3.bf16.xpose.msra.mxu1 %v8683_v16  ;;  %v8792_v58 = vadd.s32 40, %v8072_v56 }
 0x519   : > { %5916 = vmatprep.subr.bf16.mxu1 %v8701_v32 }
 0x51a   : > { %vm4533_vm5 = vcmp.eq.s32.totalorder %v8792_v58, %v8766_v27 }
 0x51b   : > { %5719 = vmatmul.mubr.f32.gmra.mrb[234].mxu1 %v8610_v57 }
 0x51c   : > { %5721 = vmatprep.mubr.f32.mxu1 %v8620_v30  ;;  %v8800_v30 = vadd.s32 48, %v8072_v56 }
 0x51e   : > { %vm4534_vm6 = vcmp.eq.s32.totalorder %v8800_v30, %v8766_v27 }
 0x51f   : > { %5722 = vmatmul.mubr.f32.gmra.mrb[236].mxu1 %v8622_v17 }
 0x520   : > { %5724 = vmatprep.mubr.f32.mxu1 %v8630_v23  ;;  %5918 = vmatpush3.bf16.xpose.msra.mxu1 %v8701_v32 }
 0x521   : > { %5920 = vmatprep.subr.bf16.mxu1 %v5855_v33 }
 0x523   : > { %5725 = vmatmul.mubr.f32.gmra.mrb[238].mxu1 %v8632_v7 }
 0x524   : > { %5815 = vmatprep.mubr.f32.mxu1 %v8640_v1 }
 0x528   : > { %5922 = vmatpush3.bf16.xpose.msra.mxu1 %v5855_v33 }
 0x529   : > { %5924 = vmatprep.subr.bf16.mxu1 %v5859_v59 }
 0x530   : > { %5926 = vmatpush3.bf16.xpose.msra.mxu1 %v5859_v59 }
 0x531   : > { %5928 = vmatprep.subr.bf16.mxu1 %v5863_v5 }
 0x538   : > { %5930 = vmatpush3.bf16.xpose.msra.mxu1 %v5863_v5 }
 0x539   : > { %5932 = vmatprep.subr.bf16.mxu1 %v5867_v13 }
 0x540   : > { %5934 = vmatpush3.bf16.xpose.msra.mxu1 %v5867_v13 }
 0x547   : > { %5816 = vmatmul.mubr.f32.vlgmr.msra.gmra.mrb[240].mxu1 %v8642_v48  ;;  %v8808_v48 = vadd.s32 56, %v8072_v56 }
 0x548   : > { %5818 = vmatprep.mubr.f32.mxu1 %v8656_v36 }
 0x549   : > { %vm4535_vm7 = vcmp.eq.s32.totalorder %v8808_v48, %v8766_v27 }
 0x54b   : > { %5819 = vmatmul.mubr.f32.gmra.mrb[242].mxu1 %v8659_v22  ;;  %v8816_v22 = vadd.s32 64, %v8072_v56 }
 0x54c   : > { %5821 = vmatprep.mubr.f32.mxu1 %v8674_v14 }
 0x54d   : > { %vm4536_vm8 = vcmp.eq.s32.totalorder %v8816_v22, %v8766_v27 }
 0x54f   : > { %5822 = vmatmul.mubr.f32.gmra.mrb[244].mxu1 %v8677_v47 }
 0x550   : > { %5824 = vmatprep.mubr.f32.mxu1 %v8692_v4  ;;  %v8824_v4 = vadd.s32 72, %v8072_v56 }
 0x552   : > { %vm4537_vm9 = vcmp.eq.s32.totalorder %v8824_v4, %v8766_v27 }
 0x553   : > { %5825 = vmatmul.mubr.f32.gmra.mrb[246].mxu1 %v8695_v21 }
 0x554   : > { %5827 = vmatprep.mubr.f32.mxu1 %v8710_v45 }
 0x557   : > { %5828 = vmatmul.mubr.f32.gmra.mrb[248].mxu1 %v8713_v39 }
 0x558   : > { %5830 = vmatprep.mubr.f32.mxu1 %v8721_v34 }
 0x55b   : > { %5831 = vmatmul.mubr.f32.gmra.mrb[250].mxu1 %v7218_v41 }
 0x55c   : > { %5833 = vmatprep.mubr.f32.mxu1 %v7220_v6 }
 0x55f   : > { %5834 = vmatmul.mubr.f32.gmra.mrb[252].mxu1 %v7222_v44 }
 0x560   : > { %5836 = vmatprep.mubr.f32.mxu1 %v7224_v12 }
 0x563   : > { %5837 = vmatmul.mubr.f32.gmra.mrb[254].mxu1 %v7226_v20 }
 0x59b   : > { %v5761_v61 = vpop.f32.mrb[224].mxu0 }
 0x59c   : > { %v4582_v43 = vsel %vm4529_vm0, %v5761_v61, 0.0  ;;  %v4285_v31 = vpop.f32.mrb[225].mxu0 }
 0x59d   : > { %v4581_v51 = vsel %vm4528_vm1, %v4285_v31, 0.0 }
 0x59e   : > { %v4597_v3 = vadd.f32 %v4582_v43, %v4581_v51 }
 0x59f   : > { %v5764_v62 = vpop.f32.mrb[226].mxu0 }
 0x5a0   : > { %v4295_v18 = vpop.f32.mrb[227].mxu0  ;;  %v4584_v17 = vsel %vm4531_vm3, %v5764_v62, 0.0 }
 0x5a1   : > { %v4583_v24 = vsel %vm4530_vm2, %v4295_v18, 0.0 }
 0x5a2   : > { %v4598_v57 = vadd.f32 %v4597_v3, %v4583_v24 }
 0x5a3   : > { %v5767_v23 = vpop.f32.mrb[228].mxu0 }
 0x5a4   : > { %v4305_v7 = vpop.f32.mrb[229].mxu0  ;;  %v4599_v1 = vadd.f32 %v4598_v57, %v4584_v17  ;;  %v4586_v26 = vsel %vm4533_vm5, %v5767_v23, 0.0 }
 0x5a5   : > { %v4585_v25 = vsel %vm4532_vm4, %v4305_v7, 0.0 }
 0x5a6   : > { %v4600_v36 = vadd.f32 %v4599_v1, %v4585_v25 }
 0x5a7   : > { %v5770_v14 = vpop.f32.mrb[230].mxu0 }
 0x5a8   : > { %v4315_v47 = vpop.f32.mrb[231].mxu0  ;;  %v4601_v16 = vadd.f32 %v4600_v36, %v4586_v26  ;;  %v4588_v52 = vsel %vm4535_vm7, %v5770_v14, 0.0 }
 0x5a9   : > { %v4587_v21 = vsel %vm4534_vm6, %v4315_v47, 0.0 }
 0x5aa   : > { %v4602_v32 = vadd.f32 %v4601_v16, %v4587_v21 }
 0x5ab   : > { %v5773_v53 = vpop.f32.mrb[232].mxu0 }
 0x5ac   : > { %v4325_v10 = vpop.f32.mrb[233].mxu0  ;;  %v4603_v45 = vadd.f32 %v4602_v32, %v4588_v52  ;;  %v4590_v33 = vsel %vm4537_vm9, %v5773_v53, 0.0 }
 0x5ad   : > { %v4589_v39 = vsel %vm4536_vm8, %v4325_v10, 0.0 }
 0x5ae   : > { %v4604_v29 = vadd.f32 %v4603_v45, %v4589_v39 }
 0x5af   : > { %v5776_v49 = vpop.f32.mrb[234].mxu0 }
 0x5b0   : > { %v4335_v9 = vpop.f32.mrb[235].mxu0  ;;  %v4605_v37 = vadd.f32 %v4604_v29, %v4590_v33  ;;  %v4592_v34 = vsel %vm4539_vm11, %v5776_v49, 0.0 }
 0x5b1   : > { %v4591_v35 = vsel %vm4538_vm10, %v4335_v9, 0.0 }
 0x5b2   : > { %v4606_v8 = vadd.f32 %v4605_v37, %v4591_v35 }
 0x5b3   : > { %v5779_v46 = vpop.f32.mrb[236].mxu0 }
 0x5b4   : > { %v4345_v41 = vpop.f32.mrb[237].mxu0  ;;  %v4607_v11 = vadd.f32 %v4606_v8, %v4592_v34  ;;  %v4594_v50 = vsel %vm4541_vm13, %v5779_v46, 0.0 }
 0x5b5   : > { %v4593_v59 = vsel %vm4540_vm12, %v4345_v41, 0.0 }
 0x5b6   : > { %v4608_v38 = vadd.f32 %v4607_v11, %v4593_v59 }
 0x5b7   : > { %v5782_v55 = vpop.f32.mrb[238].mxu0 }
 0x5b8   : > { %v4355_v6 = vpop.f32.mrb[239].mxu0  ;;  %v4609_v44 = vadd.f32 %v4608_v38, %v4594_v50  ;;  %v4596_v20 = vsel %vm4543_vm15, %v5782_v55, 0.0 }
 0x5b9   : > { %v4595_v5 = vsel %vm4542_vm14, %v4355_v6, 0.0 }
 0x5ba   : > { %v4610_v12 = vadd.f32 %v4609_v44, %v4595_v5 }
 0x5bc   : > { %v4611_v13 = vadd.f32 %v4610_v12, %v4596_v20 }
 0x5be   : > { %v4612_v17 = vrot.slane %v4611_v13, 4 }
 0x5c0   : > { %v4613_v14 = vadd.f32 %v4612_v17, %v4611_v13 }
 0x5c2   : > { %v4614_v10 = vrot.slane %v4613_v14, 2 }
 0x5c4   : > { %v4615_v37 = vadd.f32 %v4614_v10, %v4613_v14 }
 0x5c6   : > { %v4616_v59 = vrot.slane %v4615_v37, 1 }
 0x5c8   : > { %v4617_v12 = vadd.f32 %v4616_v59, %v4615_v37 }
 0x5da   : > { %v5705_v61 = vpop.f32.mrb[224].mxu1 }
 0x5db   : > { %v4545_v43 = vsel %vm4529_vm0, %v5705_v61, 0.0  ;;  %v4140_v31 = vpop.f32.mrb[225].mxu1 }
 0x5dc   : > { %v4544_v51 = vsel %vm4528_vm1, %v4140_v31, 0.0 }
 0x5dd   : > { %v4560_v3 = vadd.f32 %v4545_v43, %v4544_v51 }
 0x5de   : > { %v5708_v62 = vpop.f32.mrb[226].mxu1 }
 0x5df   : > { %v4150_v18 = vpop.f32.mrb[227].mxu1  ;;  %v4547_v23 = vsel %vm4531_vm3, %v5708_v62, 0.0 }
 0x5e0   : > { %v4546_v24 = vsel %vm4530_vm2, %v4150_v18, 0.0 }
 0x5e1   : > { %v4561_v57 = vadd.f32 %v4560_v3, %v4546_v24  ;;  %v4655_v3 = vmax.f32 %v4617_v12, 1e-16 }
 0x5e2   : > { %v5711_v7 = vpop.f32.mrb[228].mxu1 }
 0x5e3   : > { %v4160_v1 = vpop.f32.mrb[229].mxu1  ;;  %v4562_v25 = vadd.f32 %v4561_v57, %v4547_v23  ;;  %v4549_v47 = vsel %vm4533_vm5, %v5711_v7, 0.0  ;;  %7227 = vrsqrt.f32 %v4655_v3 }
 0x5e4   : > { %v4548_v36 = vsel %vm4532_vm4, %v4160_v1, 0.0 }
 0x5e5   : > { %v4563_v26 = vadd.f32 %v4562_v25, %v4548_v36 }
 0x5e6   : > { %v5714_v16 = vpop.f32.mrb[230].mxu1 }
 0x5e7   : > { %v4170_v21 = vpop.f32.mrb[231].mxu1  ;;  %v4564_v32 = vadd.f32 %v4563_v26, %v4549_v47  ;;  %v4551_v45 = vsel %vm4535_vm7, %v5714_v16, 0.0 }
 0x5e8   : > { %v4550_v52 = vsel %vm4534_vm6, %v4170_v21, 0.0 }
 0x5e9   : > { %v4565_v53 = vadd.f32 %v4564_v32, %v4550_v52 }
 0x5ea   : > { %v5717_v39 = vpop.f32.mrb[232].mxu1 }
 0x5eb   : > { %v4180_v29 = vpop.f32.mrb[233].mxu1  ;;  %v4566_v33 = vadd.f32 %v4565_v53, %v4551_v45  ;;  %v4553_v35 = vsel %vm4537_vm9, %v5717_v39, 0.0 }
 0x5ec   : > { %v4552_v49 = vsel %vm4536_vm8, %v4180_v29, 0.0 }
 0x5ed   : > { %v4567_v9 = vadd.f32 %v4566_v33, %v4552_v49  ;;  %v7228_v25 = vpop.eup %7227 }
 0x5ee   : > { %v5720_v8 = vpop.f32.mrb[234].mxu1 }
 0x5ef   : > { %v4190_v34 = vpop.f32.mrb[235].mxu1  ;;  %v4568_v46 = vadd.f32 %v4567_v9, %v4553_v35  ;;  %v4555_v38 = vsel %vm4539_vm11, %v5720_v8, 0.0 }
 0x5f0   : > { %v4554_v41 = vsel %vm4538_vm10, %v4190_v34, 0.0 }
 0x5f1   : > { %v4569_v11 = vadd.f32 %v4568_v46, %v4554_v41 }
 0x5f2   : > { %v5723_v50 = vpop.f32.mrb[236].mxu1 }
 0x5f3   : > { %v4200_v55 = vpop.f32.mrb[237].mxu1  ;;  %v4570_v6 = vadd.f32 %v4569_v11, %v4555_v38  ;;  %v4557_v20 = vsel %vm4541_vm13, %v5723_v50, 0.0 }
 0x5f4   : > { %v4556_v44 = vsel %vm4540_vm12, %v4200_v55, 0.0 }
 0x5f5   : > { %v4571_v5 = vadd.f32 %v4570_v6, %v4556_v44 }
 0x5f6   : > { %v5726_v13 = vpop.f32.mrb[238].mxu1 }
 0x5f7   : > { %v4210_v61 = vpop.f32.mrb[239].mxu1  ;;  %v4572_v43 = vadd.f32 %v4571_v5, %v4557_v20  ;;  %v4559_v62 = vsel %vm4543_vm15, %v5726_v13, 0.0 }
 0x5f8   : > { %v4558_v31 = vsel %vm4542_vm14, %v4210_v61, 0.0 }
 0x5f9   : > { %v4573_v51 = vadd.f32 %v4572_v43, %v4558_v31 }
 0x5fb   : > { %v4574_v18 = vadd.f32 %v4573_v51, %v4559_v62 }
 0x5fd   : > { %v4575_v24 = vrot.slane %v4574_v18, 4 }
 0x5ff   : > { %v4576_v57 = vadd.f32 %v4575_v24, %v4574_v18 }
 0x601   : > { %v4577_v17 = vrot.slane %v4576_v57, 2 }
 0x603   : > { %v4578_v23 = vadd.f32 %v4577_v17, %v4576_v57 }
 0x605   : > { %v4579_v7 = vrot.slane %v4578_v23, 1 }
 0x607   : > { %v4580_v1 = vadd.f32 %v4579_v7, %v4578_v23 }
 0x609   : > { %v4657_v36 = vmul.f32 %v7228_v25, %v4580_v1 }
 0x61a   : > { %v5817_v26 = vpop.f32.mrb[240].mxu1 }
 0x61b   : > { %v4619_v14 = vsel %vm4529_vm0, %v5817_v26, 0.0  ;;  %v4430_v47 = vpop.f32.mrb[241].mxu1 }
 0x61c   : > { %v4618_v16 = vsel %vm4528_vm1, %v4430_v47, 0.0 }
 0x61d   : > { %v4634_v21 = vadd.f32 %v4619_v14, %v4618_v16 }
 0x61e   : > { %v5820_v32 = vpop.f32.mrb[242].mxu1 }
 0x61f   : > { %v4440_v52 = vpop.f32.mrb[243].mxu1  ;;  %v4621_v45 = vsel %vm4531_vm3, %v5820_v32, 0.0 }
 0x620   : > { %v4620_v53 = vsel %vm4530_vm2, %v4440_v52, 0.0 }
 0x621   : > { %v4635_v10 = vadd.f32 %v4634_v21, %v4620_v53 }
 0x622   : > { %v5823_v39 = vpop.f32.mrb[244].mxu1 }
 0x623   : > { %v4450_v42 = vpop.f32.mrb[245].mxu1  ;;  %v4636_v29 = vadd.f32 %v4635_v10, %v4621_v45  ;;  %v4623_v49 = vsel %vm4533_vm5, %v5823_v39, 0.0 }
 0x624   : > { %v4622_v56 = vsel %vm4532_vm4, %v4450_v42, 0.0 }
 0x625   : > { %v4637_v33 = vadd.f32 %v4636_v29, %v4622_v56 }
 0x626   : > { %v5826_v9 = vpop.f32.mrb[246].mxu1 }
 0x627   : > { %v4460_v54 = vpop.f32.mrb[247].mxu1  ;;  %v4638_v37 = vadd.f32 %v4637_v33, %v4623_v49  ;;  %v4625_v8 = vsel %vm4535_vm7, %v5826_v9, 0.0 }
 0x628   : > { %v4624_v60 = vsel %vm4534_vm6, %v4460_v54, 0.0 }
 0x629   : > { %v4639_v35 = vadd.f32 %v4638_v37, %v4624_v60 }
 0x62a   : > { %v5829_v34 = vpop.f32.mrb[248].mxu1 }
 0x62b   : > { %v4470_v15 = vpop.f32.mrb[249].mxu1  ;;  %v4640_v46 = vadd.f32 %v4639_v35, %v4625_v8  ;;  %v4627_v11 = vsel %vm4537_vm9, %v5829_v34, 0.0 }
 0x62c   : > { %v4626_v58 = vsel %vm4536_vm8, %v4470_v15, 0.0 }
 0x62d   : > { %v4641_v41 = vadd.f32 %v4640_v46, %v4626_v58 }
 0x62e   : > { %v5832_v59 = vpop.f32.mrb[250].mxu1 }
 0x62f   : > { %v4480_v30 = vpop.f32.mrb[251].mxu1  ;;  %v4642_v38 = vadd.f32 %v4641_v41, %v4627_v11  ;;  %v4629_v55 = vsel %vm4539_vm11, %v5832_v59, 0.0 }
 0x630   : > { %v4628_v48 = vsel %vm4538_vm10, %v4480_v30, 0.0 }
 0x631   : > { %v4643_v50 = vadd.f32 %v4642_v38, %v4628_v48 }
 0x632   : > { %v5835_v6 = vpop.f32.mrb[252].mxu1 }
 0x633   : > { %v4490_v22 = vpop.f32.mrb[253].mxu1  ;;  %v4644_v44 = vadd.f32 %v4643_v50, %v4629_v55  ;;  %v4631_v12 = vsel %vm4541_vm13, %v5835_v6, 0.0 }
 0x634   : > { %v4630_v4 = vsel %vm4540_vm12, %v4490_v22, 0.0 }
 0x635   : > { %v4645_v5 = vadd.f32 %v4644_v44, %v4630_v4 }
 0x636   : > { %v5838_v28 = vpop.f32.mrb[254].mxu1 }
 0x637   : > { %v4500_v20 = vpop.f32.mrb[255].mxu1  ;;  %v4646_v13 = vadd.f32 %v4645_v5, %v4631_v12  ;;  %v4633_v0 = vsel %vm4543_vm15, %v5838_v28, 0.0 }
 0x638   : > { %v4632_v19 = vsel %vm4542_vm14, %v4500_v20, 0.0 }
 0x639   : > { %v4647_v61 = vadd.f32 %v4646_v13, %v4632_v19 }
 0x63b   : > { %v4648_v43 = vadd.f32 %v4647_v61, %v4633_v0 }
 0x63d   : > { %v4649_v31 = vrot.slane %v4648_v43, 4 }
 0x63f   : > { %v4650_v51 = vadd.f32 %v4649_v31, %v4648_v43 }
 0x641   : > { %v4651_v40 = vrot.slane %v4650_v51, 2 }
 0x643   : > { %v4652_v3 = vadd.f32 %v4651_v40, %v4650_v51 }
 0x645   : > { %v4653_v62 = vrot.slane %v4652_v3, 1 }
 0x647   : > { %v4654_v18 = vadd.f32 %v4653_v62, %v4652_v3 }
 0x649   : > { %v4658_v24 = vmax.f32 %v4654_v18, 1e-16 }
 0x64b   : > { %7229 = vrsqrt.f32 %v4658_v24 }
 0x655   : > { %v7230_v2 = vpop.eup %7229 }
 0x656   : > { %v4660_v57 = vmul.f32 %v7230_v2, %v4657_v36 }
 0x658   : > { %4661 = vst [vmem:[%s340_s11] sm:$0x1] %v4660_v57 }
 0x659   : > { %7358 = shalt.err (!%p7355_p4)
}
 0x65a   : > { %s7359_s21 = scalar_lea.hbm %s8991_s16, 16  ;;  %s7363_s22 = scalar_lea.hbm %s9042_s7, 32 }
 0x65b   : > { %p7360_p9 = scmp.ne.s32.totalorder %s8991_s16, %s7359_s21  ;;  %p7364_p8 = scmp.lt.u32.totalorder %s8991_s16, %s9042_s7 }
 0x65c   : > { %p7365_p13 = scmp.lt.u32.totalorder %s7363_s22, %s7359_s21  ;;  %p7367_p10 = scmp.lt.u32.totalorder %s7359_s21, %s8991_s16 }
 0x65d   : > { %p7361_p0 = pnand %p7360_p9, %p7618_p5 }
 0x65e   : > { %p7366_p6 = por %p7365_p13, %p7364_p8 }
 0x65f   : > { %p7362_p11 = pneg %p7361_p0 }
 0x660   : > { %p7368_p3 = por %p7367_p10, %p7366_p6 }
 0x662   : > { %p7369_p7 = pnand %p7368_p3, %p7362_p11 }
 0x664   : > { %7372 = shalt.err (!%p7369_p7)
}
 0x665   : > { %6205 = dma.vmem_to_hbm [thread:$0]  (%p7618_p5), %s8993_s17, 16, %s8991_s16, %s4663_s23  }
 0x666 PF: > { %s9062_s11 = sld [smem:[#allocation15_spill]]  ;;  %s4687_s15 = sand.u32 1, %s7407_s24  }
 0x667   : > { %p9064_p2 = scmp.ge.s32.totalorder %s7419_s27, 2  ;;  %s4688_s18 = scalar_lea.sflag [#allocation4], %s4687_s15 }
 0x66c   : > { %p9063_p12 = scmp.ne.s32.totalorder %s9062_s11, 0 }
 0x66e   : > { %p6222_p1 = pnand %p9064_p2, %p9063_p12 }
 0x670   : > { %7402 = dma.done.wait (!%p6222_p1), %s4688_s18, 16  }
 0x671   : > { %7404 = vsyncadd (!%p6222_p1), %s4688_s18, 4294967280  ;;  %p22_p4 = scmp.ge.s32.totalorder %s7604_s8, 4   ;;  %s9065_s24 = smov %s7411_s25 }
 0x672   : > { %s9066_s25 = smov %s7415_s26  ;;  %s9067_s26 = smov %s7614_s19 }
 0x673   : > { %s9068_s27 = smov %s7604_s8  ;;  %24 = sbr.rel (!%p22_p4) target bundleno = 7 (0x7), region = 105 }
 0x67a   :  { %4692 = vsyncpa [#allocation3], 1 }
 0x67b   :  { %4694 = vsyncpa [#allocation3 + $0x1], 1 }
 0x67c   :  { %4695 = vsyncpa [#allocation6], 1 }
 0x67d   :  { %4696 = vsyncpa [#allocation9], 1 }
 0x67e   :  { %4697 = vsyncpa [#allocation4], 1 }
 0x67f   :  { %4699 = vsyncpa [#allocation4 + $0x1], 1 }

</bundles_post_ra>
